<compile_context>
chip_gen: v7x
topology: tpu7x:2x2x1
jax: 0.10.0
libtpu: 0.0.40
codegen_flags: <defaults>
</compile_context>

<pallas_src>
import functools

import numpy as np
import jax
import jax.numpy as jnp
from jax.experimental import pallas as pl
from jax.experimental.pallas import tpu as pltpu


# ----------------------------------------------------------------------------
# Parameter / matrix setup (plain numpy glue)
# ----------------------------------------------------------------------------
def bilinear_matrix(in_size, out_size):
    """PyTorch F.interpolate(bilinear, align_corners=False) as a (out,in) matrix."""
    if in_size == out_size:
        return np.eye(out_size, dtype=np.float32)
    scale = in_size / out_size
    dst = np.arange(out_size, dtype=np.float64)
    src = (dst + 0.5) * scale - 0.5
    src = np.where(src < 0.0, 0.0, src)
    i0 = np.minimum(np.floor(src).astype(np.int64), in_size - 1)
    i1 = np.minimum(i0 + 1, in_size - 1)
    frac = src - i0
    rows = np.arange(out_size)
    A = np.zeros((out_size, in_size), dtype=np.float64)
    A[rows, i0] += (1.0 - frac)
    A[rows, i1] += frac
    return A.astype(np.float32)


def make_row_upsample(H):
    """Shared row-upsample matrices Ay for k=3,5,7 (depend only on H, k)."""
    return [jnp.asarray(bilinear_matrix(H - k + 1, H)) for k in (3, 5, 7)]


# static layout of the 16 per-dy weight slabs inside the stacked weight array
K_LIST = (1, 3, 5, 7)
K_OFFS = {1: 0, 3: 1, 5: 4, 7: 9}          # k=1 -> [0], k=3 -> [1..3], k=5 -> [4..8], k=7 -> [9..15]
N_SLABS = 16


def pack_resoblock_params(convs, Cin, Cout, H, W):
    """Fold dx taps + bilinear column-upsample into one (W*Cin, W*Cout) weight per dy.

    For tap (dy,dx):  kron(E_dx, I_Cin) @ kron(I_Wo, W_tap) @ kron(Ax.T, I_Cout)
                    = kron(G_dx, W_tap)   with G_dx[dx:dx+Wo, :] = Ax.T
    Wrow[k][dy] = sum_dx kron(G_dx, w[:, :, dy, dx].T)   (shape (W*Cin, W*Cout)).
    All 16 per-dy matrices are stacked into one (16, W*Cin, W*Cout) array.
    Biases of all four branches are pre-summed (Ay/Ax rows sum to 1, so adding
    the bias after the upsample is equivalent to adding it before).
    """
    slabs = []
    bias_sum = np.zeros((Cout,), np.float32)
    for (w, b), k in zip(convs, K_LIST):
        Wo = W - k + 1
        wn = np.asarray(w, dtype=np.float64)
        Ax = bilinear_matrix(Wo, W).astype(np.float64)          # (W, Wo)
        for dy in range(k):
            acc = np.zeros((W * Cin, W * Cout), np.float64)
            for dx in range(k):
                G = np.zeros((W, W), np.float64)
                G[dx:dx + Wo, :] = Ax.T
                acc += np.kron(G, wn[:, :, dy, dx].T)
            slabs.append(acc.astype(np.float32))
        bias_sum += np.asarray(b, np.float32)
    assert len(slabs) == N_SLABS
    w_stack = jnp.asarray(np.stack(slabs))                      # (16, W*Cin, W*Cout)
    bcomb = jnp.asarray(np.tile(bias_sum, W)[None, :])          # (1, W*Cout)
    return w_stack, bcomb


def pack_identity_params(id_conv, Cin, Cout, W):
    w, b = id_conv
    wtap = np.asarray(w, np.float32)[:, :, 0, 0].T              # (Cin, Cout)
    wid = np.kron(np.eye(W, dtype=np.float32), wtap).astype(np.float32)  # (W*Cin, W*Cout)
    bid = np.tile(np.asarray(b, np.float32), W)[None, :]
    return jnp.asarray(wid), jnp.asarray(bid)


def pack_bn_params(gamma, beta, Cout, W):
    gsel = np.kron(np.ones((W, 1), np.float32),
                   np.eye(Cout, dtype=np.float32)).astype(np.float32)    # (W*Cout, Cout)
    return (jnp.asarray(np.asarray(gamma, np.float32)[None, :]),
            jnp.asarray(np.asarray(beta, np.float32)[None, :]),
            jnp.asarray(gsel),
            jnp.asarray(np.ascontiguousarray(gsel.T)))


def full_block_spec(arr):
    nd = arr.ndim
    return pl.BlockSpec(arr.shape, lambda *idx: (0,) * nd)


# ----------------------------------------------------------------------------
# Pallas kernels
# ----------------------------------------------------------------------------
def make_main_kernel(H, W, Cin, Cout):
    """Fused rb0 -> leaky -> rb1 -> +identity -> leaky, plus per-image BN sums."""

    def kernel(x_ref, ay3, ay5, ay7, w0_ref, b0_ref, w1_ref, b1_ref, wid_ref, bid_ref,
               a_ref, s_ref, s2_ref):
        x2 = x_ref[0]                                            # (H, W*Cin)
        ay_map = {3: ay3, 5: ay5, 7: ay7}

        def resoblock(inp, w_ref, bcomb_ref):
            out = None
            for k in K_LIST:
                Ho = H - k + 1
                base = K_OFFS[k]
                # k sublane-shifted, full-lane-width matmuls (no lane-offset slices)
                acc = jnp.dot(inp[0:Ho, :], w_ref[base],
                              preferred_element_type=jnp.float32)
                for dy in range(1, k):
                    acc = acc + jnp.dot(inp[dy:dy + Ho, :], w_ref[base + dy],
                                        preferred_element_type=jnp.float32)
                if k > 1:                                        # row upsample to H
                    acc = jnp.dot(ay_map[k][...], acc,
                                  preferred_element_type=jnp.float32)
                out = acc if out is None else out + acc
            return out + bcomb_ref[...]                          # combined bias, one add

        r0 = resoblock(x2, w0_ref, b0_ref)
        r0 = jnp.where(r0 >= 0, r0, 0.1 * r0)                    # leak0
        r1 = resoblock(r0, w1_ref, b1_ref)
        ident = jnp.dot(x2, wid_ref[...], preferred_element_type=jnp.float32) + bid_ref[...]
        a = r1 + ident                                           # residual add
        a = jnp.where(a >= 0, a, 0.1 * a)                        # leak2
        a_ref[0] = a
        # per-image row sums (lane-dense (1, W*Cout)); channel fold happens in BN kernel
        s_ref[0] = jnp.sum(a, axis=0, keepdims=True)
        s2_ref[0] = jnp.sum(a * a, axis=0, keepdims=True)

    return kernel


def make_bn_kernel(N, H, W, Cout):
    """Training-mode BatchNorm2d apply; one (H, W*Cout) tile live per grid step.

    scale/shift are recomputed per grid step (a few tiny (1,WCo)x(WCo,Cout)
    matmuls + an 8-wide rsqrt) so the kernel stays correct under megacore
    sharding of the batch axis ("parallel": no step-0 init assumptions).
    """
    inv_count = 1.0 / float(N * H * W)

    def kernel(a_ref, s_ref, s2_ref, gamma_ref, beta_ref, gsel_ref, gselT_ref, o_ref):
        s_row = jnp.sum(s_ref[...], axis=0)                      # (1, W*Cout)
        s2_row = jnp.sum(s2_ref[...], axis=0)
        sum_c = jnp.dot(s_row, gsel_ref[...], preferred_element_type=jnp.float32)
        sumsq_c = jnp.dot(s2_row, gsel_ref[...], preferred_element_type=jnp.float32)
        mean_c = sum_c * inv_count
        # biased batch variance (training BN); E[x^2]-E[x]^2 is fine at these scales
        # TODO(synk): switch to centered two-pass accumulation if activation scales grow.
        var_c = sumsq_c * inv_count - mean_c * mean_c
        inv_c = jax.lax.rsqrt(var_c + 1e-5)
        scale_c = gamma_ref[...] * inv_c
        shift_c = beta_ref[...] - mean_c * scale_c
        scale_f = jnp.dot(scale_c, gselT_ref[...], preferred_element_type=jnp.float32)
        shift_f = jnp.dot(shift_c, gselT_ref[...], preferred_element_type=jnp.float32)
        o_ref[0] = a_ref[0] * scale_f + shift_f

    return kernel


# ----------------------------------------------------------------------------
# pallas_call wrappers
# ----------------------------------------------------------------------------
def _main_cost(N, H, W, Cin, Cout, bytes_accessed):
    def rb_flops(Ci):
        f = 2 * H * (W * Ci) * (W * Cout)                        # k = 1 branch
        for k in (3, 5, 7):
            Ho = H - k + 1
            f += 2 * k * Ho * (W * Ci) * (W * Cout) + 2 * H * Ho * (W * Cout)
        return f
    flops = N * (rb_flops(Cin) + rb_flops(Cout)
                 + 2 * H * (W * Cin) * (W * Cout)                # identity conv
                 + 8 * H * W * Cout)                             # adds / leaky / sums
    return pl.CostEstimate(flops=int(flops), transcendentals=0,
                           bytes_accessed=int(bytes_accessed))


def _bn_cost(N, H, W, Cout):
    WCo = W * Cout
    flops = N * (4 * WCo * Cout + 4 * Cout * WCo + 3 * H * WCo + 6 * Cout)
    bytes_accessed = (2 * N * H * WCo + 2 * N * WCo + 2 * WCo * Cout + 2 * Cout) * 4
    return pl.CostEstimate(flops=int(flops), transcendentals=0,
                           bytes_accessed=int(bytes_accessed))


def main_pallas(x_flat, const_inputs, N, H, W, Cin, Cout):
    WCo = W * Cout
    kernel = make_main_kernel(H, W, Cin, Cout)
    in_specs = ([pl.BlockSpec((1, H, W * Cin), lambda n: (n, 0, 0))]
                + [full_block_spec(a) for a in const_inputs])
    out_shape = (jax.ShapeDtypeStruct((N, H, WCo), jnp.float32),
                 jax.ShapeDtypeStruct((N, 1, WCo), jnp.float32),
                 jax.ShapeDtypeStruct((N, 1, WCo), jnp.float32))
    out_specs = (pl.BlockSpec((1, H, WCo), lambda n: (n, 0, 0)),
                 pl.BlockSpec((1, 1, WCo), lambda n: (n, 0, 0)),
                 pl.BlockSpec((1, 1, WCo), lambda n: (n, 0, 0)))
    bytes_accessed = sum(int(np.prod(a.shape)) * 4 for a in (x_flat, *const_inputs))
    bytes_accessed += (N * H * WCo + 2 * N * WCo) * 4
    return pl.pallas_call(
        kernel,
        out_shape=out_shape,
        grid=(N,),
        in_specs=in_specs,
        out_specs=out_specs,
        # batch elements are independent -> "parallel" lets v7x shard across its 2 TCs
        compiler_params=pltpu.CompilerParams(dimension_semantics=("parallel",)),
        cost_estimate=_main_cost(N, H, W, Cin, Cout, bytes_accessed),
    )(x_flat, *const_inputs)


def bn_pallas(a, s, s2, gamma, beta, gsel, gselT, N, H, W, Cout):
    WCo = W * Cout
    kernel = make_bn_kernel(N, H, W, Cout)
    in_specs = ([pl.BlockSpec((1, H, WCo), lambda n: (n, 0, 0))]
                + [full_block_spec(x) for x in (s, s2, gamma, beta, gsel, gselT)])
    return pl.pallas_call(
        kernel,
        out_shape=jax.ShapeDtypeStruct((N, H, WCo), jnp.float32),
        grid=(N,),
        in_specs=in_specs,
        out_specs=pl.BlockSpec((1, H, WCo), lambda n: (n, 0, 0)),
        # normalized output overwrites the pre-BN activation buffer (no extra HBM)
        input_output_aliases={0: 0},
        compiler_params=pltpu.CompilerParams(dimension_semantics=("parallel",)),
        cost_estimate=_bn_cost(N, H, W, Cout),
    )(a, s, s2, gamma, beta, gsel, gselT)


@functools.partial(jax.jit, static_argnums=(12, 13))
def res_resoblock_forward(x_nchw, ays, rb0_w, rb0_b, rb1_w, rb1_b,
                          wid, bid, gamma, beta, gsel, gselT, Cin, Cout):
    N, _, H, W = x_nchw.shape
    x_flat = jnp.transpose(x_nchw, (0, 2, 3, 1)).reshape(N, H, W * Cin)
    const_inputs = (list(ays) + [rb0_w, rb0_b, rb1_w, rb1_b, wid, bid])
    a, s, s2 = main_pallas(x_flat, const_inputs, N, H, W, Cin, Cout)
    out_flat = bn_pallas(a, s, s2, gamma, beta, gsel, gselT, N, H, W, Cout)
    return jnp.transpose(out_flat.reshape(N, H, W, Cout), (0, 3, 1, 2))


# ----------------------------------------------------------------------------
# Pure-JAX reference (for validation only)
# ----------------------------------------------------------------------------
def _leaky(x):
    return jnp.where(x >= 0, x, 0.1 * x)


def _ref_conv_valid(x_nhwc, w_oihw, b):
    w_hwio = jnp.transpose(w_oihw, (2, 3, 1, 0))
    y = jax.lax.conv_general_dilated(x_nhwc, w_hwio, (1, 1), 'VALID',
                                     dimension_numbers=('NHWC', 'HWIO', 'NHWC'))
    return y + b


def _ref_resoblock(x_nhwc, convs, H, W):
    out = None
    for (w, b), k in zip(convs, K_LIST):
        y = _ref_conv_valid(x_nhwc, w, b)
        if k > 1:
            Ay = jnp.asarray(bilinear_matrix(H - k + 1, H))
            Ax = jnp.asarray(bilinear_matrix(W - k + 1, W))
            y = jnp.einsum('ih,nhwc,jw->nijc', Ay, y, Ax)
        out = y if out is None else out + y
    return out


def _ref_forward(x_nhwc, rb0_convs, rb1_convs, id_conv, gamma, beta, H, W):
    identity = _ref_conv_valid(x_nhwc, id_conv[0], id_conv[1])
    h = _leaky(_ref_resoblock(x_nhwc, rb0_convs, H, W))
    h = _ref_resoblock(h, rb1_convs, H, W)
    h = _leaky(h + identity)
    mean = jnp.mean(h, axis=(0, 1, 2))
    var = jnp.mean((h - mean) ** 2, axis=(0, 1, 2))
    return (h - mean) * jax.lax.rsqrt(var + 1e-5) * gamma + beta


# ----------------------------------------------------------------------------
if __name__ == "__main__":
    N, Cin, Cout, H, W = 2, 4, 8, 16, 16

    key = jax.random.PRNGKey(0)
    keys = jax.random.split(key, 24)
    ki = iter(range(24))

    def init_conv(co, ci, k):
        kw = keys[next(ki)]
        kb = keys[next(ki)]
        w = jax.random.normal(kw, (co, ci, k, k), jnp.float32) / np.sqrt(ci * k * k)
        b = jax.random.normal(kb, (co,), jnp.float32) * 0.1
        return w, b

    rb0_convs = [init_conv(Cout, Cin, k) for k in K_LIST]
    rb1_convs = [init_conv(Cout, Cout, k) for k in K_LIST]
    id_conv = init_conv(Cout, Cin, 1)
    gamma = 1.0 + 0.1 * jax.random.normal(keys[next(ki)], (Cout,), jnp.float32)
    beta = 0.1 * jax.random.normal(keys[next(ki)], (Cout,), jnp.float32)
    x = jax.random.normal(keys[next(ki)], (N, Cin, H, W), jnp.float32)   # NCHW input

    # pack (deterministic numpy glue)
    ays = make_row_upsample(H)
    rb0_w, rb0_b = pack_resoblock_params(rb0_convs, Cin, Cout, H, W)
    rb1_w, rb1_b = pack_resoblock_params(rb1_convs, Cout, Cout, H, W)
    wid, bid = pack_identity_params(id_conv, Cin, Cout, W)
    g2, b2, gsel, gselT = pack_bn_params(gamma, beta, Cout, W)

    out = res_resoblock_forward(x, ays, rb0_w, rb0_b, rb1_w, rb1_b,
                                wid, bid, g2, b2, gsel, gselT, Cin, Cout)
    out = jax.block_until_ready(out)

    # validate against pure-JAX reference
    x_nhwc = jnp.transpose(x, (0, 2, 3, 1))
    ref = _ref_forward(x_nhwc, rb0_convs, rb1_convs, id_conv, gamma, beta, H, W)
    ref_nchw = jnp.transpose(ref, (0, 3, 1, 2))
    np.testing.assert_allclose(np.asarray(out), np.asarray(ref_nchw),
                               atol=2e-3, rtol=2e-3)

    print("KERNEL_OK")
</pallas_src>

<mosaic_0001>
module attributes {stable_mosaic.version = 11 : i64} {
  func.func @kernel(%arg0: i32, %arg1: memref<1x16x64xf32, #tpu.memory_space<vmem>>, %arg2: memref<16x14xf32, #tpu.memory_space<vmem>>, %arg3: memref<16x12xf32, #tpu.memory_space<vmem>>, %arg4: memref<16x10xf32, #tpu.memory_space<vmem>>, %arg5: memref<16x64x128xf32, #tpu.memory_space<vmem>>, %arg6: memref<1x128xf32, #tpu.memory_space<vmem>>, %arg7: memref<16x128x128xf32, #tpu.memory_space<vmem>>, %arg8: memref<1x128xf32, #tpu.memory_space<vmem>>, %arg9: memref<64x128xf32, #tpu.memory_space<vmem>>, %arg10: memref<1x128xf32, #tpu.memory_space<vmem>>, %arg11: memref<1x16x128xf32, #tpu.memory_space<vmem>>, %arg12: memref<1x1x128xf32, #tpu.memory_space<vmem>>, %arg13: memref<1x1x128xf32, #tpu.memory_space<vmem>>) attributes {dimension_semantics = [#tpu.dimension_semantics<parallel>], iteration_bounds = array<i64: 2>, scalar_prefetch = 0 : i64, scratch_operands = 0 : i64, tpu.core_type = #tpu.core_type<tc>, window_params = [{transform_indices = @transform_0, window_bounds = array<i64: 1, 16, 64>}, {pipeline_mode = #tpu.pipeline_mode<synchronous>, transform_indices = @transform_1, window_bounds = array<i64: 16, 14>}, {pipeline_mode = #tpu.pipeline_mode<synchronous>, transform_indices = @transform_2, window_bounds = array<i64: 16, 12>}, {pipeline_mode = #tpu.pipeline_mode<synchronous>, transform_indices = @transform_3, window_bounds = array<i64: 16, 10>}, {pipeline_mode = #tpu.pipeline_mode<synchronous>, transform_indices = @transform_4, window_bounds = array<i64: 16, 64, 128>}, {pipeline_mode = #tpu.pipeline_mode<synchronous>, transform_indices = @transform_5, window_bounds = array<i64: 1, 128>}, {pipeline_mode = #tpu.pipeline_mode<synchronous>, transform_indices = @transform_6, window_bounds = array<i64: 16, 128, 128>}, {pipeline_mode = #tpu.pipeline_mode<synchronous>, transform_indices = @transform_7, window_bounds = array<i64: 1, 128>}, {pipeline_mode = #tpu.pipeline_mode<synchronous>, transform_indices = @transform_8, window_bounds = array<i64: 64, 128>}, {pipeline_mode = #tpu.pipeline_mode<synchronous>, transform_indices = @transform_9, window_bounds = array<i64: 1, 128>}, {transform_indices = @transform_10, window_bounds = array<i64: 1, 16, 128>}, {transform_indices = @transform_11, window_bounds = array<i64: 1, 1, 128>}, {transform_indices = @transform_12, window_bounds = array<i64: 1, 1, 128>}]} {
    %c0 = arith.constant 0 : index
    %c0_0 = arith.constant 0 : index
    %c0_1 = arith.constant 0 : index
    %0 = vector.load %arg1[%c0, %c0_0, %c0_1] : memref<1x16x64xf32, #tpu.memory_space<vmem>>, vector<1x16x64xf32>
    %1 = vector.shape_cast %0 : vector<1x16x64xf32> to vector<16x64xf32>
    %c0_2 = arith.constant 0 : index
    %c0_3 = arith.constant 0 : index
    %c0_4 = arith.constant 0 : index
    %2 = vector.load %arg5[%c0_2, %c0_3, %c0_4] : memref<16x64x128xf32, #tpu.memory_space<vmem>>, vector<1x64x128xf32>
    %3 = vector.shape_cast %2 : vector<1x64x128xf32> to vector<64x128xf32>
    %cst = arith.constant dense<0.000000e+00> : vector<16x128xf32>
    %4 = tpu.matmul %1, %3, %cst {dimension_numbers = #tpu.dot_dimension_numbers<[1], [0], [0], [1], [0, 0, 1, 1], [], []>} : vector<16x64xf32>, vector<64x128xf32>, vector<16x128xf32> -> vector<16x128xf32>
    %5 = vector.extract_strided_slice %1 {offsets = [0, 0], sizes = [14, 64], strides = [1, 1]} : vector<16x64xf32> to vector<14x64xf32>
    %c1 = arith.constant 1 : index
    %c0_5 = arith.constant 0 : index
    %c0_6 = arith.constant 0 : index
    %6 = vector.load %arg5[%c1, %c0_5, %c0_6] : memref<16x64x128xf32, #tpu.memory_space<vmem>>, vector<1x64x128xf32>
    %7 = vector.shape_cast %6 : vector<1x64x128xf32> to vector<64x128xf32>
    %cst_7 = arith.constant dense<0.000000e+00> : vector<14x128xf32>
    %8 = tpu.matmul %5, %7, %cst_7 {dimension_numbers = #tpu.dot_dimension_numbers<[1], [0], [0], [1], [0, 0, 1, 1], [], []>} : vector<14x64xf32>, vector<64x128xf32>, vector<14x128xf32> -> vector<14x128xf32>
    %9 = vector.extract_strided_slice %1 {offsets = [1, 0], sizes = [14, 64], strides = [1, 1]} : vector<16x64xf32> to vector<14x64xf32>
    %c2 = arith.constant 2 : index
    %c0_8 = arith.constant 0 : index
    %c0_9 = arith.constant 0 : index
    %10 = vector.load %arg5[%c2, %c0_8, %c0_9] : memref<16x64x128xf32, #tpu.memory_space<vmem>>, vector<1x64x128xf32>
    %11 = vector.shape_cast %10 : vector<1x64x128xf32> to vector<64x128xf32>
    %cst_10 = arith.constant dense<0.000000e+00> : vector<14x128xf32>
    %12 = tpu.matmul %9, %11, %cst_10 {dimension_numbers = #tpu.dot_dimension_numbers<[1], [0], [0], [1], [0, 0, 1, 1], [], []>} : vector<14x64xf32>, vector<64x128xf32>, vector<14x128xf32> -> vector<14x128xf32>
    %13 = arith.addf %8, %12 : vector<14x128xf32>
    %14 = vector.extract_strided_slice %1 {offsets = [2, 0], sizes = [14, 64], strides = [1, 1]} : vector<16x64xf32> to vector<14x64xf32>
    %c3 = arith.constant 3 : index
    %c0_11 = arith.constant 0 : index
    %c0_12 = arith.constant 0 : index
    %15 = vector.load %arg5[%c3, %c0_11, %c0_12] : memref<16x64x128xf32, #tpu.memory_space<vmem>>, vector<1x64x128xf32>
    %16 = vector.shape_cast %15 : vector<1x64x128xf32> to vector<64x128xf32>
    %cst_13 = arith.constant dense<0.000000e+00> : vector<14x128xf32>
    %17 = tpu.matmul %14, %16, %cst_13 {dimension_numbers = #tpu.dot_dimension_numbers<[1], [0], [0], [1], [0, 0, 1, 1], [], []>} : vector<14x64xf32>, vector<64x128xf32>, vector<14x128xf32> -> vector<14x128xf32>
    %18 = arith.addf %13, %17 : vector<14x128xf32>
    %c0_14 = arith.constant 0 : index
    %c0_15 = arith.constant 0 : index
    %19 = vector.load %arg2[%c0_14, %c0_15] : memref<16x14xf32, #tpu.memory_space<vmem>>, vector<16x14xf32>
    %cst_16 = arith.constant dense<0.000000e+00> : vector<16x128xf32>
    %20 = tpu.matmul %19, %18, %cst_16 {dimension_numbers = #tpu.dot_dimension_numbers<[1], [0], [0], [1], [0, 0, 1, 1], [], []>} : vector<16x14xf32>, vector<14x128xf32>, vector<16x128xf32> -> vector<16x128xf32>
    %21 = arith.addf %4, %20 : vector<16x128xf32>
    %22 = vector.extract_strided_slice %1 {offsets = [0, 0], sizes = [12, 64], strides = [1, 1]} : vector<16x64xf32> to vector<12x64xf32>
    %c4 = arith.constant 4 : index
    %c0_17 = arith.constant 0 : index
    %c0_18 = arith.constant 0 : index
    %23 = vector.load %arg5[%c4, %c0_17, %c0_18] : memref<16x64x128xf32, #tpu.memory_space<vmem>>, vector<1x64x128xf32>
    %24 = vector.shape_cast %23 : vector<1x64x128xf32> to vector<64x128xf32>
    %cst_19 = arith.constant dense<0.000000e+00> : vector<12x128xf32>
    %25 = tpu.matmul %22, %24, %cst_19 {dimension_numbers = #tpu.dot_dimension_numbers<[1], [0], [0], [1], [0, 0, 1, 1], [], []>} : vector<12x64xf32>, vector<64x128xf32>, vector<12x128xf32> -> vector<12x128xf32>
    %26 = vector.extract_strided_slice %1 {offsets = [1, 0], sizes = [12, 64], strides = [1, 1]} : vector<16x64xf32> to vector<12x64xf32>
    %c5 = arith.constant 5 : index
    %c0_20 = arith.constant 0 : index
    %c0_21 = arith.constant 0 : index
    %27 = vector.load %arg5[%c5, %c0_20, %c0_21] : memref<16x64x128xf32, #tpu.memory_space<vmem>>, vector<1x64x128xf32>
    %28 = vector.shape_cast %27 : vector<1x64x128xf32> to vector<64x128xf32>
    %cst_22 = arith.constant dense<0.000000e+00> : vector<12x128xf32>
    %29 = tpu.matmul %26, %28, %cst_22 {dimension_numbers = #tpu.dot_dimension_numbers<[1], [0], [0], [1], [0, 0, 1, 1], [], []>} : vector<12x64xf32>, vector<64x128xf32>, vector<12x128xf32> -> vector<12x128xf32>
    %30 = arith.addf %25, %29 : vector<12x128xf32>
    %31 = vector.extract_strided_slice %1 {offsets = [2, 0], sizes = [12, 64], strides = [1, 1]} : vector<16x64xf32> to vector<12x64xf32>
    %c6 = arith.constant 6 : index
    %c0_23 = arith.constant 0 : index
    %c0_24 = arith.constant 0 : index
    %32 = vector.load %arg5[%c6, %c0_23, %c0_24] : memref<16x64x128xf32, #tpu.memory_space<vmem>>, vector<1x64x128xf32>
    %33 = vector.shape_cast %32 : vector<1x64x128xf32> to vector<64x128xf32>
    %cst_25 = arith.constant dense<0.000000e+00> : vector<12x128xf32>
    %34 = tpu.matmul %31, %33, %cst_25 {dimension_numbers = #tpu.dot_dimension_numbers<[1], [0], [0], [1], [0, 0, 1, 1], [], []>} : vector<12x64xf32>, vector<64x128xf32>, vector<12x128xf32> -> vector<12x128xf32>
    %35 = arith.addf %30, %34 : vector<12x128xf32>
    %36 = vector.extract_strided_slice %1 {offsets = [3, 0], sizes = [12, 64], strides = [1, 1]} : vector<16x64xf32> to vector<12x64xf32>
    %c7 = arith.constant 7 : index
    %c0_26 = arith.constant 0 : index
    %c0_27 = arith.constant 0 : index
    %37 = vector.load %arg5[%c7, %c0_26, %c0_27] : memref<16x64x128xf32, #tpu.memory_space<vmem>>, vector<1x64x128xf32>
    %38 = vector.shape_cast %37 : vector<1x64x128xf32> to vector<64x128xf32>
    %cst_28 = arith.constant dense<0.000000e+00> : vector<12x128xf32>
    %39 = tpu.matmul %36, %38, %cst_28 {dimension_numbers = #tpu.dot_dimension_numbers<[1], [0], [0], [1], [0, 0, 1, 1], [], []>} : vector<12x64xf32>, vector<64x128xf32>, vector<12x128xf32> -> vector<12x128xf32>
    %40 = arith.addf %35, %39 : vector<12x128xf32>
    %41 = vector.extract_strided_slice %1 {offsets = [4, 0], sizes = [12, 64], strides = [1, 1]} : vector<16x64xf32> to vector<12x64xf32>
    %c8 = arith.constant 8 : index
    %c0_29 = arith.constant 0 : index
    %c0_30 = arith.constant 0 : index
    %42 = vector.load %arg5[%c8, %c0_29, %c0_30] : memref<16x64x128xf32, #tpu.memory_space<vmem>>, vector<1x64x128xf32>
    %43 = vector.shape_cast %42 : vector<1x64x128xf32> to vector<64x128xf32>
    %cst_31 = arith.constant dense<0.000000e+00> : vector<12x128xf32>
    %44 = tpu.matmul %41, %43, %cst_31 {dimension_numbers = #tpu.dot_dimension_numbers<[1], [0], [0], [1], [0, 0, 1, 1], [], []>} : vector<12x64xf32>, vector<64x128xf32>, vector<12x128xf32> -> vector<12x128xf32>
    %45 = arith.addf %40, %44 : vector<12x128xf32>
    %c0_32 = arith.constant 0 : index
    %c0_33 = arith.constant 0 : index
    %46 = vector.load %arg3[%c0_32, %c0_33] : memref<16x12xf32, #tpu.memory_space<vmem>>, vector<16x12xf32>
    %cst_34 = arith.constant dense<0.000000e+00> : vector<16x128xf32>
    %47 = tpu.matmul %46, %45, %cst_34 {dimension_numbers = #tpu.dot_dimension_numbers<[1], [0], [0], [1], [0, 0, 1, 1], [], []>} : vector<16x12xf32>, vector<12x128xf32>, vector<16x128xf32> -> vector<16x128xf32>
    %48 = arith.addf %21, %47 : vector<16x128xf32>
    %49 = vector.extract_strided_slice %1 {offsets = [0, 0], sizes = [10, 64], strides = [1, 1]} : vector<16x64xf32> to vector<10x64xf32>
    %c9 = arith.constant 9 : index
    %c0_35 = arith.constant 0 : index
    %c0_36 = arith.constant 0 : index
    %50 = vector.load %arg5[%c9, %c0_35, %c0_36] : memref<16x64x128xf32, #tpu.memory_space<vmem>>, vector<1x64x128xf32>
    %51 = vector.shape_cast %50 : vector<1x64x128xf32> to vector<64x128xf32>
    %cst_37 = arith.constant dense<0.000000e+00> : vector<10x128xf32>
    %52 = tpu.matmul %49, %51, %cst_37 {dimension_numbers = #tpu.dot_dimension_numbers<[1], [0], [0], [1], [0, 0, 1, 1], [], []>} : vector<10x64xf32>, vector<64x128xf32>, vector<10x128xf32> -> vector<10x128xf32>
    %53 = vector.extract_strided_slice %1 {offsets = [1, 0], sizes = [10, 64], strides = [1, 1]} : vector<16x64xf32> to vector<10x64xf32>
    %c10 = arith.constant 10 : index
    %c0_38 = arith.constant 0 : index
    %c0_39 = arith.constant 0 : index
    %54 = vector.load %arg5[%c10, %c0_38, %c0_39] : memref<16x64x128xf32, #tpu.memory_space<vmem>>, vector<1x64x128xf32>
    %55 = vector.shape_cast %54 : vector<1x64x128xf32> to vector<64x128xf32>
    %cst_40 = arith.constant dense<0.000000e+00> : vector<10x128xf32>
    %56 = tpu.matmul %53, %55, %cst_40 {dimension_numbers = #tpu.dot_dimension_numbers<[1], [0], [0], [1], [0, 0, 1, 1], [], []>} : vector<10x64xf32>, vector<64x128xf32>, vector<10x128xf32> -> vector<10x128xf32>
    %57 = arith.addf %52, %56 : vector<10x128xf32>
    %58 = vector.extract_strided_slice %1 {offsets = [2, 0], sizes = [10, 64], strides = [1, 1]} : vector<16x64xf32> to vector<10x64xf32>
    %c11 = arith.constant 11 : index
    %c0_41 = arith.constant 0 : index
    %c0_42 = arith.constant 0 : index
    %59 = vector.load %arg5[%c11, %c0_41, %c0_42] : memref<16x64x128xf32, #tpu.memory_space<vmem>>, vector<1x64x128xf32>
    %60 = vector.shape_cast %59 : vector<1x64x128xf32> to vector<64x128xf32>
    %cst_43 = arith.constant dense<0.000000e+00> : vector<10x128xf32>
    %61 = tpu.matmul %58, %60, %cst_43 {dimension_numbers = #tpu.dot_dimension_numbers<[1], [0], [0], [1], [0, 0, 1, 1], [], []>} : vector<10x64xf32>, vector<64x128xf32>, vector<10x128xf32> -> vector<10x128xf32>
    %62 = arith.addf %57, %61 : vector<10x128xf32>
    %63 = vector.extract_strided_slice %1 {offsets = [3, 0], sizes = [10, 64], strides = [1, 1]} : vector<16x64xf32> to vector<10x64xf32>
    %c12 = arith.constant 12 : index
    %c0_44 = arith.constant 0 : index
    %c0_45 = arith.constant 0 : index
    %64 = vector.load %arg5[%c12, %c0_44, %c0_45] : memref<16x64x128xf32, #tpu.memory_space<vmem>>, vector<1x64x128xf32>
    %65 = vector.shape_cast %64 : vector<1x64x128xf32> to vector<64x128xf32>
    %cst_46 = arith.constant dense<0.000000e+00> : vector<10x128xf32>
    %66 = tpu.matmul %63, %65, %cst_46 {dimension_numbers = #tpu.dot_dimension_numbers<[1], [0], [0], [1], [0, 0, 1, 1], [], []>} : vector<10x64xf32>, vector<64x128xf32>, vector<10x128xf32> -> vector<10x128xf32>
    %67 = arith.addf %62, %66 : vector<10x128xf32>
    %68 = vector.extract_strided_slice %1 {offsets = [4, 0], sizes = [10, 64], strides = [1, 1]} : vector<16x64xf32> to vector<10x64xf32>
    %c13 = arith.constant 13 : index
    %c0_47 = arith.constant 0 : index
    %c0_48 = arith.constant 0 : index
    %69 = vector.load %arg5[%c13, %c0_47, %c0_48] : memref<16x64x128xf32, #tpu.memory_space<vmem>>, vector<1x64x128xf32>
    %70 = vector.shape_cast %69 : vector<1x64x128xf32> to vector<64x128xf32>
    %cst_49 = arith.constant dense<0.000000e+00> : vector<10x128xf32>
    %71 = tpu.matmul %68, %70, %cst_49 {dimension_numbers = #tpu.dot_dimension_numbers<[1], [0], [0], [1], [0, 0, 1, 1], [], []>} : vector<10x64xf32>, vector<64x128xf32>, vector<10x128xf32> -> vector<10x128xf32>
    %72 = arith.addf %67, %71 : vector<10x128xf32>
    %73 = vector.extract_strided_slice %1 {offsets = [5, 0], sizes = [10, 64], strides = [1, 1]} : vector<16x64xf32> to vector<10x64xf32>
    %c14 = arith.constant 14 : index
    %c0_50 = arith.constant 0 : index
    %c0_51 = arith.constant 0 : index
    %74 = vector.load %arg5[%c14, %c0_50, %c0_51] : memref<16x64x128xf32, #tpu.memory_space<vmem>>, vector<1x64x128xf32>
    %75 = vector.shape_cast %74 : vector<1x64x128xf32> to vector<64x128xf32>
    %cst_52 = arith.constant dense<0.000000e+00> : vector<10x128xf32>
    %76 = tpu.matmul %73, %75, %cst_52 {dimension_numbers = #tpu.dot_dimension_numbers<[1], [0], [0], [1], [0, 0, 1, 1], [], []>} : vector<10x64xf32>, vector<64x128xf32>, vector<10x128xf32> -> vector<10x128xf32>
    %77 = arith.addf %72, %76 : vector<10x128xf32>
    %78 = vector.extract_strided_slice %1 {offsets = [6, 0], sizes = [10, 64], strides = [1, 1]} : vector<16x64xf32> to vector<10x64xf32>
    %c15 = arith.constant 15 : index
    %c0_53 = arith.constant 0 : index
    %c0_54 = arith.constant 0 : index
    %79 = vector.load %arg5[%c15, %c0_53, %c0_54] : memref<16x64x128xf32, #tpu.memory_space<vmem>>, vector<1x64x128xf32>
    %80 = vector.shape_cast %79 : vector<1x64x128xf32> to vector<64x128xf32>
    %cst_55 = arith.constant dense<0.000000e+00> : vector<10x128xf32>
    %81 = tpu.matmul %78, %80, %cst_55 {dimension_numbers = #tpu.dot_dimension_numbers<[1], [0], [0], [1], [0, 0, 1, 1], [], []>} : vector<10x64xf32>, vector<64x128xf32>, vector<10x128xf32> -> vector<10x128xf32>
    %82 = arith.addf %77, %81 : vector<10x128xf32>
    %c0_56 = arith.constant 0 : index
    %c0_57 = arith.constant 0 : index
    %83 = vector.load %arg4[%c0_56, %c0_57] : memref<16x10xf32, #tpu.memory_space<vmem>>, vector<16x10xf32>
    %cst_58 = arith.constant dense<0.000000e+00> : vector<16x128xf32>
    %84 = tpu.matmul %83, %82, %cst_58 {dimension_numbers = #tpu.dot_dimension_numbers<[1], [0], [0], [1], [0, 0, 1, 1], [], []>} : vector<16x10xf32>, vector<10x128xf32>, vector<16x128xf32> -> vector<16x128xf32>
    %85 = arith.addf %48, %84 : vector<16x128xf32>
    %c0_59 = arith.constant 0 : index
    %c0_60 = arith.constant 0 : index
    %86 = vector.load %arg6[%c0_59, %c0_60] : memref<1x128xf32, #tpu.memory_space<vmem>>, vector<1x128xf32>
    %87 = vector.broadcast %86 : vector<1x128xf32> to vector<16x128xf32>
    %88 = arith.addf %85, %87 : vector<16x128xf32>
    %cst_61 = arith.constant 0.000000e+00 : f32
    %89 = vector.broadcast %cst_61 : f32 to vector<16x128xf32>
    %90 = arith.cmpf oge, %88, %89 : vector<16x128xf32>
    %cst_62 = arith.constant 1.000000e-01 : f32
    %91 = vector.broadcast %cst_62 : f32 to vector<16x128xf32>
    %92 = arith.mulf %91, %88 : vector<16x128xf32>
    %93 = arith.select %90, %88, %92 : vector<16x128xi1>, vector<16x128xf32>
    %c0_63 = arith.constant 0 : index
    %c0_64 = arith.constant 0 : index
    %c0_65 = arith.constant 0 : index
    %94 = vector.load %arg7[%c0_63, %c0_64, %c0_65] : memref<16x128x128xf32, #tpu.memory_space<vmem>>, vector<1x128x128xf32>
    %95 = vector.shape_cast %94 : vector<1x128x128xf32> to vector<128x128xf32>
    %cst_66 = arith.constant dense<0.000000e+00> : vector<16x128xf32>
    %96 = tpu.matmul %93, %95, %cst_66 {dimension_numbers = #tpu.dot_dimension_numbers<[1], [0], [0], [1], [0, 0, 1, 1], [], []>} : vector<16x128xf32>, vector<128x128xf32>, vector<16x128xf32> -> vector<16x128xf32>
    %97 = vector.extract_strided_slice %93 {offsets = [0, 0], sizes = [14, 128], strides = [1, 1]} : vector<16x128xf32> to vector<14x128xf32>
    %c1_67 = arith.constant 1 : index
    %c0_68 = arith.constant 0 : index
    %c0_69 = arith.constant 0 : index
    %98 = vector.load %arg7[%c1_67, %c0_68, %c0_69] : memref<16x128x128xf32, #tpu.memory_space<vmem>>, vector<1x128x128xf32>
    %99 = vector.shape_cast %98 : vector<1x128x128xf32> to vector<128x128xf32>
    %cst_70 = arith.constant dense<0.000000e+00> : vector<14x128xf32>
    %100 = tpu.matmul %97, %99, %cst_70 {dimension_numbers = #tpu.dot_dimension_numbers<[1], [0], [0], [1], [0, 0, 1, 1], [], []>} : vector<14x128xf32>, vector<128x128xf32>, vector<14x128xf32> -> vector<14x128xf32>
    %101 = vector.extract_strided_slice %93 {offsets = [1, 0], sizes = [14, 128], strides = [1, 1]} : vector<16x128xf32> to vector<14x128xf32>
    %c2_71 = arith.constant 2 : index
    %c0_72 = arith.constant 0 : index
    %c0_73 = arith.constant 0 : index
    %102 = vector.load %arg7[%c2_71, %c0_72, %c0_73] : memref<16x128x128xf32, #tpu.memory_space<vmem>>, vector<1x128x128xf32>
    %103 = vector.shape_cast %102 : vector<1x128x128xf32> to vector<128x128xf32>
    %cst_74 = arith.constant dense<0.000000e+00> : vector<14x128xf32>
    %104 = tpu.matmul %101, %103, %cst_74 {dimension_numbers = #tpu.dot_dimension_numbers<[1], [0], [0], [1], [0, 0, 1, 1], [], []>} : vector<14x128xf32>, vector<128x128xf32>, vector<14x128xf32> -> vector<14x128xf32>
    %105 = arith.addf %100, %104 : vector<14x128xf32>
    %106 = vector.extract_strided_slice %93 {offsets = [2, 0], sizes = [14, 128], strides = [1, 1]} : vector<16x128xf32> to vector<14x128xf32>
    %c3_75 = arith.constant 3 : index
    %c0_76 = arith.constant 0 : index
    %c0_77 = arith.constant 0 : index
    %107 = vector.load %arg7[%c3_75, %c0_76, %c0_77] : memref<16x128x128xf32, #tpu.memory_space<vmem>>, vector<1x128x128xf32>
    %108 = vector.shape_cast %107 : vector<1x128x128xf32> to vector<128x128xf32>
    %cst_78 = arith.constant dense<0.000000e+00> : vector<14x128xf32>
    %109 = tpu.matmul %106, %108, %cst_78 {dimension_numbers = #tpu.dot_dimension_numbers<[1], [0], [0], [1], [0, 0, 1, 1], [], []>} : vector<14x128xf32>, vector<128x128xf32>, vector<14x128xf32> -> vector<14x128xf32>
    %110 = arith.addf %105, %109 : vector<14x128xf32>
    %c0_79 = arith.constant 0 : index
    %c0_80 = arith.constant 0 : index
    %111 = vector.load %arg2[%c0_79, %c0_80] : memref<16x14xf32, #tpu.memory_space<vmem>>, vector<16x14xf32>
    %cst_81 = arith.constant dense<0.000000e+00> : vector<16x128xf32>
    %112 = tpu.matmul %111, %110, %cst_81 {dimension_numbers = #tpu.dot_dimension_numbers<[1], [0], [0], [1], [0, 0, 1, 1], [], []>} : vector<16x14xf32>, vector<14x128xf32>, vector<16x128xf32> -> vector<16x128xf32>
    %113 = arith.addf %96, %112 : vector<16x128xf32>
    %114 = vector.extract_strided_slice %93 {offsets = [0, 0], sizes = [12, 128], strides = [1, 1]} : vector<16x128xf32> to vector<12x128xf32>
    %c4_82 = arith.constant 4 : index
    %c0_83 = arith.constant 0 : index
    %c0_84 = arith.constant 0 : index
    %115 = vector.load %arg7[%c4_82, %c0_83, %c0_84] : memref<16x128x128xf32, #tpu.memory_space<vmem>>, vector<1x128x128xf32>
    %116 = vector.shape_cast %115 : vector<1x128x128xf32> to vector<128x128xf32>
    %cst_85 = arith.constant dense<0.000000e+00> : vector<12x128xf32>
    %117 = tpu.matmul %114, %116, %cst_85 {dimension_numbers = #tpu.dot_dimension_numbers<[1], [0], [0], [1], [0, 0, 1, 1], [], []>} : vector<12x128xf32>, vector<128x128xf32>, vector<12x128xf32> -> vector<12x128xf32>
    %118 = vector.extract_strided_slice %93 {offsets = [1, 0], sizes = [12, 128], strides = [1, 1]} : vector<16x128xf32> to vector<12x128xf32>
    %c5_86 = arith.constant 5 : index
    %c0_87 = arith.constant 0 : index
    %c0_88 = arith.constant 0 : index
    %119 = vector.load %arg7[%c5_86, %c0_87, %c0_88] : memref<16x128x128xf32, #tpu.memory_space<vmem>>, vector<1x128x128xf32>
    %120 = vector.shape_cast %119 : vector<1x128x128xf32> to vector<128x128xf32>
    %cst_89 = arith.constant dense<0.000000e+00> : vector<12x128xf32>
    %121 = tpu.matmul %118, %120, %cst_89 {dimension_numbers = #tpu.dot_dimension_numbers<[1], [0], [0], [1], [0, 0, 1, 1], [], []>} : vector<12x128xf32>, vector<128x128xf32>, vector<12x128xf32> -> vector<12x128xf32>
    %122 = arith.addf %117, %121 : vector<12x128xf32>
    %123 = vector.extract_strided_slice %93 {offsets = [2, 0], sizes = [12, 128], strides = [1, 1]} : vector<16x128xf32> to vector<12x128xf32>
    %c6_90 = arith.constant 6 : index
    %c0_91 = arith.constant 0 : index
    %c0_92 = arith.constant 0 : index
    %124 = vector.load %arg7[%c6_90, %c0_91, %c0_92] : memref<16x128x128xf32, #tpu.memory_space<vmem>>, vector<1x128x128xf32>
    %125 = vector.shape_cast %124 : vector<1x128x128xf32> to vector<128x128xf32>
    %cst_93 = arith.constant dense<0.000000e+00> : vector<12x128xf32>
    %126 = tpu.matmul %123, %125, %cst_93 {dimension_numbers = #tpu.dot_dimension_numbers<[1], [0], [0], [1], [0, 0, 1, 1], [], []>} : vector<12x128xf32>, vector<128x128xf32>, vector<12x128xf32> -> vector<12x128xf32>
    %127 = arith.addf %122, %126 : vector<12x128xf32>
    %128 = vector.extract_strided_slice %93 {offsets = [3, 0], sizes = [12, 128], strides = [1, 1]} : vector<16x128xf32> to vector<12x128xf32>
    %c7_94 = arith.constant 7 : index
    %c0_95 = arith.constant 0 : index
    %c0_96 = arith.constant 0 : index
    %129 = vector.load %arg7[%c7_94, %c0_95, %c0_96] : memref<16x128x128xf32, #tpu.memory_space<vmem>>, vector<1x128x128xf32>
    %130 = vector.shape_cast %129 : vector<1x128x128xf32> to vector<128x128xf32>
    %cst_97 = arith.constant dense<0.000000e+00> : vector<12x128xf32>
    %131 = tpu.matmul %128, %130, %cst_97 {dimension_numbers = #tpu.dot_dimension_numbers<[1], [0], [0], [1], [0, 0, 1, 1], [], []>} : vector<12x128xf32>, vector<128x128xf32>, vector<12x128xf32> -> vector<12x128xf32>
    %132 = arith.addf %127, %131 : vector<12x128xf32>
    %133 = vector.extract_strided_slice %93 {offsets = [4, 0], sizes = [12, 128], strides = [1, 1]} : vector<16x128xf32> to vector<12x128xf32>
    %c8_98 = arith.constant 8 : index
    %c0_99 = arith.constant 0 : index
    %c0_100 = arith.constant 0 : index
    %134 = vector.load %arg7[%c8_98, %c0_99, %c0_100] : memref<16x128x128xf32, #tpu.memory_space<vmem>>, vector<1x128x128xf32>
    %135 = vector.shape_cast %134 : vector<1x128x128xf32> to vector<128x128xf32>
    %cst_101 = arith.constant dense<0.000000e+00> : vector<12x128xf32>
    %136 = tpu.matmul %133, %135, %cst_101 {dimension_numbers = #tpu.dot_dimension_numbers<[1], [0], [0], [1], [0, 0, 1, 1], [], []>} : vector<12x128xf32>, vector<128x128xf32>, vector<12x128xf32> -> vector<12x128xf32>
    %137 = arith.addf %132, %136 : vector<12x128xf32>
    %c0_102 = arith.constant 0 : index
    %c0_103 = arith.constant 0 : index
    %138 = vector.load %arg3[%c0_102, %c0_103] : memref<16x12xf32, #tpu.memory_space<vmem>>, vector<16x12xf32>
    %cst_104 = arith.constant dense<0.000000e+00> : vector<16x128xf32>
    %139 = tpu.matmul %138, %137, %cst_104 {dimension_numbers = #tpu.dot_dimension_numbers<[1], [0], [0], [1], [0, 0, 1, 1], [], []>} : vector<16x12xf32>, vector<12x128xf32>, vector<16x128xf32> -> vector<16x128xf32>
    %140 = arith.addf %113, %139 : vector<16x128xf32>
    %141 = vector.extract_strided_slice %93 {offsets = [0, 0], sizes = [10, 128], strides = [1, 1]} : vector<16x128xf32> to vector<10x128xf32>
    %c9_105 = arith.constant 9 : index
    %c0_106 = arith.constant 0 : index
    %c0_107 = arith.constant 0 : index
    %142 = vector.load %arg7[%c9_105, %c0_106, %c0_107] : memref<16x128x128xf32, #tpu.memory_space<vmem>>, vector<1x128x128xf32>
    %143 = vector.shape_cast %142 : vector<1x128x128xf32> to vector<128x128xf32>
    %cst_108 = arith.constant dense<0.000000e+00> : vector<10x128xf32>
    %144 = tpu.matmul %141, %143, %cst_108 {dimension_numbers = #tpu.dot_dimension_numbers<[1], [0], [0], [1], [0, 0, 1, 1], [], []>} : vector<10x128xf32>, vector<128x128xf32>, vector<10x128xf32> -> vector<10x128xf32>
    %145 = vector.extract_strided_slice %93 {offsets = [1, 0], sizes = [10, 128], strides = [1, 1]} : vector<16x128xf32> to vector<10x128xf32>
    %c10_109 = arith.constant 10 : index
    %c0_110 = arith.constant 0 : index
    %c0_111 = arith.constant 0 : index
    %146 = vector.load %arg7[%c10_109, %c0_110, %c0_111] : memref<16x128x128xf32, #tpu.memory_space<vmem>>, vector<1x128x128xf32>
    %147 = vector.shape_cast %146 : vector<1x128x128xf32> to vector<128x128xf32>
    %cst_112 = arith.constant dense<0.000000e+00> : vector<10x128xf32>
    %148 = tpu.matmul %145, %147, %cst_112 {dimension_numbers = #tpu.dot_dimension_numbers<[1], [0], [0], [1], [0, 0, 1, 1], [], []>} : vector<10x128xf32>, vector<128x128xf32>, vector<10x128xf32> -> vector<10x128xf32>
    %149 = arith.addf %144, %148 : vector<10x128xf32>
    %150 = vector.extract_strided_slice %93 {offsets = [2, 0], sizes = [10, 128], strides = [1, 1]} : vector<16x128xf32> to vector<10x128xf32>
    %c11_113 = arith.constant 11 : index
    %c0_114 = arith.constant 0 : index
    %c0_115 = arith.constant 0 : index
    %151 = vector.load %arg7[%c11_113, %c0_114, %c0_115] : memref<16x128x128xf32, #tpu.memory_space<vmem>>, vector<1x128x128xf32>
    %152 = vector.shape_cast %151 : vector<1x128x128xf32> to vector<128x128xf32>
    %cst_116 = arith.constant dense<0.000000e+00> : vector<10x128xf32>
    %153 = tpu.matmul %150, %152, %cst_116 {dimension_numbers = #tpu.dot_dimension_numbers<[1], [0], [0], [1], [0, 0, 1, 1], [], []>} : vector<10x128xf32>, vector<128x128xf32>, vector<10x128xf32> -> vector<10x128xf32>
    %154 = arith.addf %149, %153 : vector<10x128xf32>
    %155 = vector.extract_strided_slice %93 {offsets = [3, 0], sizes = [10, 128], strides = [1, 1]} : vector<16x128xf32> to vector<10x128xf32>
    %c12_117 = arith.constant 12 : index
    %c0_118 = arith.constant 0 : index
    %c0_119 = arith.constant 0 : index
    %156 = vector.load %arg7[%c12_117, %c0_118, %c0_119] : memref<16x128x128xf32, #tpu.memory_space<vmem>>, vector<1x128x128xf32>
    %157 = vector.shape_cast %156 : vector<1x128x128xf32> to vector<128x128xf32>
    %cst_120 = arith.constant dense<0.000000e+00> : vector<10x128xf32>
    %158 = tpu.matmul %155, %157, %cst_120 {dimension_numbers = #tpu.dot_dimension_numbers<[1], [0], [0], [1], [0, 0, 1, 1], [], []>} : vector<10x128xf32>, vector<128x128xf32>, vector<10x128xf32> -> vector<10x128xf32>
    %159 = arith.addf %154, %158 : vector<10x128xf32>
    %160 = vector.extract_strided_slice %93 {offsets = [4, 0], sizes = [10, 128], strides = [1, 1]} : vector<16x128xf32> to vector<10x128xf32>
    %c13_121 = arith.constant 13 : index
    %c0_122 = arith.constant 0 : index
    %c0_123 = arith.constant 0 : index
    %161 = vector.load %arg7[%c13_121, %c0_122, %c0_123] : memref<16x128x128xf32, #tpu.memory_space<vmem>>, vector<1x128x128xf32>
    %162 = vector.shape_cast %161 : vector<1x128x128xf32> to vector<128x128xf32>
    %cst_124 = arith.constant dense<0.000000e+00> : vector<10x128xf32>
    %163 = tpu.matmul %160, %162, %cst_124 {dimension_numbers = #tpu.dot_dimension_numbers<[1], [0], [0], [1], [0, 0, 1, 1], [], []>} : vector<10x128xf32>, vector<128x128xf32>, vector<10x128xf32> -> vector<10x128xf32>
    %164 = arith.addf %159, %163 : vector<10x128xf32>
    %165 = vector.extract_strided_slice %93 {offsets = [5, 0], sizes = [10, 128], strides = [1, 1]} : vector<16x128xf32> to vector<10x128xf32>
    %c14_125 = arith.constant 14 : index
    %c0_126 = arith.constant 0 : index
    %c0_127 = arith.constant 0 : index
    %166 = vector.load %arg7[%c14_125, %c0_126, %c0_127] : memref<16x128x128xf32, #tpu.memory_space<vmem>>, vector<1x128x128xf32>
    %167 = vector.shape_cast %166 : vector<1x128x128xf32> to vector<128x128xf32>
    %cst_128 = arith.constant dense<0.000000e+00> : vector<10x128xf32>
    %168 = tpu.matmul %165, %167, %cst_128 {dimension_numbers = #tpu.dot_dimension_numbers<[1], [0], [0], [1], [0, 0, 1, 1], [], []>} : vector<10x128xf32>, vector<128x128xf32>, vector<10x128xf32> -> vector<10x128xf32>
    %169 = arith.addf %164, %168 : vector<10x128xf32>
    %170 = vector.extract_strided_slice %93 {offsets = [6, 0], sizes = [10, 128], strides = [1, 1]} : vector<16x128xf32> to vector<10x128xf32>
    %c15_129 = arith.constant 15 : index
    %c0_130 = arith.constant 0 : index
    %c0_131 = arith.constant 0 : index
    %171 = vector.load %arg7[%c15_129, %c0_130, %c0_131] : memref<16x128x128xf32, #tpu.memory_space<vmem>>, vector<1x128x128xf32>
    %172 = vector.shape_cast %171 : vector<1x128x128xf32> to vector<128x128xf32>
    %cst_132 = arith.constant dense<0.000000e+00> : vector<10x128xf32>
    %173 = tpu.matmul %170, %172, %cst_132 {dimension_numbers = #tpu.dot_dimension_numbers<[1], [0], [0], [1], [0, 0, 1, 1], [], []>} : vector<10x128xf32>, vector<128x128xf32>, vector<10x128xf32> -> vector<10x128xf32>
    %174 = arith.addf %169, %173 : vector<10x128xf32>
    %c0_133 = arith.constant 0 : index
    %c0_134 = arith.constant 0 : index
    %175 = vector.load %arg4[%c0_133, %c0_134] : memref<16x10xf32, #tpu.memory_space<vmem>>, vector<16x10xf32>
    %cst_135 = arith.constant dense<0.000000e+00> : vector<16x128xf32>
    %176 = tpu.matmul %175, %174, %cst_135 {dimension_numbers = #tpu.dot_dimension_numbers<[1], [0], [0], [1], [0, 0, 1, 1], [], []>} : vector<16x10xf32>, vector<10x128xf32>, vector<16x128xf32> -> vector<16x128xf32>
    %177 = arith.addf %140, %176 : vector<16x128xf32>
    %c0_136 = arith.constant 0 : index
    %c0_137 = arith.constant 0 : index
    %178 = vector.load %arg8[%c0_136, %c0_137] : memref<1x128xf32, #tpu.memory_space<vmem>>, vector<1x128xf32>
    %179 = vector.broadcast %178 : vector<1x128xf32> to vector<16x128xf32>
    %180 = arith.addf %177, %179 : vector<16x128xf32>
    %c0_138 = arith.constant 0 : index
    %c0_139 = arith.constant 0 : index
    %181 = vector.load %arg9[%c0_138, %c0_139] : memref<64x128xf32, #tpu.memory_space<vmem>>, vector<64x128xf32>
    %cst_140 = arith.constant dense<0.000000e+00> : vector<16x128xf32>
    %182 = tpu.matmul %1, %181, %cst_140 {dimension_numbers = #tpu.dot_dimension_numbers<[1], [0], [0], [1], [0, 0, 1, 1], [], []>} : vector<16x64xf32>, vector<64x128xf32>, vector<16x128xf32> -> vector<16x128xf32>
    %c0_141 = arith.constant 0 : index
    %c0_142 = arith.constant 0 : index
    %183 = vector.load %arg10[%c0_141, %c0_142] : memref<1x128xf32, #tpu.memory_space<vmem>>, vector<1x128xf32>
    %184 = vector.broadcast %183 : vector<1x128xf32> to vector<16x128xf32>
    %185 = arith.addf %182, %184 : vector<16x128xf32>
    %186 = arith.addf %180, %185 : vector<16x128xf32>
    %cst_143 = arith.constant 0.000000e+00 : f32
    %187 = vector.broadcast %cst_143 : f32 to vector<16x128xf32>
    %188 = arith.cmpf oge, %186, %187 : vector<16x128xf32>
    %cst_144 = arith.constant 1.000000e-01 : f32
    %189 = vector.broadcast %cst_144 : f32 to vector<16x128xf32>
    %190 = arith.mulf %189, %186 : vector<16x128xf32>
    %191 = arith.select %188, %186, %190 : vector<16x128xi1>, vector<16x128xf32>
    %c0_145 = arith.constant 0 : index
    %c0_146 = arith.constant 0 : index
    %c0_147 = arith.constant 0 : index
    %192 = vector.load %arg11[%c0_145, %c0_146, %c0_147] : memref<1x16x128xf32, #tpu.memory_space<vmem>>, vector<1x16x128xf32>
    %193 = vector.shape_cast %192 : vector<1x16x128xf32> to vector<16x128xf32>
    %194 = vector.shape_cast %191 : vector<16x128xf32> to vector<1x16x128xf32>
    tpu.vector_store %arg11[%c0_145, %c0_146, %c0_147], %194 {strides = array<i32>} : memref<1x16x128xf32, #tpu.memory_space<vmem>>, vector<1x16x128xf32>,
    %cst_148 = arith.constant dense<0.000000e+00> : vector<128xf32>
    %195 = vector.multi_reduction <add>, %191, %cst_148 [0] : vector<16x128xf32> to vector<128xf32>
    %196 = vector.shape_cast %195 : vector<128xf32> to vector<1x128xf32>
    %c0_149 = arith.constant 0 : index
    %c0_150 = arith.constant 0 : index
    %c0_151 = arith.constant 0 : index
    %197 = vector.load %arg12[%c0_149, %c0_150, %c0_151] : memref<1x1x128xf32, #tpu.memory_space<vmem>>, vector<1x1x128xf32>
    %198 = vector.shape_cast %197 : vector<1x1x128xf32> to vector<1x128xf32>
    %199 = vector.shape_cast %196 : vector<1x128xf32> to vector<1x1x128xf32>
    tpu.vector_store %arg12[%c0_149, %c0_150, %c0_151], %199 {strides = array<i32>} : memref<1x1x128xf32, #tpu.memory_space<vmem>>, vector<1x1x128xf32>,
    %200 = arith.mulf %191, %191 : vector<16x128xf32>
    %cst_152 = arith.constant dense<0.000000e+00> : vector<128xf32>
    %201 = vector.multi_reduction <add>, %200, %cst_152 [0] : vector<16x128xf32> to vector<128xf32>
    %202 = vector.shape_cast %201 : vector<128xf32> to vector<1x128xf32>
    %c0_153 = arith.constant 0 : index
    %c0_154 = arith.constant 0 : index
    %c0_155 = arith.constant 0 : index
    %203 = vector.load %arg13[%c0_153, %c0_154, %c0_155] : memref<1x1x128xf32, #tpu.memory_space<vmem>>, vector<1x1x128xf32>
    %204 = vector.shape_cast %203 : vector<1x1x128xf32> to vector<1x128xf32>
    %205 = vector.shape_cast %202 : vector<1x128xf32> to vector<1x1x128xf32>
    tpu.vector_store %arg13[%c0_153, %c0_154, %c0_155], %205 {strides = array<i32>} : memref<1x1x128xf32, #tpu.memory_space<vmem>>, vector<1x1x128xf32>,
    return
  }
  func.func @transform_0(%arg0: i32) -> (i32, i32, i32) {
    %c0_i32 = arith.constant 0 : i32
    %c0_i32_0 = arith.constant 0 : i32
    %c0_i32_1 = arith.constant 0 : i32
    return %arg0, %c0_i32, %c0_i32_0 : i32, i32, i32
  }
  func.func @transform_1(%arg0: i32) -> (i32, i32) {
    %c0_i32 = arith.constant 0 : i32
    %c0_i32_0 = arith.constant 0 : i32
    %c0_i32_1 = arith.constant 0 : i32
    return %c0_i32, %c0_i32_0 : i32, i32
  }
  func.func @transform_2(%arg0: i32) -> (i32, i32) {
    %c0_i32 = arith.constant 0 : i32
    %c0_i32_0 = arith.constant 0 : i32
    %c0_i32_1 = arith.constant 0 : i32
    return %c0_i32, %c0_i32_0 : i32, i32
  }
  func.func @transform_3(%arg0: i32) -> (i32, i32) {
    %c0_i32 = arith.constant 0 : i32
    %c0_i32_0 = arith.constant 0 : i32
    %c0_i32_1 = arith.constant 0 : i32
    return %c0_i32, %c0_i32_0 : i32, i32
  }
  func.func @transform_4(%arg0: i32) -> (i32, i32, i32) {
    %c0_i32 = arith.constant 0 : i32
    %c0_i32_0 = arith.constant 0 : i32
    %c0_i32_1 = arith.constant 0 : i32
    %c0_i32_2 = arith.constant 0 : i32
    return %c0_i32, %c0_i32_0, %c0_i32_1 : i32, i32, i32
  }
  func.func @transform_5(%arg0: i32) -> (i32, i32) {
    %c0_i32 = arith.constant 0 : i32
    %c0_i32_0 = arith.constant 0 : i32
    %c0_i32_1 = arith.constant 0 : i32
    return %c0_i32, %c0_i32_0 : i32, i32
  }
  func.func @transform_6(%arg0: i32) -> (i32, i32, i32) {
    %c0_i32 = arith.constant 0 : i32
    %c0_i32_0 = arith.constant 0 : i32
    %c0_i32_1 = arith.constant 0 : i32
    %c0_i32_2 = arith.constant 0 : i32
    return %c0_i32, %c0_i32_0, %c0_i32_1 : i32, i32, i32
  }
  func.func @transform_7(%arg0: i32) -> (i32, i32) {
    %c0_i32 = arith.constant 0 : i32
    %c0_i32_0 = arith.constant 0 : i32
    %c0_i32_1 = arith.constant 0 : i32
    return %c0_i32, %c0_i32_0 : i32, i32
  }
  func.func @transform_8(%arg0: i32) -> (i32, i32) {
    %c0_i32 = arith.constant 0 : i32
    %c0_i32_0 = arith.constant 0 : i32
    %c0_i32_1 = arith.constant 0 : i32
    return %c0_i32, %c0_i32_0 : i32, i32
  }
  func.func @transform_9(%arg0: i32) -> (i32, i32) {
    %c0_i32 = arith.constant 0 : i32
    %c0_i32_0 = arith.constant 0 : i32
    %c0_i32_1 = arith.constant 0 : i32
    return %c0_i32, %c0_i32_0 : i32, i32
  }
  func.func @transform_10(%arg0: i32) -> (i32, i32, i32) {
    %c0_i32 = arith.constant 0 : i32
    %c0_i32_0 = arith.constant 0 : i32
    %c0_i32_1 = arith.constant 0 : i32
    return %arg0, %c0_i32, %c0_i32_0 : i32, i32, i32
  }
  func.func @transform_11(%arg0: i32) -> (i32, i32, i32) {
    %c0_i32 = arith.constant 0 : i32
    %c0_i32_0 = arith.constant 0 : i32
    %c0_i32_1 = arith.constant 0 : i32
    return %arg0, %c0_i32, %c0_i32_0 : i32, i32, i32
  }
  func.func @transform_12(%arg0: i32) -> (i32, i32, i32) {
    %c0_i32 = arith.constant 0 : i32
    %c0_i32_0 = arith.constant 0 : i32
    %c0_i32_1 = arith.constant 0 : i32
    return %arg0, %c0_i32, %c0_i32_0 : i32, i32, i32
  }
}

module attributes {stable_mosaic.version = 11 : i64} {
  func.func @kernel(%arg0: i32, %arg1: memref<1x16x128xf32, #tpu.memory_space<vmem>>, %arg2: memref<2x1x128xf32, #tpu.memory_space<vmem>>, %arg3: memref<2x1x128xf32, #tpu.memory_space<vmem>>, %arg4: memref<1x8xf32, #tpu.memory_space<vmem>>, %arg5: memref<1x8xf32, #tpu.memory_space<vmem>>, %arg6: memref<128x8xf32, #tpu.memory_space<vmem>>, %arg7: memref<8x128xf32, #tpu.memory_space<vmem>>, %arg8: memref<1x16x128xf32, #tpu.memory_space<vmem>>) attributes {dimension_semantics = [#tpu.dimension_semantics<parallel>], iteration_bounds = array<i64: 2>, scalar_prefetch = 0 : i64, scratch_operands = 0 : i64, tpu.core_type = #tpu.core_type<tc>, window_params = [{transform_indices = @transform_0, window_bounds = array<i64: 1, 16, 128>}, {pipeline_mode = #tpu.pipeline_mode<synchronous>, transform_indices = @transform_1, window_bounds = array<i64: 2, 1, 128>}, {pipeline_mode = #tpu.pipeline_mode<synchronous>, transform_indices = @transform_2, window_bounds = array<i64: 2, 1, 128>}, {pipeline_mode = #tpu.pipeline_mode<synchronous>, transform_indices = @transform_3, window_bounds = array<i64: 1, 8>}, {pipeline_mode = #tpu.pipeline_mode<synchronous>, transform_indices = @transform_4, window_bounds = array<i64: 1, 8>}, {pipeline_mode = #tpu.pipeline_mode<synchronous>, transform_indices = @transform_5, window_bounds = array<i64: 128, 8>}, {pipeline_mode = #tpu.pipeline_mode<synchronous>, transform_indices = @transform_6, window_bounds = array<i64: 8, 128>}, {transform_indices = @transform_7, window_bounds = array<i64: 1, 16, 128>}]} {
    %c0 = arith.constant 0 : index
    %c0_0 = arith.constant 0 : index
    %c0_1 = arith.constant 0 : index
    %0 = vector.load %arg2[%c0, %c0_0, %c0_1] : memref<2x1x128xf32, #tpu.memory_space<vmem>>, vector<2x1x128xf32>
    %cst = arith.constant dense<0.000000e+00> : vector<1x128xf32>
    %1 = vector.multi_reduction <add>, %0, %cst [0] : vector<2x1x128xf32> to vector<1x128xf32>
    %c0_2 = arith.constant 0 : index
    %c0_3 = arith.constant 0 : index
    %c0_4 = arith.constant 0 : index
    %2 = vector.load %arg3[%c0_2, %c0_3, %c0_4] : memref<2x1x128xf32, #tpu.memory_space<vmem>>, vector<2x1x128xf32>
    %cst_5 = arith.constant dense<0.000000e+00> : vector<1x128xf32>
    %3 = vector.multi_reduction <add>, %2, %cst_5 [0] : vector<2x1x128xf32> to vector<1x128xf32>
    %c0_6 = arith.constant 0 : index
    %c0_7 = arith.constant 0 : index
    %4 = vector.load %arg6[%c0_6, %c0_7] : memref<128x8xf32, #tpu.memory_space<vmem>>, vector<128x8xf32>
    %cst_8 = arith.constant dense<0.000000e+00> : vector<1x8xf32>
    %5 = tpu.matmul %1, %4, %cst_8 {dimension_numbers = #tpu.dot_dimension_numbers<[1], [0], [0], [1], [0, 0, 1, 1], [], []>} : vector<1x128xf32>, vector<128x8xf32>, vector<1x8xf32> -> vector<1x8xf32>
    %c0_9 = arith.constant 0 : index
    %c0_10 = arith.constant 0 : index
    %6 = vector.load %arg6[%c0_9, %c0_10] : memref<128x8xf32, #tpu.memory_space<vmem>>, vector<128x8xf32>
    %cst_11 = arith.constant dense<0.000000e+00> : vector<1x8xf32>
    %7 = tpu.matmul %3, %6, %cst_11 {dimension_numbers = #tpu.dot_dimension_numbers<[1], [0], [0], [1], [0, 0, 1, 1], [], []>} : vector<1x128xf32>, vector<128x8xf32>, vector<1x8xf32> -> vector<1x8xf32>
    %cst_12 = arith.constant 0.001953125 : f32
    %8 = vector.broadcast %cst_12 : f32 to vector<1x8xf32>
    %9 = arith.mulf %5, %8 : vector<1x8xf32>
    %cst_13 = arith.constant 0.001953125 : f32
    %10 = vector.broadcast %cst_13 : f32 to vector<1x8xf32>
    %11 = arith.mulf %7, %10 : vector<1x8xf32>
    %12 = arith.mulf %9, %9 : vector<1x8xf32>
    %13 = arith.subf %11, %12 : vector<1x8xf32>
    %cst_14 = arith.constant 9.99999974E-6 : f32
    %14 = vector.broadcast %cst_14 : f32 to vector<1x8xf32>
    %15 = arith.addf %13, %14 : vector<1x8xf32>
    %16 = math.rsqrt %15 : vector<1x8xf32>
    %c0_15 = arith.constant 0 : index
    %c0_16 = arith.constant 0 : index
    %17 = vector.load %arg4[%c0_15, %c0_16] : memref<1x8xf32, #tpu.memory_space<vmem>>, vector<1x8xf32>
    %18 = arith.mulf %17, %16 : vector<1x8xf32>
    %c0_17 = arith.constant 0 : index
    %c0_18 = arith.constant 0 : index
    %19 = vector.load %arg5[%c0_17, %c0_18] : memref<1x8xf32, #tpu.memory_space<vmem>>, vector<1x8xf32>
    %20 = arith.mulf %9, %18 : vector<1x8xf32>
    %21 = arith.subf %19, %20 : vector<1x8xf32>
    %c0_19 = arith.constant 0 : index
    %c0_20 = arith.constant 0 : index
    %22 = vector.load %arg7[%c0_19, %c0_20] : memref<8x128xf32, #tpu.memory_space<vmem>>, vector<8x128xf32>
    %cst_21 = arith.constant dense<0.000000e+00> : vector<1x128xf32>
    %23 = tpu.matmul %18, %22, %cst_21 {dimension_numbers = #tpu.dot_dimension_numbers<[1], [0], [0], [1], [0, 0, 1, 1], [], []>} : vector<1x8xf32>, vector<8x128xf32>, vector<1x128xf32> -> vector<1x128xf32>
    %c0_22 = arith.constant 0 : index
    %c0_23 = arith.constant 0 : index
    %24 = vector.load %arg7[%c0_22, %c0_23] : memref<8x128xf32, #tpu.memory_space<vmem>>, vector<8x128xf32>
    %cst_24 = arith.constant dense<0.000000e+00> : vector<1x128xf32>
    %25 = tpu.matmul %21, %24, %cst_24 {dimension_numbers = #tpu.dot_dimension_numbers<[1], [0], [0], [1], [0, 0, 1, 1], [], []>} : vector<1x8xf32>, vector<8x128xf32>, vector<1x128xf32> -> vector<1x128xf32>
    %c0_25 = arith.constant 0 : index
    %c0_26 = arith.constant 0 : index
    %c0_27 = arith.constant 0 : index
    %26 = vector.load %arg1[%c0_25, %c0_26, %c0_27] : memref<1x16x128xf32, #tpu.memory_space<vmem>>, vector<1x16x128xf32>
    %27 = vector.shape_cast %26 : vector<1x16x128xf32> to vector<16x128xf32>
    %28 = vector.broadcast %23 : vector<1x128xf32> to vector<16x128xf32>
    %29 = arith.mulf %27, %28 : vector<16x128xf32>
    %30 = vector.broadcast %25 : vector<1x128xf32> to vector<16x128xf32>
    %31 = arith.addf %29, %30 : vector<16x128xf32>
    %c0_28 = arith.constant 0 : index
    %c0_29 = arith.constant 0 : index
    %c0_30 = arith.constant 0 : index
    %32 = vector.load %arg8[%c0_28, %c0_29, %c0_30] : memref<1x16x128xf32, #tpu.memory_space<vmem>>, vector<1x16x128xf32>
    %33 = vector.shape_cast %32 : vector<1x16x128xf32> to vector<16x128xf32>
    %34 = vector.shape_cast %31 : vector<16x128xf32> to vector<1x16x128xf32>
    tpu.vector_store %arg8[%c0_28, %c0_29, %c0_30], %34 {strides = array<i32>} : memref<1x16x128xf32, #tpu.memory_space<vmem>>, vector<1x16x128xf32>,
    return
  }
  func.func @transform_0(%arg0: i32) -> (i32, i32, i32) {
    %c0_i32 = arith.constant 0 : i32
    %c0_i32_0 = arith.constant 0 : i32
    %c0_i32_1 = arith.constant 0 : i32
    return %arg0, %c0_i32, %c0_i32_0 : i32, i32, i32
  }
  func.func @transform_1(%arg0: i32) -> (i32, i32, i32) {
    %c0_i32 = arith.constant 0 : i32
    %c0_i32_0 = arith.constant 0 : i32
    %c0_i32_1 = arith.constant 0 : i32
    %c0_i32_2 = arith.constant 0 : i32
    return %c0_i32, %c0_i32_0, %c0_i32_1 : i32, i32, i32
  }
  func.func @transform_2(%arg0: i32) -> (i32, i32, i32) {
    %c0_i32 = arith.constant 0 : i32
    %c0_i32_0 = arith.constant 0 : i32
    %c0_i32_1 = arith.constant 0 : i32
    %c0_i32_2 = arith.constant 0 : i32
    return %c0_i32, %c0_i32_0, %c0_i32_1 : i32, i32, i32
  }
  func.func @transform_3(%arg0: i32) -> (i32, i32) {
    %c0_i32 = arith.constant 0 : i32
    %c0_i32_0 = arith.constant 0 : i32
    %c0_i32_1 = arith.constant 0 : i32
    return %c0_i32, %c0_i32_0 : i32, i32
  }
  func.func @transform_4(%arg0: i32) -> (i32, i32) {
    %c0_i32 = arith.constant 0 : i32
    %c0_i32_0 = arith.constant 0 : i32
    %c0_i32_1 = arith.constant 0 : i32
    return %c0_i32, %c0_i32_0 : i32, i32
  }
  func.func @transform_5(%arg0: i32) -> (i32, i32) {
    %c0_i32 = arith.constant 0 : i32
    %c0_i32_0 = arith.constant 0 : i32
    %c0_i32_1 = arith.constant 0 : i32
    return %c0_i32, %c0_i32_0 : i32, i32
  }
  func.func @transform_6(%arg0: i32) -> (i32, i32) {
    %c0_i32 = arith.constant 0 : i32
    %c0_i32_0 = arith.constant 0 : i32
    %c0_i32_1 = arith.constant 0 : i32
    return %c0_i32, %c0_i32_0 : i32, i32
  }
  func.func @transform_7(%arg0: i32) -> (i32, i32, i32) {
    %c0_i32 = arith.constant 0 : i32
    %c0_i32_0 = arith.constant 0 : i32
    %c0_i32_1 = arith.constant 0 : i32
    return %arg0, %c0_i32, %c0_i32_0 : i32, i32, i32
  }
}

</mosaic_0001>

<bundles_post_ra>
// kernel: res_resoblock_forward.3
= control target key start
LH: loop header
LB: loop body
LE: loop exit
PB: predicated region body
PF: predicated region fallthrough
CT: control target
= control target key end

     0   :  { %s921_s24 = smov 0   ;;  %s1037_s0 = inlined_call_operand.vmem [shape: f32[2,16,128], index: 0, kind: input, shape index: {}, may-alias: {0,7}]   ;;  %s1038_s1 = inlined_call_operand.vmem [shape: f32[2,1,128], index: 1, kind: input, shape index: {}]   ;;  %s1039_s2 = inlined_call_operand.vmem [shape: f32[2,1,128], index: 2, kind: input, shape index: {}]   ;;  %s1040_s3 = inlined_call_operand.vmem [shape: f32[1,8], index: 3, kind: input, shape index: {}]   ;;  %s1041_s4 = inlined_call_operand.vmem [shape: f32[1,8], index: 4, kind: input, shape index: {}]   ;;  %s1042_s5 = inlined_call_operand.vmem [shape: f32[128,8], index: 5, kind: input, shape index: {}]   ;;  %s1043_s6 = inlined_call_operand.vmem [shape: f32[8,128], index: 6, kind: input, shape index: {}]   ;;  %s1044_s7 = inlined_call_operand.vmem [shape: f32[2,16,128], index: 7, kind: output, shape index: {}, may-alias: {0,7}]  }
   0x1 LB: > { %s676_s25 = sadd.s32 4294967295, %s876_s24   ;;  %p680_p0 = scmp.ge.s32.totalorder %s876_s24, 1  ;;  %s876_s24 = sphi %s921_s24, %s17_s24  }
   0x2   : > { %p237_p1 = scmp.lt.s32.totalorder %s876_s24, 3 }
   0x4   : > { %p238_p2 = pnand %p680_p0, %p237_p1 }
   0x5   : > { %v290_v0 = vld [vmem:[%s1042_s5] sm:$0xff] (!%p238_p2)  ;;  %v291_v1 = vld [vmem:[%s1042_s5 + $0x8] sm:$0xff] (!%p238_p2)  ;;  %v292_v2 = vld [vmem:[%s1042_s5 + $0x10] sm:$0xff] (!%p238_p2)  ;;  %v878_v3 = vmov (!%p238_p2), 0.0|0.0   ;;  %vm879_vm0 = vmmov (!%p238_p2), 0   ;;  %v880_v6 = vmov (!%p238_p2), 0.0   ;;  %v607_v52 = vlaneseq (!%p238_p2) }
   0x6   : > { %241 = sbr.rel (%p238_p2) target bundleno = 493 (0x1ed), region = 48  ;;  %809 = vmatprep.subr.bf16.mxu0 (!%p238_p2), %v878_v3  ;;  %v810_v4 = vpack.c.bf16 (!%p238_p2), %v291_v1, %v290_v0  ;;  %833 = vmatprep.subr.bf16.mxu1 (!%p238_p2), %v878_v3  ;;  %v293_v5 = vld [vmem:[%s1042_s5 + $0x18] sm:$0xff] (!%p238_p2)  ;;  %v294_v8 = vld [vmem:[%s1042_s5 + $0x20] sm:$0xff] (!%p238_p2)  ;;  %v295_v9 = vld [vmem:[%s1042_s5 + $0x28] sm:$0xff] (!%p238_p2)  ;;  %vm281_vm1 = vcmask (!%p238_p2), 1040384   ;;  %vm458_vm2 = vcmask (!%p238_p2), 64512  }
   0x7   : > { %761 = vmatprep.mubr.msk.f32.mxu0 (!%p238_p2), %vm879_vm0, %v880_v6  ;;  %796 = vmatprep.mubr.msk.f32.mxu1 (!%p238_p2), %vm879_vm0, %v880_v6  ;;  %v813_v7 = vpack.c.bf16 (!%p238_p2), %v293_v5, %v292_v2  ;;  %v816_v10 = vpack.c.bf16 (!%p238_p2), %v295_v9, %v294_v8  ;;  %v296_v11 = vld [vmem:[%s1042_s5 + $0x30] sm:$0xff] (!%p238_p2)  ;;  %v297_v12 = vld [vmem:[%s1042_s5 + $0x38] sm:$0xff] (!%p238_p2)  ;;  %v298_v14 = vld [vmem:[%s1042_s5 + $0x40] sm:$0xff] (!%p238_p2)  ;;  %p269_p3 = scmp.lt.s32.totalorder (!%p238_p2), %s676_s25, 1  ;;  %v608_v53 = vshrl.u32 (!%p238_p2), %v607_v52, 7 }
   0x8   : > { %811 = vmatpush3.bf16.msra.mxu0 (!%p238_p2), %v810_v4  ;;  %835 = vmatpush3.bf16.msra.mxu1 (!%p238_p2), %v810_v4  ;;  %v819_v13 = vpack.c.bf16 (!%p238_p2), %v297_v12, %v296_v11  ;;  %v299_v15 = vld [vmem:[%s1042_s5 + $0x48] sm:$0xff] (!%p238_p2)  ;;  %v300_v17 = vld [vmem:[%s1042_s5 + $0x50] sm:$0xff] (!%p238_p2)  ;;  %v301_v18 = vld [vmem:[%s1042_s5 + $0x58] sm:$0xff] (!%p238_p2) }
   0x9   : > { %812 = vmatprep.subr.bf16.mxu0 (!%p238_p2), %v878_v3  ;;  %836 = vmatprep.subr.bf16.mxu1 (!%p238_p2), %v878_v3  ;;  %v822_v16 = vpack.c.bf16 (!%p238_p2), %v299_v15, %v298_v14  ;;  %v825_v19 = vpack.c.bf16 (!%p238_p2), %v301_v18, %v300_v17  ;;  %v302_v20 = vld [vmem:[%s1042_s5 + $0x60] sm:$0xff] (!%p238_p2)  ;;  %v303_v21 = vld [vmem:[%s1042_s5 + $0x68] sm:$0xff] (!%p238_p2)  ;;  %v304_v23 = vld [vmem:[%s1042_s5 + $0x70] sm:$0xff] (!%p238_p2)  ;;  %v609_v54 = vsub.s32 (!%p238_p2), 0, %v608_v53 }
   0xa   : > { %v828_v22 = vpack.c.bf16 (!%p238_p2), %v303_v21, %v302_v20  ;;  %v305_v24 = vld [vmem:[%s1042_s5 + $0x78] sm:$0xff] (!%p238_p2)  ;;  %v279_v25 = vld [vmem:[%s1038_s1] sm:$0x1] (!%p238_p2)  ;;  %v280_v26 = vld [vmem:[%s1038_s1 + $0x1] sm:$0x1] (!%p238_p2) }
   0xb   : > { %v285_v27 = vld [vmem:[%s1039_s2] sm:$0x1] (!%p238_p2)  ;;  %v286_v28 = vld [vmem:[%s1039_s2 + $0x1] sm:$0x1] (!%p238_p2)  ;;  %v831_v29 = vpack.c.bf16 (!%p238_p2), %v305_v24, %v304_v23  ;;  %v282_v30 = vsel (!%p238_p2), %vm281_vm1, %v279_v25, 0.0  ;;  %v283_v31 = vsel (!%p238_p2), %vm281_vm1, %v280_v26, 0.0 }
   0xc   : > { %814 = vmatpush3.bf16.msra.mxu0 (!%p238_p2), %v813_v7  ;;  %838 = vmatpush3.bf16.msra.mxu1 (!%p238_p2), %v813_v7  ;;  %v287_v32 = vsel (!%p238_p2), %vm281_vm1, %v285_v27, 0.0  ;;  %v288_v33 = vsel (!%p238_p2), %vm281_vm1, %v286_v28, 0.0  ;;  %v284_v34 = vadd.f32 (!%p238_p2), %v283_v31, %v282_v30  ;;  %v457_v36 = vld [vmem:[%s1043_s6] sm:$0xff] (!%p238_p2) }
   0xd   : > { %815 = vmatprep.subr.bf16.mxu0 %v878_v3  ;;  %839 = vmatprep.subr.bf16.mxu1 %v878_v3  ;;  %v289_v35 = vadd.f32 %v288_v33, %v287_v32  ;;  %v452_v46 = vld [vmem:[%s1040_s3] sm:$0x1]  ;;  %s1046_s25 = smov (!%p269_p3, %s676_s25), 1 }
   0xe   : > { %v454_v49 = vld [vmem:[%s1041_s4] sm:$0x1]  ;;  %s689_s30 = sshll.u32 %s1046_s25, 4 }
   0xf   : > { %s273_s10 = scalar_lea.vmem %s1037_s0, %s689_s30  ;;  %s278_s13 = scalar_lea.vmem %s1044_s7, %s689_s30 }
  0x10   : > { %817 = vmatpush3.bf16.msra.mxu0 %v816_v10  ;;  %841 = vmatpush3.bf16.msra.mxu1 %v816_v10  ;;  %v605_v58 = vld [vmem:[%s273_s10] sm:$0xff]  ;;  %v606_v59 = vld [vmem:[%s273_s10 + $0x8] sm:$0xff] }
  0x11   : > { %818 = vmatprep.subr.bf16.mxu0 %v878_v3  ;;  %842 = vmatprep.subr.bf16.mxu1 %v878_v3 }
  0x14   : > { %820 = vmatpush3.bf16.msra.mxu0 %v819_v13  ;;  %844 = vmatpush3.bf16.msra.mxu1 %v819_v13 }
  0x15   : > { %821 = vmatprep.subr.bf16.mxu0 %v878_v3  ;;  %845 = vmatprep.subr.bf16.mxu1 %v878_v3 }
  0x18   : > { %823 = vmatpush3.bf16.msra.mxu0 %v822_v16  ;;  %847 = vmatpush3.bf16.msra.mxu1 %v822_v16 }
  0x19   : > { %824 = vmatprep.subr.bf16.mxu0 %v878_v3  ;;  %848 = vmatprep.subr.bf16.mxu1 %v878_v3 }
  0x1c   : > { %826 = vmatpush3.bf16.msra.mxu0 %v825_v19  ;;  %850 = vmatpush3.bf16.msra.mxu1 %v825_v19 }
  0x1d   : > { %827 = vmatprep.subr.bf16.mxu0 %v878_v3  ;;  %851 = vmatprep.subr.bf16.mxu1 %v878_v3 }
  0x20   : > { %829 = vmatpush3.bf16.msra.mxu0 %v828_v22  ;;  %853 = vmatpush3.bf16.msra.mxu1 %v828_v22 }
  0x21   : > { %830 = vmatprep.subr.bf16.mxu0 %v878_v3  ;;  %854 = vmatprep.subr.bf16.mxu1 %v878_v3 }
  0x24   : > { %832 = vmatpush3.bf16.msra.mxu0 %v831_v29  ;;  %856 = vmatpush3.bf16.msra.mxu1 %v831_v29 }
  0x25   : > { %799 = vmatprep.subr.mxu0 %v880_v6  ;;  %804 = vmatprep.subr.mxu1 %v880_v6 }
  0x27   : > { %762 = vmatmul.mubr.f32.vlgmr.msra.gmra.mrb[0].mxu0 %v284_v34  ;;  %797 = vmatmul.mubr.f32.vlgmr.msra.gmra.mrb[0].mxu1 %v289_v35 }
  0x28   : > { %801 = vmatprep.mubr.msk.f32.mxu0 %vm879_vm0, %v880_v6  ;;  %806 = vmatprep.mubr.msk.f32.mxu1 %vm879_vm0, %v880_v6 }
  0x29   : > { %800 = vmatpush3.msra.mxu0 %v457_v36  ;;  %805 = vmatpush3.msra.mxu1 %v457_v36 }
  0xfa   : > { %v372_v37 = vpop.f32.mrb[0].mxu0  ;;  %v442_v38 = vpop.f32.mrb[0].mxu1 }
  0xfb   : > { %v446_v39 = vmul.f32 0.001953125, %v372_v37  ;;  %v763_v40 = vpop.f32.mrb[1].mxu0  ;;  %v447_v41 = vmul.f32 0.001953125, %v442_v38  ;;  %v798_v42 = vpop.f32.mrb[1].mxu1 }
  0xfd   : > { %v448_v43 = vmul.f32 %v446_v39, %v446_v39 }
  0xff   : > { %v449_v44 = vsub.f32 %v447_v41, %v448_v43 }
 0x101   : > { %v450_v45 = vadd.f32 1e-05, %v449_v44 }
 0x103   : > { %868 = vrsqrt.f32 %v450_v45 }
 0x10d   : > { %v869_v47 = vpop.eup %868 }
 0x10e   : > { %v453_v48 = vmul.f32 %v869_v47, %v452_v46 }
 0x110   : > { %802 = vmatmul.mubr.msk.f32.vlgmr.msra.gmra.mrb[2].mxu0 %vm458_vm2, %v453_v48  ;;  %v455_v50 = vmul.f32 %v453_v48, %v446_v39 }
 0x112   : > { %v456_v51 = vsub.f32 %v454_v49, %v455_v50 }
 0x114   : > { %807 = vmatmul.mubr.msk.f32.vlgmr.msra.gmra.mrb[2].mxu1 %vm458_vm2, %v456_v51 }
 0x1e3   : > { %v528_v55 = vpop.f32.mrb[2].mxu0 }
 0x1e4   : > { %v610_v56 = vrot.slane %v528_v55, %v609_v54  ;;  %v803_v57 = vpop.f32.mrb[3].mxu0 }
 0x1e6   : > { %v611_v61 = vmul.f32 %v610_v56, %v605_v58  ;;  %v612_v62 = vmul.f32 %v610_v56, %v606_v59 }
 0x1e7   : > { %v601_v60 = vpop.f32.mrb[2].mxu1 }
 0x1e8   : > { %v616_v63 = vrot.slane %v601_v60, %v609_v54  ;;  %v808_v0 = vpop.f32.mrb[3].mxu1 }
 0x1ea   : > { %v617_v1 = vadd.f32 %v616_v63, %v611_v61  ;;  %v618_v2 = vadd.f32 %v616_v63, %v612_v62 }
 0x1ec   : > { %619 = vst [vmem:[%s278_s13] sm:$0xff] %v617_v1  ;;  %620 = vst [vmem:[%s278_s13 + $0x8] sm:$0xff] %v618_v2 }
 0x1ed PF: > { %s17_s24 = sadd.s32 1, %s876_s24  }
 0x1ee   : > { %p14_p4 = scmp.ge.s32.totalorder %s17_s24, 4  }
 0x1f0   :  { %16 = sbr.rel (!%p14_p4) target bundleno = 1 (0x1), region = 78 }

// kernel: res_resoblock_forward.2
= control target key start
LH: loop header
LB: loop body
LE: loop exit
PB: predicated region body
PF: predicated region fallthrough
CT: control target
= control target key end

     0   :  { %18 = vsyncpa [#allocation3], 0  ;;  %s7130_s0 = inlined_call_operand.vmem [shape: f32[2,16,64], index: 0, kind: input, shape index: {}]   ;;  %s7131_s1 = inlined_call_operand.vmem [shape: f32[16,14], index: 1, kind: input, shape index: {}]   ;;  %s7132_s2 = inlined_call_operand.vmem [shape: f32[16,12], index: 2, kind: input, shape index: {}]   ;;  %s7133_s3 = inlined_call_operand.vmem [shape: f32[16,10], index: 3, kind: input, shape index: {}]   ;;  %s7134_s4 = inlined_call_operand.hbm [shape: f32[16,64,128], index: 4, kind: input, shape index: {}]   ;;  %s7135_s5 = inlined_call_operand.vmem [shape: f32[1,128], index: 5, kind: input, shape index: {}]   ;;  %s7136_s6 = inlined_call_operand.hbm [shape: f32[16,128,128], index: 6, kind: input, shape index: {}]   ;;  %s7137_s7 = inlined_call_operand.vmem [shape: f32[1,128], index: 7, kind: input, shape index: {}]   ;;  %s7138_s8 = inlined_call_operand.vmem [shape: f32[64,128], index: 8, kind: input, shape index: {}]   ;;  %s7139_s9 = inlined_call_operand.vmem [shape: f32[1,128], index: 9, kind: input, shape index: {}]   ;;  %s7140_s10 = inlined_call_operand.vmem [shape: f32[2,16,128], index: 10, kind: output, shape index: {0}]   ;;  %s7141_s11 = inlined_call_operand.vmem [shape: f32[2,1,128], index: 11, kind: output, shape index: {1}]   ;;  %s7142_s12 = inlined_call_operand.vmem [shape: f32[2,1,128], index: 12, kind: output, shape index: {2}]  }
   0x1   :  { %19 = vsyncpa [#allocation5], 0  ;;  %s6718_s21 = smov 0  }
   0x2 LB: > { %s6724_s22 = sadd.s32 4294967295, %s6646_s21   ;;  %p4174_p0 = scmp.ge.s32.totalorder %s6646_s21, 1  ;;  %s6646_s21 = sphi %s6718_s21, %s25_s21  }
   0x3   : > { %p323_p1 = scmp.lt.s32.totalorder %s6646_s21, 3  ;;  %s6648_s23 = smov [#allocation2]  }
   0x4   : > { %s344_s24 = sshll.u32 %s6648_s23, 4  ;;  %p7143_p3 = scmp.eq.s32.totalorder %s6724_s22, 0  ;;  %s345_s24 = int_to_ptr.vmem [resolvable:$true] %s344_s24 }
   0x5   : > { %p6728_p2 = pnand %p4174_p0, %p323_p1  ;;  %s6649_s26 = smov [#allocation4]  }
   0x6   : > { %s360_s27 = sshll.u32 %s6649_s26, 4  ;;  %s6576_s13 = scalar_lea.hbm %s7134_s4, 16384  ;;  %s6741_s27 = int_to_ptr.vmem [resolvable:$true] %s360_s27 }
   0x7   : > { %s7145_s25 = scalar_select %p6728_p2, 1, 0 }
   0x8   : > { %p6545_p4 = pneg %p6728_p2  ;;  %p6577_p6 = scmp.ne.s32.totalorder %s7134_s4, %s6576_s13 }
   0x9   : > { %p6583_p10 = scmp.lt.u32.totalorder %s6576_s13, %s7134_s4 }
   0xa   : > { %p6737_p5 = pnand %p7143_p3, %p6545_p4 }
   0xc   : > { %p6578_p7 = pneg %p6737_p5 }
   0xe   : > { %p6579_p8 = pnand %p6578_p7, %p6577_p6 }
  0x10   : > { %p6580_p9 = pneg %p6579_p8 }
  0x12   : > { %p6585_p11 = pnand %p6583_p10, %p6580_p9 }
  0x14   : > { %6588 = shalt.err (!%p6585_p11)
}
  0x15   : > { %s6589_s18 = scalar_lea.vmem %s345_s24, 16384  ;;  %p6597_p1 = scmp.lt.s32.totalorder %s345_s24, %s345_s24 }
  0x16   : > { %p6590_p12 = scmp.ne.s32.totalorder %s345_s24, %s6589_s18  ;;  %p6598_p4 = scmp.lt.s32.totalorder %s6589_s18, %s6589_s18 }
  0x18   : > { %p6592_p13 = pnand %p6590_p12, %p6578_p7  ;;  %p6599_p3 = por %p6598_p4, %p6597_p1 }
  0x1a   : > { %p6593_p0 = pneg %p6592_p13 }
  0x1c   : > { %p6600_p2 = pnand %p6599_p3, %p6593_p0 }
  0x1e   : > { %6603 = shalt.err (!%p6600_p2)
}
  0x1f   : > { %s6650_s19 = smov 128   ;;  %s6651_s20 = smov 8  }
  0x20   : > { %6548 = dma.hbm_to_vmem [thread:$0]  (!%p6737_p5), %s7134_s4, 16384, %s345_s24, [#allocation3], %s6650_s19, %s6650_s19, %s6651_s20  }
  0x21   : > { %s6604_s13 = scalar_lea.hbm %s7136_s6, 32768 }
  0x22   : > { %p6605_p6 = scmp.ne.s32.totalorder %s7136_s6, %s6604_s13  ;;  %p6611_p8 = scmp.lt.u32.totalorder %s6604_s13, %s7136_s6 }
  0x24   : > { %p6607_p2 = pnand %p6605_p6, %p6578_p7 }
  0x26   : > { %p6608_p3 = pneg %p6607_p2 }
  0x28   : > { %p6613_p9 = pnand %p6611_p8, %p6608_p3 }
  0x2a   : > { %6616 = shalt.err (!%p6613_p9)
}
  0x2b   : > { %s6617_s24 = scalar_lea.vmem %s6741_s27, 32768  ;;  %p6625_p13 = scmp.lt.s32.totalorder %s6741_s27, %s6741_s27 }
  0x2c   : > { %p6618_p10 = scmp.ne.s32.totalorder %s6741_s27, %s6617_s24  ;;  %p6626_p0 = scmp.lt.s32.totalorder %s6617_s24, %s6617_s24 }
  0x2e   : > { %p6620_p11 = pnand %p6618_p10, %p6578_p7  ;;  %p6627_p1 = por %p6626_p0, %p6625_p13 }
  0x30   : > { %p6621_p12 = pneg %p6620_p11 }
  0x32   : > { %p6628_p4 = pnand %p6627_p1, %p6621_p12 }
  0x34   : > { %6631 = shalt.err (!%p6628_p4)
}
  0x35   : > { %6551 = dma.hbm_to_vmem [thread:$0]  (!%p6737_p5), %s7136_s6, 32768, %s6741_s27, [#allocation5], %s6650_s19, %s6650_s19, %s6651_s20  }
  0x36   : > { %p7147_p6 = scmp.ne.s32.totalorder %s7145_s25, 0 }
  0x37   : > { %p7148_p2 = scmp.eq.s32.totalorder (!%p7147_p6), %s6724_s22, 0 }
  0x38   : > { %393 = sbr.rel (%p7147_p6) target bundleno = 1880 (0x758), region = 60 }
  0x3f   : > { %6637 = dma.done.wait (%p7148_p2), [#allocation3], 16384   ;;  %p7149_p7 = pmov %p7148_p2 }
  0x40   : > { %p7150_p3 = pmov %p7148_p2 }
  0x41   : > { %6639 = vsyncadd (%p7149_p7), [#allocation3], 4294950912 }
  0x42   : > { %6641 = dma.done.wait (%p7150_p3), [#allocation5], 32768   ;;  %p7151_p8 = pmov %p7148_p2 }
  0x43   : > { %p445_p9 = scmp.lt.s32.totalorder %s6724_s22, 1  ;;  %v481_v0 = vld [vmem:[#allocation2 + $0x80] sm:$0xff]  ;;  %v482_v1 = vld [vmem:[#allocation2 + $0x88] sm:$0xff]  ;;  %v483_v5 = vld [vmem:[#allocation2 + $0x90] sm:$0xff]  ;;  %vm491_vm0 = vcmask 1046528   ;;  %vm495_vm1 = vcmask 523264  }
  0x44   : > { %6643 = vsyncadd (%p7151_p8), [#allocation5], 4294934528  ;;  %v920_v2 = vld [vmem:[#allocation2 + $0x140] sm:$0xff]  ;;  %v5651_v3 = vpack.c.bf16 %v482_v1, %v481_v0  ;;  %v921_v4 = vld [vmem:[#allocation2 + $0x148] sm:$0xff]  ;;  %vm663_vm2 = vcmask 1045504   ;;  %vm1173_vm3 = vcmask 1044480  }
  0x45   : > { %s7159_s22 = smov (!%p445_p9, %s6724_s22), 1  ;;  %v484_v6 = vld [vmem:[#allocation2 + $0x98] sm:$0xff]  ;;  %v5721_v7 = vpack.c.bf16 %v921_v4, %v920_v2  ;;  %v922_v9 = vld [vmem:[#allocation2 + $0x150] sm:$0xff]  ;;  %v485_v11 = vld [vmem:[#allocation2 + $0xa0] sm:$0xff]  ;;  %vm1267_vm4 = vcmask 1043456   ;;  %vm750_vm5 = vcmask 113664  }
  0x46   : > { %s4242_s25 = sshll.u32 %s7159_s22, 4  ;;  %v5655_v8 = vpack.c.bf16 %v484_v6, %v483_v5  ;;  %v923_v10 = vld [vmem:[#allocation2 + $0x158] sm:$0xff]  ;;  %5652 = vmatprep.subr.bf16.mxu0 %v5651_v3  ;;  %v486_v13 = vld [vmem:[#allocation2 + $0xa8] sm:$0xff]  ;;  %v924_v14 = vld [vmem:[#allocation2 + $0x160] sm:$0xff]  ;;  %vm6652_vm6 = vmmov 1   ;;  %vm1354_vm8 = vcmask 97280   ;;  %s457_s14 = scalar_lea.vmem %s7141_s11, %s7159_s22 }
  0x47   : > { %s6810_s19 = scalar_lea.vmem %s7130_s0, %s4242_s25  ;;  %v5725_v12 = vpack.c.bf16 %v923_v10, %v922_v9  ;;  %v925_v15 = vld [vmem:[#allocation2 + $0x168] sm:$0xff]  ;;  %5722 = vmatprep.subr.bf16.mxu1 %v5721_v7  ;;  %5654 = vmatpush3.bf16.msra.mxu0 %v5651_v3  ;;  %v5659_v16 = vpack.c.bf16 %v486_v13, %v485_v11  ;;  %v487_v20 = vld [vmem:[#allocation2 + $0xb0] sm:$0xff]  ;;  %v488_v21 = vld [vmem:[#allocation2 + $0xb8] sm:$0xff]  ;;  %vm1876_vm10 = vcmask 1042432   ;;  %vm1970_vm11 = vcmask 1041408   ;;  %s460_s17 = scalar_lea.vmem %s7142_s12, %s7159_s22 }
  0x48   : > { %5724 = vmatpush3.bf16.msra.mxu1 %v5721_v7  ;;  %5656 = vmatprep.subr.bf16.mxu0 %v5655_v8  ;;  %v6813_v17 = vld [vmem:[%s6810_s19] sm:$0xff]  ;;  %v6816_v18 = vld [vmem:[%s6810_s19 + $0x8] sm:$0xff]  ;;  %v5729_v19 = vpack.c.bf16 %v925_v15, %v924_v14  ;;  %v926_v24 = vld [vmem:[#allocation2 + $0x170] sm:$0xff]  ;;  %v5663_v27 = vpack.c.bf16 %v488_v21, %v487_v20  ;;  %vm2057_vm12 = vcmask 80896  }
  0x49   : > { %5726 = vmatprep.subr.bf16.mxu1 %v5725_v12  ;;  %v492_v22 = vrot.slane %v6813_v17, 1  ;;  %v6820_v23 = vrot.slane %v6816_v18, 1  ;;  %v927_v25 = vld [vmem:[#allocation2 + $0x178] sm:$0xff]  ;;  %v472_v29 = vld [vmem:[#allocation2 + $0x40] sm:$0xff]  ;;  %v473_v30 = vld [vmem:[#allocation2 + $0x48] sm:$0xff]  ;;  %v664_v63 = vrot.slane %v6813_v17, 2 }
  0x4a   : > { %v5733_v28 = vpack.c.bf16 %v927_v25, %v926_v24  ;;  %v911_v31 = vld [vmem:[#allocation2 + $0x100] sm:$0xff]  ;;  %v912_v32 = vld [vmem:[#allocation2 + $0x108] sm:$0xff]  ;;  %v5667_v33 = vpack.c.bf16 %v473_v30, %v472_v29  ;;  %v474_v35 = vld [vmem:[#allocation2 + $0x50] sm:$0xff]  ;;  %v6840_v0 = vrot.slane %v6816_v18, 2  ;;  %v1174_v21 = vrot.slane %v6813_v17, 3 }
  0x4b   : > { %5658 = vmatpush3.bf16.msra.mxu0 %v5655_v8  ;;  %v6824_v26 = vsel %vm491_vm0, %v492_v22, %v6820_v23  ;;  %v5737_v34 = vpack.c.bf16 %v912_v32, %v911_v31  ;;  %v475_v36 = vld [vmem:[#allocation2 + $0x58] sm:$0xff]  ;;  %v913_v37 = vld [vmem:[#allocation2 + $0x110] sm:$0xff]  ;;  %v476_v41 = vld [vmem:[#allocation2 + $0x60] sm:$0xff]  ;;  %v6856_v22 = vrot.slane %v6816_v18, 3 }
  0x4c   : > { %5728 = vmatpush3.bf16.msra.mxu1 %v5725_v12  ;;  %5660 = vmatprep.subr.bf16.mxu0 %v5659_v16  ;;  %v914_v38 = vld [vmem:[#allocation2 + $0x118] sm:$0xff]  ;;  %v5671_v39 = vpack.c.bf16 %v475_v36, %v474_v35  ;;  %v477_v42 = vld [vmem:[#allocation2 + $0x68] sm:$0xff]  ;;  %v915_v43 = vld [vmem:[#allocation2 + $0x120] sm:$0xff]  ;;  %v6846_v7 = vsel %vm663_vm2, %v664_v63, %v6840_v0 }
  0x4d   : > { %5730 = vmatprep.subr.bf16.mxu1 %v5729_v19  ;;  %4742 = vmatprep.mubr.msk.f32.mxu0 %vm495_vm1, %v6824_v26  ;;  %v5741_v40 = vpack.c.bf16 %v914_v38, %v913_v37  ;;  %v916_v44 = vld [vmem:[#allocation2 + $0x128] sm:$0xff]  ;;  %v5675_v45 = vpack.c.bf16 %v477_v42, %v476_v41  ;;  %v478_v47 = vld [vmem:[#allocation2 + $0x70] sm:$0xff]  ;;  %v479_v48 = vld [vmem:[#allocation2 + $0x78] sm:$0xff]  ;;  %v1268_v38 = vrot.slane %v6813_v17, 4 }
  0x4e   : > { %4825 = vmatprep.mubr.msk.f32.mxu1 %vm495_vm1, %v6824_v26  ;;  %v5745_v46 = vpack.c.bf16 %v916_v44, %v915_v43  ;;  %v917_v49 = vld [vmem:[#allocation2 + $0x130] sm:$0xff]  ;;  %v918_v50 = vld [vmem:[#allocation2 + $0x138] sm:$0xff]  ;;  %v5679_v51 = vpack.c.bf16 %v479_v48, %v478_v47  ;;  %v655_v53 = vld [vmem:[#allocation2 + $0xc0] sm:$0xff] }
  0x4f   : > { %5662 = vmatpush3.bf16.msra.mxu0 %v5659_v16  ;;  %v5749_v52 = vpack.c.bf16 %v918_v50, %v917_v49  ;;  %v656_v54 = vld [vmem:[#allocation2 + $0xc8] sm:$0xff]  ;;  %v1079_v55 = vld [vmem:[#allocation2 + $0x180] sm:$0xff]  ;;  %v657_v59 = vld [vmem:[#allocation2 + $0xd0] sm:$0xff] }
  0x50   : > { %5732 = vmatpush3.bf16.msra.mxu1 %v5729_v19  ;;  %5664 = vmatprep.subr.bf16.mxu0 %v5663_v27  ;;  %v1080_v56 = vld [vmem:[#allocation2 + $0x188] sm:$0xff]  ;;  %v5683_v57 = vpack.c.bf16 %v656_v54, %v655_v53  ;;  %v658_v60 = vld [vmem:[#allocation2 + $0xd8] sm:$0xff]  ;;  %v1081_v61 = vld [vmem:[#allocation2 + $0x190] sm:$0xff] }
  0x51   : > { %5734 = vmatprep.subr.bf16.mxu1 %v5733_v28  ;;  %v5753_v58 = vpack.c.bf16 %v1080_v56, %v1079_v55  ;;  %v1082_v62 = vld [vmem:[#allocation2 + $0x198] sm:$0xff]  ;;  %v5687_v1 = vpack.c.bf16 %v658_v60, %v657_v59  ;;  %v659_v3 = vld [vmem:[#allocation2 + $0xe0] sm:$0xff]  ;;  %v660_v4 = vld [vmem:[#allocation2 + $0xe8] sm:$0xff] }
  0x52   : > { %v5757_v2 = vpack.c.bf16 %v1082_v62, %v1081_v61  ;;  %v1083_v5 = vld [vmem:[#allocation2 + $0x1a0] sm:$0xff]  ;;  %v1084_v6 = vld [vmem:[#allocation2 + $0x1a8] sm:$0xff]  ;;  %v5691_v8 = vpack.c.bf16 %v660_v4, %v659_v3  ;;  %v661_v10 = vld [vmem:[#allocation2 + $0xf0] sm:$0xff] }
  0x53   : > { %5666 = vmatpush3.bf16.msra.mxu0 %v5663_v27  ;;  %v5761_v9 = vpack.c.bf16 %v1084_v6, %v1083_v5  ;;  %v662_v11 = vld [vmem:[#allocation2 + $0xf8] sm:$0xff]  ;;  %v1085_v12 = vld [vmem:[#allocation2 + $0x1b0] sm:$0xff]  ;;  %v1165_v16 = vld [vmem:[#allocation2 + $0x1c0] sm:$0xff] }
  0x54   : > { %5736 = vmatpush3.bf16.msra.mxu1 %v5733_v28  ;;  %5668 = vmatprep.subr.bf16.mxu0 %v5667_v33  ;;  %v1086_v13 = vld [vmem:[#allocation2 + $0x1b8] sm:$0xff]  ;;  %v5695_v14 = vpack.c.bf16 %v662_v11, %v661_v10  ;;  %v1166_v19 = vld [vmem:[#allocation2 + $0x1c8] sm:$0xff]  ;;  %v1167_v24 = vld [vmem:[#allocation2 + $0x1d0] sm:$0xff]  ;;  %v6860_v28 = vsel %vm1173_vm3, %v1174_v21, %v6856_v22 }
  0x55   : > { %5738 = vmatprep.subr.bf16.mxu1 %v5737_v34  ;;  %v5765_v15 = vpack.c.bf16 %v1086_v13, %v1085_v12  ;;  %v5769_v20 = vpack.c.bf16 %v1166_v19, %v1165_v16  ;;  %v1168_v25 = vld [vmem:[#allocation2 + $0x1d8] sm:$0xff]  ;;  %v1169_v29 = vld [vmem:[#allocation2 + $0x1e0] sm:$0xff]  ;;  %v1170_v30 = vld [vmem:[#allocation2 + $0x1e8] sm:$0xff] }
  0x56   : > { %4743 = vmatmul.mubr.msk.f32.vlgmr.msra.gmra.mrb[0].mxu0 %vm495_vm1, %v6820_v23  ;;  %v5773_v27 = vpack.c.bf16 %v1168_v25, %v1167_v24  ;;  %v5777_v31 = vpack.c.bf16 %v1170_v30, %v1169_v29  ;;  %v1171_v32 = vld [vmem:[#allocation2 + $0x1f0] sm:$0xff]  ;;  %v1259_v35 = vld [vmem:[#allocation2 + $0x200] sm:$0xff]  ;;  %v1260_v36 = vld [vmem:[#allocation2 + $0x208] sm:$0xff] }
  0x57   : > { %5670 = vmatpush3.bf16.msra.mxu0 %v5667_v33  ;;  %4826 = vmatmul.mubr.msk.f32.vlgmr.msra.gmra.mrb[0].mxu1 %vm495_vm1, %v6820_v23  ;;  %v1172_v33 = vld [vmem:[#allocation2 + $0x1f8] sm:$0xff]  ;;  %v5785_v37 = vpack.c.bf16 %v1260_v36, %v1259_v35  ;;  %v1263_v44 = vld [vmem:[#allocation2 + $0x220] sm:$0xff]  ;;  %v1265_v47 = vld [vmem:[#allocation2 + $0x230] sm:$0xff] }
  0x58   : > { %5740 = vmatpush3.bf16.msra.mxu1 %v5737_v34  ;;  %5672 = vmatprep.subr.bf16.mxu0 %v5671_v39  ;;  %v5781_v34 = vpack.c.bf16 %v1172_v33, %v1171_v32  ;;  %v1262_v41 = vld [vmem:[#allocation2 + $0x218] sm:$0xff]  ;;  %v6885_v50 = vld [vmem:[%s7131_s1] sm:$0xff]  ;;  %vm6891_vm7 = vmpackc.low %vm663_vm2, %vm6652_vm6 }
  0x59   : > { %5742 = vmatprep.subr.bf16.mxu1 %v5741_v40  ;;  %4761 = vmatprep.mubr.msk.f32.mxu0 %vm495_vm1, %v6813_v17  ;;  %v1266_v48 = vld [vmem:[#allocation2 + $0x238] sm:$0xff]  ;;  %v749_v60 = vld [vmem:[%s7131_s1 + $0x8] sm:$0xff]  ;;  %v467_v62 = vld [vmem:[#allocation2 + $0x20] sm:$0xff] }
  0x5a   : > { %4844 = vmatprep.mubr.msk.f32.mxu1 %vm495_vm1, %v6813_v17  ;;  %v5797_v49 = vpack.c.bf16 %v1266_v48, %v1265_v47  ;;  %v466_v59 = vld [vmem:[#allocation2 + $0x18] sm:$0xff]  ;;  %v468_v63 = vld [vmem:[#allocation2 + $0x28] sm:$0xff]  ;;  %v1352_v5 = vld [vmem:[%s7132_s2] sm:$0xff] }
  0x5b   : > { %5674 = vmatpush3.bf16.msra.mxu0 %v5671_v39  ;;  %v6870_v39 = vrot.slane %v6816_v18, 4  ;;  %v470_v3 = vld [vmem:[#allocation2 + $0x38] sm:$0xff]  ;;  %v1451_v6 = vld [vmem:[#allocation2 + $0x280] sm:$0xff]  ;;  %vm6913_vm9 = vmpackc.low %vm1267_vm4, %vm6652_vm6 }
  0x5c   : > { %5744 = vmatpush3.bf16.msra.mxu1 %v5741_v40  ;;  %5676 = vmatprep.subr.bf16.mxu0 %v5675_v45  ;;  %v1261_v40 = vld [vmem:[#allocation2 + $0x210] sm:$0xff]  ;;  %v1353_v16 = vld [vmem:[%s7132_s2 + $0x8] sm:$0xff]  ;;  %v1442_v30 = vld [vmem:[#allocation2 + $0x240] sm:$0xff] }
  0x5d   : > { %5746 = vmatprep.subr.bf16.mxu1 %v5745_v46  ;;  %v5789_v42 = vpack.c.bf16 %v1262_v41, %v1261_v40  ;;  %v6874_v43 = vsel %vm1267_vm4, %v1268_v38, %v6870_v39  ;;  %v1456_v21 = vld [vmem:[#allocation2 + $0x2a8] sm:$0xff]  ;;  %v1457_v25 = vld [vmem:[#allocation2 + $0x2b0] sm:$0xff]  ;;  %v1446_v36 = vld [vmem:[#allocation2 + $0x260] sm:$0xff] }
  0x5e   : > { %v1444_v33 = vld [vmem:[#allocation2 + $0x250] sm:$0xff]  ;;  %v1449_v40 = vld [vmem:[#allocation2 + $0x278] sm:$0xff]  ;;  %v1614_v48 = vld [vmem:[#allocation2 + $0x2e0] sm:$0xff] }
  0x5f   : > { %5678 = vmatpush3.bf16.msra.mxu0 %v5675_v45  ;;  %v1264_v45 = vld [vmem:[#allocation2 + $0x228] sm:$0xff]  ;;  %v1448_v38 = vld [vmem:[#allocation2 + $0x270] sm:$0xff]  ;;  %v1613_v47 = vld [vmem:[#allocation2 + $0x2d8] sm:$0xff] }
  0x60   : > { %5748 = vmatpush3.bf16.msra.mxu1 %v5745_v46  ;;  %5680 = vmatprep.subr.bf16.mxu0 %v5679_v51  ;;  %v5793_v46 = vpack.c.bf16 %v1264_v45, %v1263_v44  ;;  %v5835_v41 = vpack.c.bf16 %v1449_v40, %v1448_v38  ;;  %v1611_v44 = vld [vmem:[#allocation2 + $0x2c8] sm:$0xff]  ;;  %v1972_v38 = vrot.slane %v6816_v18, 6  ;;  %v1965_v40 = vld [vmem:[#allocation2 + $0x3d8] sm:$0xff]  ;;  %vm6963_vm13 = vmpackc.low %vm1970_vm11, %vm6652_vm6 }
  0x61   : > { %5750 = vmatprep.subr.bf16.mxu1 %v5749_v52  ;;  %v2165_v55 = vld [vmem:[#allocation4 + $0x30] sm:$0xff] }
  0x62   : > { %v3929_v11 = vld [vmem:[%s7138_s8 + $0x10] sm:$0xff] }
  0x63   : > { %5682 = vmatpush3.bf16.msra.mxu0 %v5679_v51  ;;  %v463_v51 = vld [vmem:[#allocation2] sm:$0xff] }
  0x64   : > { %5752 = vmatpush3.bf16.msra.mxu1 %v5749_v52  ;;  %5684 = vmatprep.subr.bf16.mxu0 %v5683_v57  ;;  %v464_v52 = vld [vmem:[#allocation2 + $0x8] sm:$0xff] }
  0x65   : > { %5754 = vmatprep.subr.bf16.mxu1 %v5753_v58 }
  0x66   : > { %4762 = vmatmul.mubr.msk.f32.vlgmr.msra.gmra.mrb[0].mxu0 %vm495_vm1, %v6816_v18 }
  0x67   : > { %5686 = vmatpush3.bf16.msra.mxu0 %v5683_v57  ;;  %4845 = vmatmul.mubr.msk.f32.vlgmr.msra.gmra.mrb[0].mxu1 %vm495_vm1, %v6816_v18  ;;  %v5705_v57 = vpack.c.bf16 %v464_v52, %v463_v51  ;;  %v1616_v52 = vld [vmem:[#allocation2 + $0x2f0] sm:$0xff] }
  0x68   : > { %5756 = vmatpush3.bf16.msra.mxu1 %v5753_v58  ;;  %5688 = vmatprep.subr.bf16.mxu0 %v5687_v1  ;;  %v465_v58 = vld [vmem:[#allocation2 + $0x10] sm:$0xff] }
  0x69   : > { %5758 = vmatprep.subr.bf16.mxu1 %v5757_v2  ;;  %4780 = vmatprep.mubr.msk.f32.mxu0 %vm495_vm1, %v6846_v7  ;;  %v5709_v61 = vpack.c.bf16 %v466_v59, %v465_v58  ;;  %v1698_v59 = vld [vmem:[#allocation2 + $0x310] sm:$0xff] }
  0x6a   : > { %4863 = vmatprep.mubr.msk.f32.mxu1 %vm495_vm1, %v6846_v7 }
  0x6b   : > { %5690 = vmatpush3.bf16.msra.mxu0 %v5687_v1  ;;  %v5713_v1 = vpack.c.bf16 %v468_v63, %v467_v62  ;;  %v1700_v62 = vld [vmem:[#allocation2 + $0x320] sm:$0xff]  ;;  %v1701_v63 = vld [vmem:[#allocation2 + $0x328] sm:$0xff] }
  0x6c   : > { %5760 = vmatpush3.bf16.msra.mxu1 %v5757_v2  ;;  %5692 = vmatprep.subr.bf16.mxu0 %v5691_v8  ;;  %v469_v2 = vld [vmem:[#allocation2 + $0x30] sm:$0xff] }
  0x6d   : > { %5762 = vmatprep.subr.bf16.mxu1 %v5761_v9  ;;  %v5717_v4 = vpack.c.bf16 %v470_v3, %v469_v2  ;;  %v1703_v2 = vld [vmem:[#allocation2 + $0x338] sm:$0xff] }
  0x6f   : > { %5694 = vmatpush3.bf16.msra.mxu0 %v5691_v8  ;;  %v1452_v8 = vld [vmem:[#allocation2 + $0x288] sm:$0xff] }
  0x70   : > { %5764 = vmatpush3.bf16.msra.mxu1 %v5761_v9  ;;  %5696 = vmatprep.subr.bf16.mxu0 %v5695_v14  ;;  %v5807_v13 = vpack.c.bf16 %v1452_v8, %v1451_v6  ;;  %v1784_v8 = vld [vmem:[#allocation2 + $0x350] sm:$0xff] }
  0x71   : > { %5766 = vmatprep.subr.bf16.mxu1 %v5765_v15 }
  0x73   : > { %5698 = vmatpush3.bf16.msra.mxu0 %v5695_v14  ;;  %v1453_v14 = vld [vmem:[#allocation2 + $0x290] sm:$0xff] }
  0x74   : > { %5768 = vmatpush3.bf16.msra.mxu1 %v5765_v15  ;;  %v1454_v15 = vld [vmem:[#allocation2 + $0x298] sm:$0xff] }
  0x75   : > { %5770 = vmatprep.subr.bf16.mxu1 %v5769_v20  ;;  %v5811_v19 = vpack.c.bf16 %v1454_v15, %v1453_v14  ;;  %v1789_v14 = vld [vmem:[#allocation2 + $0x378] sm:$0xff] }
  0x76   : > { %4781 = vmatmul.mubr.msk.f32.vlgmr.msra.gmra.mrb[0].mxu0 %vm495_vm1, %v6840_v0 }
  0x77   : > { %4864 = vmatmul.mubr.msk.f32.vlgmr.msra.gmra.mrb[0].mxu1 %vm495_vm1, %v6840_v0  ;;  %4787 = vmatprep.mubr.msk.f32.mxu0 %vm750_vm5, %v6885_v50 }
  0x78   : > { %5772 = vmatpush3.bf16.msra.mxu1 %v5769_v20  ;;  %4882 = vmatprep.mubr.msk.f32.mxu1 %vm495_vm1, %v6860_v28  ;;  %v1455_v20 = vld [vmem:[#allocation2 + $0x2a0] sm:$0xff] }
  0x79   : > { %5774 = vmatprep.subr.bf16.mxu1 %v5773_v27  ;;  %v5815_v24 = vpack.c.bf16 %v1456_v21, %v1455_v20  ;;  %v1877_v21 = vrot.slane %v6813_v17, 5 }
  0x7c   : > { %5776 = vmatpush3.bf16.msra.mxu1 %v5773_v27  ;;  %v1458_v27 = vld [vmem:[#allocation2 + $0x2b8] sm:$0xff] }
  0x7d   : > { %5778 = vmatprep.subr.bf16.mxu1 %v5777_v31  ;;  %v5819_v29 = vpack.c.bf16 %v1458_v27, %v1457_v25  ;;  %v1871_v25 = vld [vmem:[#allocation2 + $0x398] sm:$0xff] }
  0x80   : > { %5780 = vmatpush3.bf16.msra.mxu1 %v5777_v31  ;;  %v1443_v31 = vld [vmem:[#allocation2 + $0x248] sm:$0xff] }
  0x81   : > { %5782 = vmatprep.subr.bf16.mxu1 %v5781_v34  ;;  %v5823_v32 = vpack.c.bf16 %v1443_v31, %v1442_v30  ;;  %v1873_v30 = vld [vmem:[#allocation2 + $0x3a8] sm:$0xff] }
  0x84   : > { %5784 = vmatpush3.bf16.msra.mxu1 %v5781_v34  ;;  %v1445_v34 = vld [vmem:[#allocation2 + $0x258] sm:$0xff] }
  0x85   : > { %5786 = vmatprep.subr.bf16.mxu1 %v5785_v37  ;;  %v5827_v35 = vpack.c.bf16 %v1445_v34, %v1444_v33  ;;  %v1875_v33 = vld [vmem:[#allocation2 + $0x3b8] sm:$0xff] }
  0x87   : > { %4883 = vmatmul.mubr.msk.f32.vlgmr.msra.gmra.mrb[0].mxu1 %vm495_vm1, %v6856_v22 }
  0x88   : > { %5788 = vmatpush3.bf16.msra.mxu1 %v5785_v37  ;;  %4901 = vmatprep.mubr.msk.f32.mxu1 %vm495_vm1, %v6874_v43  ;;  %v1447_v37 = vld [vmem:[#allocation2 + $0x268] sm:$0xff] }
  0x89   : > { %5790 = vmatprep.subr.bf16.mxu1 %v5789_v42 }
  0x8c   : > { %5792 = vmatpush3.bf16.msra.mxu1 %v5789_v42  ;;  %v1610_v42 = vld [vmem:[#allocation2 + $0x2c0] sm:$0xff] }
  0x8d   : > { %5794 = vmatprep.subr.bf16.mxu1 %v5793_v46  ;;  %v5839_v45 = vpack.c.bf16 %v1611_v44, %v1610_v42  ;;  %v1966_v44 = vld [vmem:[#allocation2 + $0x3e0] sm:$0xff] }
  0x90   : > { %5796 = vmatpush3.bf16.msra.mxu1 %v5793_v46  ;;  %v1612_v46 = vld [vmem:[#allocation2 + $0x2d0] sm:$0xff] }
  0x91   : > { %5798 = vmatprep.subr.bf16.mxu1 %v5797_v49 }
  0x94   : > { %5800 = vmatpush3.bf16.msra.mxu1 %v5797_v49  ;;  %v1615_v49 = vld [vmem:[#allocation2 + $0x2e8] sm:$0xff] }
  0x95   : > { %v5847_v51 = vpack.c.bf16 %v1615_v49, %v1614_v48 }
  0x97   : > { %4902 = vmatmul.mubr.msk.f32.vlgmr.msra.gmra.mrb[0].mxu1 %vm495_vm1, %v6870_v39 }
 0x149   : > { %v4782_v53 = vpop.f32.mrb[0].mxu0 }
 0x14a   : > { %v737_v54 = vpop.f32.mrb[1].mxu0 }
 0x14b   : > { %v5699_v56 = vpack.c.bf16 %v4782_v53, %v737_v54  ;;  %v1617_v53 = vld [vmem:[#allocation2 + $0x2f8] sm:$0xff] }
 0x14c   : > { %v5851_v54 = vpack.c.bf16 %v1617_v53, %v1616_v52  ;;  %v2194_v52 = vld [vmem:[#allocation4 + $0x108] sm:$0xff] }
 0x14d   : > { %5701 = vmatprep.subr.msk.bf16.mxu0 %vm6891_vm7, %v5699_v56 }
 0x14e   : > { %5704 = vmatpush3.bf16.msk.msra.mxu0 %vm6891_vm7, %v5699_v56  ;;  %v1696_v56 = vld [vmem:[#allocation2 + $0x300] sm:$0xff] }
 0x14f   : > { %5706 = vmatprep.subr.bf16.mxu0 %v5705_v57 }
 0x151   : > { %4788 = vmatmul.mubr.msk.f32.vlgmr.msra.gmra.mrb[2].mxu0 %vm750_vm5, %v749_v60  ;;  %v1699_v60 = vld [vmem:[#allocation2 + $0x318] sm:$0xff] }
 0x152   : > { %5708 = vmatpush3.bf16.msra.mxu0 %v5705_v57  ;;  %4806 = vmatprep.mubr.msk.f32.mxu0 %vm495_vm1, %v6813_v17  ;;  %v1697_v57 = vld [vmem:[#allocation2 + $0x308] sm:$0xff] }
 0x153   : > { %5710 = vmatprep.subr.bf16.mxu0 %v5709_v61  ;;  %v5855_v58 = vpack.c.bf16 %v1697_v57, %v1696_v56  ;;  %v3931_v56 = vld [vmem:[%s7138_s8 + $0x20] sm:$0xff] }
 0x156   : > { %5712 = vmatpush3.bf16.msra.mxu0 %v5709_v61  ;;  %v5859_v61 = vpack.c.bf16 %v1699_v60, %v1698_v59  ;;  %v2196_v59 = vld [vmem:[#allocation4 + $0x118] sm:$0xff]  ;;  %v2056_v60 = vld [vmem:[%s7133_s3 + $0x8] sm:$0xff] }
 0x157   : > { %5714 = vmatprep.subr.bf16.mxu0 %v5713_v1 }
 0x15a   : > { %5716 = vmatpush3.bf16.msra.mxu0 %v5713_v1  ;;  %v1702_v1 = vld [vmem:[#allocation2 + $0x330] sm:$0xff] }
 0x15b   : > { %5718 = vmatprep.subr.bf16.mxu0 %v5717_v4  ;;  %v5867_v3 = vpack.c.bf16 %v1703_v2, %v1702_v1  ;;  %v2199_v1 = vld [vmem:[#allocation4 + $0x130] sm:$0xff]  ;;  %v2200_v2 = vld [vmem:[#allocation4 + $0x138] sm:$0xff] }
 0x15e   : > { %5720 = vmatpush3.bf16.msra.mxu0 %v5717_v4  ;;  %v1782_v4 = vld [vmem:[#allocation2 + $0x340] sm:$0xff] }
 0x161   : > { %4807 = vmatmul.mubr.msk.f32.vlgmr.msra.gmra.mrb[2].mxu0 %vm495_vm1, %v6816_v18 }
 0x162   : > { %4908 = vmatprep.mubr.msk.f32.mxu0 %vm1354_vm8, %v1352_v5  ;;  %v1783_v5 = vld [vmem:[#allocation2 + $0x348] sm:$0xff] }
 0x163   : > { %v5871_v6 = vpack.c.bf16 %v1783_v5, %v1782_v4  ;;  %v2201_v4 = vld [vmem:[#allocation4 + $0x140] sm:$0xff]  ;;  %v2202_v5 = vld [vmem:[#allocation4 + $0x148] sm:$0xff] }
 0x16a   : > { %v4903_v9 = vpop.f32.mrb[0].mxu1 }
 0x16b   : > { %v1341_v10 = vpop.f32.mrb[1].mxu1 }
 0x16c   : > { %v5801_v12 = vpack.c.bf16 %v4903_v9, %v1341_v10  ;;  %v1785_v9 = vld [vmem:[#allocation2 + $0x358] sm:$0xff]  ;;  %v1786_v10 = vld [vmem:[#allocation2 + $0x360] sm:$0xff] }
 0x16e   : > { %5803 = vmatprep.subr.msk.bf16.mxu0 %vm6913_vm9, %v5801_v12 }
 0x16f   : > { %5806 = vmatpush3.bf16.msk.msra.mxu0 %vm6913_vm9, %v5801_v12  ;;  %v1787_v12 = vld [vmem:[#allocation2 + $0x368] sm:$0xff] }
 0x170   : > { %5808 = vmatprep.subr.bf16.mxu0 %v5807_v13 }
 0x172   : > { %4909 = vmatmul.mubr.msk.f32.vlgmr.msra.gmra.mrb[2].mxu0 %vm1354_vm8, %v1353_v16  ;;  %v1868_v16 = vld [vmem:[#allocation2 + $0x380] sm:$0xff] }
 0x173   : > { %5810 = vmatpush3.bf16.msra.mxu0 %v5807_v13  ;;  %4927 = vmatprep.mubr.msk.f32.mxu0 %vm495_vm1, %v6824_v26  ;;  %v5831_v26 = vpack.c.bf16 %v1447_v37, %v1446_v36  ;;  %v1788_v13 = vld [vmem:[#allocation2 + $0x370] sm:$0xff]  ;;  %v1963_v36 = vld [vmem:[#allocation2 + $0x3c8] sm:$0xff] }
 0x174   : > { %5812 = vmatprep.subr.bf16.mxu0 %v5811_v19  ;;  %v5883_v15 = vpack.c.bf16 %v1789_v14, %v1788_v13  ;;  %v2207_v13 = vld [vmem:[#allocation4 + $0x170] sm:$0xff]  ;;  %v2208_v14 = vld [vmem:[#allocation4 + $0x178] sm:$0xff] }
 0x177   : > { %5814 = vmatpush3.bf16.msra.mxu0 %v5811_v19  ;;  %v1869_v19 = vld [vmem:[#allocation2 + $0x388] sm:$0xff] }
 0x178   : > { %5816 = vmatprep.subr.bf16.mxu0 %v5815_v24  ;;  %v5887_v20 = vpack.c.bf16 %v1869_v19, %v1868_v16  ;;  %v2176_v16 = vld [vmem:[#allocation4 + $0x80] sm:$0xff]  ;;  %v2177_v19 = vld [vmem:[#allocation4 + $0x88] sm:$0xff] }
 0x17b   : > { %5818 = vmatpush3.bf16.msra.mxu0 %v5815_v24  ;;  %v1870_v24 = vld [vmem:[#allocation2 + $0x390] sm:$0xff] }
 0x17c   : > { %5820 = vmatprep.subr.bf16.mxu0 %v5819_v29 }
 0x17f   : > { %5822 = vmatpush3.bf16.msra.mxu0 %v5819_v29  ;;  %v1872_v29 = vld [vmem:[#allocation2 + $0x3a0] sm:$0xff] }
 0x180   : > { %5824 = vmatprep.subr.bf16.mxu0 %v5823_v32  ;;  %v5895_v31 = vpack.c.bf16 %v1873_v30, %v1872_v29 }
 0x182   : > { %4928 = vmatmul.mubr.msk.f32.vlgmr.msra.gmra.mrb[4].mxu0 %vm495_vm1, %v6820_v23  ;;  %v5843_v23 = vpack.c.bf16 %v1613_v47, %v1612_v46  ;;  %v1969_v47 = vld [vmem:[#allocation2 + $0x3f8] sm:$0xff] }
 0x183   : > { %5826 = vmatpush3.bf16.msra.mxu0 %v5823_v32  ;;  %4946 = vmatprep.mubr.msk.f32.mxu0 %vm495_vm1, %v6813_v17  ;;  %v1874_v32 = vld [vmem:[#allocation2 + $0x3b0] sm:$0xff] }
 0x184   : > { %5828 = vmatprep.subr.bf16.mxu0 %v5827_v35  ;;  %v5899_v34 = vpack.c.bf16 %v1875_v33, %v1874_v32 }
 0x187   : > { %5830 = vmatpush3.bf16.msra.mxu0 %v5827_v35  ;;  %v1962_v35 = vld [vmem:[#allocation2 + $0x3c0] sm:$0xff] }
 0x188   : > { %5832 = vmatprep.subr.bf16.mxu0 %v5831_v26  ;;  %v5903_v37 = vpack.c.bf16 %v1963_v36, %v1962_v35  ;;  %v2178_v35 = vld [vmem:[#allocation4 + $0x90] sm:$0xff]  ;;  %v2179_v36 = vld [vmem:[#allocation4 + $0x98] sm:$0xff] }
 0x18b   : > { %5834 = vmatpush3.bf16.msra.mxu0 %v5831_v26  ;;  %v1971_v26 = vrot.slane %v6813_v17, 6  ;;  %v1968_v17 = vld [vmem:[#allocation2 + $0x3f0] sm:$0xff] }
 0x18c   : > { %5836 = vmatprep.subr.bf16.mxu0 %v5835_v41 }
 0x18d   : > { %v1973_v42 = vsel %vm1970_vm11, %v1971_v26, %v1972_v38 }
 0x18f   : > { %5838 = vmatpush3.bf16.msra.mxu0 %v5835_v41 }
 0x190   : > { %5840 = vmatprep.subr.bf16.mxu0 %v5839_v45 }
 0x192   : > { %4947 = vmatmul.mubr.msk.f32.vlgmr.msra.gmra.mrb[4].mxu0 %vm495_vm1, %v6816_v18 }
 0x193   : > { %5842 = vmatpush3.bf16.msra.mxu0 %v5839_v45  ;;  %4965 = vmatprep.mubr.msk.f32.mxu0 %vm495_vm1, %v6846_v7  ;;  %v5863_v7 = vpack.c.bf16 %v1701_v63, %v1700_v62  ;;  %v1967_v45 = vld [vmem:[#allocation2 + $0x3e8] sm:$0xff]  ;;  %v2197_v62 = vld [vmem:[#allocation4 + $0x120] sm:$0xff] }
 0x194   : > { %5844 = vmatprep.subr.bf16.mxu0 %v5843_v23  ;;  %v5911_v46 = vpack.c.bf16 %v1967_v45, %v1966_v44  ;;  %v2198_v63 = vld [vmem:[#allocation4 + $0x128] sm:$0xff]  ;;  %v2183_v44 = vld [vmem:[#allocation4 + $0xb8] sm:$0xff] }
 0x197   : > { %5846 = vmatpush3.bf16.msra.mxu0 %v5843_v23  ;;  %v2055_v23 = vld [vmem:[%s7133_s3] sm:$0xff] }
 0x198   : > { %5848 = vmatprep.subr.bf16.mxu0 %v5847_v51  ;;  %5048 = vmatprep.mubr.msk.f32.mxu1 %vm2057_vm12, %v2055_v23  ;;  %v2187_v23 = vld [vmem:[#allocation4 + $0xd8] sm:$0xff] }
 0x19b   : > { %5850 = vmatpush3.bf16.msra.mxu0 %v5847_v51  ;;  %v2193_v51 = vld [vmem:[#allocation4 + $0x100] sm:$0xff] }
 0x19c   : > { %5852 = vmatprep.subr.bf16.mxu0 %v5851_v54  ;;  %v5925_v57 = vpack.c.bf16 %v2194_v52, %v2193_v51  ;;  %v2189_v51 = vld [vmem:[#allocation4 + $0xe8] sm:$0xff] }
 0x19f   : > { %5854 = vmatpush3.bf16.msra.mxu0 %v5851_v54 }
 0x1a0   : > { %5856 = vmatprep.subr.bf16.mxu0 %v5855_v58 }
 0x1a2   : > { %4966 = vmatmul.mubr.msk.f32.vlgmr.msra.gmra.mrb[4].mxu0 %vm495_vm1, %v6840_v0  ;;  %v5875_v0 = vpack.c.bf16 %v1785_v9, %v1784_v8  ;;  %v2203_v8 = vld [vmem:[#allocation4 + $0x150] sm:$0xff]  ;;  %v2204_v9 = vld [vmem:[#allocation4 + $0x158] sm:$0xff] }
 0x1a3   : > { %5858 = vmatpush3.bf16.msra.mxu0 %v5855_v58  ;;  %4984 = vmatprep.mubr.msk.f32.mxu0 %vm495_vm1, %v6860_v28  ;;  %v5879_v28 = vpack.c.bf16 %v1787_v12, %v1786_v10  ;;  %v2195_v58 = vld [vmem:[#allocation4 + $0x110] sm:$0xff]  ;;  %v2205_v10 = vld [vmem:[#allocation4 + $0x160] sm:$0xff]  ;;  %v2206_v12 = vld [vmem:[#allocation4 + $0x168] sm:$0xff] }
 0x1a4   : > { %5860 = vmatprep.subr.bf16.mxu0 %v5859_v61 }
 0x1a7   : > { %5862 = vmatpush3.bf16.msra.mxu0 %v5859_v61  ;;  %v5929_v61 = vpack.c.bf16 %v2196_v59, %v2195_v58  ;;  %v2368_v58 = vld [vmem:[#allocation4 + $0x188] sm:$0xff] }
 0x1a8   : > { %5864 = vmatprep.subr.bf16.mxu0 %v5863_v7 }
 0x1ab   : > { %5866 = vmatpush3.bf16.msra.mxu0 %v5863_v7  ;;  %v5933_v7 = vpack.c.bf16 %v2198_v63, %v2197_v62 }
 0x1ac   : > { %5868 = vmatprep.subr.bf16.mxu0 %v5867_v3 }
 0x1af   : > { %5870 = vmatpush3.bf16.msra.mxu0 %v5867_v3  ;;  %v5937_v3 = vpack.c.bf16 %v2200_v2, %v2199_v1  ;;  %v2371_v1 = vld [vmem:[#allocation4 + $0x1a0] sm:$0xff]  ;;  %v2372_v2 = vld [vmem:[#allocation4 + $0x1a8] sm:$0xff] }
 0x1b0   : > { %5872 = vmatprep.subr.bf16.mxu0 %v5871_v6 }
 0x1b2   : > { %4985 = vmatmul.mubr.msk.f32.vlgmr.msra.gmra.mrb[4].mxu0 %vm495_vm1, %v6856_v22  ;;  %v1878_v22 = vrot.slane %v6816_v18, 5  ;;  %v5915_v18 = vpack.c.bf16 %v1969_v47, %v1968_v17  ;;  %v2185_v17 = vld [vmem:[#allocation4 + $0xc8] sm:$0xff] }
 0x1b3   : > { %5874 = vmatpush3.bf16.msra.mxu0 %v5871_v6  ;;  %5003 = vmatprep.mubr.msk.f32.mxu0 %vm495_vm1, %v6874_v43  ;;  %v5891_v43 = vpack.c.bf16 %v1871_v25, %v1870_v24  ;;  %v5941_v6 = vpack.c.bf16 %v2202_v5, %v2201_v4  ;;  %v5997_v4 = vpack.c.bf16 %v2372_v2, %v2371_v1  ;;  %v2373_v5 = vld [vmem:[#allocation4 + $0x1b0] sm:$0xff]  ;;  %v3184_v1 = vld [vmem:[#allocation4 + $0x4c8] sm:$0xff] }
 0x1b4   : > { %5876 = vmatprep.subr.bf16.mxu0 %v5875_v0  ;;  %v1879_v27 = vsel %vm1876_vm10, %v1877_v21, %v1878_v22 }
 0x1b7   : > { %5878 = vmatpush3.bf16.msra.mxu0 %v5875_v0  ;;  %v5945_v0 = vpack.c.bf16 %v2204_v9, %v2203_v8  ;;  %v2375_v9 = vld [vmem:[#allocation4 + $0x1c0] sm:$0xff] }
 0x1b8   : > { %5880 = vmatprep.subr.bf16.mxu0 %v5879_v28 }
 0x1bb   : > { %5882 = vmatpush3.bf16.msra.mxu0 %v5879_v28  ;;  %v5949_v28 = vpack.c.bf16 %v2206_v12, %v2205_v10  ;;  %v2377_v12 = vld [vmem:[#allocation4 + $0x1d0] sm:$0xff] }
 0x1bc   : > { %5884 = vmatprep.subr.bf16.mxu0 %v5883_v15 }
 0x1bf   : > { %5886 = vmatpush3.bf16.msra.mxu0 %v5883_v15  ;;  %v5953_v15 = vpack.c.bf16 %v2208_v14, %v2207_v13  ;;  %v2379_v14 = vld [vmem:[#allocation4 + $0x1e0] sm:$0xff] }
 0x1c0   : > { %5888 = vmatprep.subr.bf16.mxu0 %v5887_v20 }
 0x1c2   : > { %5004 = vmatmul.mubr.msk.f32.vlgmr.msra.gmra.mrb[4].mxu0 %vm495_vm1, %v6870_v39  ;;  %v1964_v39 = vld [vmem:[#allocation2 + $0x3d0] sm:$0xff] }
 0x1c3   : > { %5890 = vmatpush3.bf16.msra.mxu0 %v5887_v20  ;;  %5022 = vmatprep.mubr.msk.f32.mxu0 %vm495_vm1, %v1879_v27  ;;  %v5907_v41 = vpack.c.bf16 %v1965_v40, %v1964_v39  ;;  %v5957_v20 = vpack.c.bf16 %v2177_v19, %v2176_v16  ;;  %v2180_v39 = vld [vmem:[#allocation4 + $0xa0] sm:$0xff]  ;;  %v2181_v40 = vld [vmem:[#allocation4 + $0xa8] sm:$0xff]  ;;  %v2381_v19 = vld [vmem:[#allocation4 + $0x1f0] sm:$0xff] }
 0x1c4   : > { %5892 = vmatprep.subr.bf16.mxu0 %v5891_v43 }
 0x1c7   : > { %5894 = vmatpush3.bf16.msra.mxu0 %v5891_v43 }
 0x1c8   : > { %5896 = vmatprep.subr.bf16.mxu0 %v5895_v31 }
 0x1cb   : > { %5898 = vmatpush3.bf16.msra.mxu0 %v5895_v31 }
 0x1cc   : > { %5900 = vmatprep.subr.bf16.mxu0 %v5899_v34 }
 0x1cf   : > { %5902 = vmatpush3.bf16.msra.mxu0 %v5899_v34 }
 0x1d0   : > { %5904 = vmatprep.subr.bf16.mxu0 %v5903_v37 }
 0x1d2   : > { %5023 = vmatmul.mubr.msk.f32.vlgmr.msra.gmra.mrb[4].mxu0 %vm495_vm1, %v1878_v22  ;;  %v4226_v22 = vld [vmem:[%s7135_s5] ss:$0 sm:$0xff] }
 0x1d3   : > { %5906 = vmatpush3.bf16.msra.mxu0 %v5903_v37  ;;  %5041 = vmatprep.mubr.msk.f32.mxu0 %vm495_vm1, %v1973_v42  ;;  %v2182_v42 = vld [vmem:[#allocation4 + $0xb0] sm:$0xff] }
 0x1d4   : > { %5908 = vmatprep.subr.bf16.mxu0 %v5907_v41  ;;  %v5969_v45 = vpack.c.bf16 %v2183_v44, %v2182_v42  ;;  %v3202_v42 = vld [vmem:[#allocation4 + $0x550] sm:$0xff]  ;;  %v3203_v44 = vld [vmem:[#allocation4 + $0x558] sm:$0xff] }
 0x1d7   : > { %5910 = vmatpush3.bf16.msra.mxu0 %v5907_v41  ;;  %v5965_v41 = vpack.c.bf16 %v2181_v40, %v2180_v39  ;;  %v3200_v39 = vld [vmem:[#allocation4 + $0x540] sm:$0xff]  ;;  %v3201_v40 = vld [vmem:[#allocation4 + $0x548] sm:$0xff] }
 0x1d8   : > { %5912 = vmatprep.subr.bf16.mxu0 %v5911_v46 }
 0x1db   : > { %5914 = vmatpush3.bf16.msra.mxu0 %v5911_v46  ;;  %v2184_v46 = vld [vmem:[#allocation4 + $0xc0] sm:$0xff] }
 0x1dc   : > { %5916 = vmatprep.subr.bf16.mxu0 %v5915_v18  ;;  %v5973_v47 = vpack.c.bf16 %v2185_v17, %v2184_v46  ;;  %v3204_v46 = vld [vmem:[#allocation4 + $0x560] sm:$0xff]  ;;  %v3205_v17 = vld [vmem:[#allocation4 + $0x568] sm:$0xff] }
 0x1df   : > { %5918 = vmatpush3.bf16.msra.mxu0 %v5915_v18  ;;  %v2186_v18 = vld [vmem:[#allocation4 + $0xd0] sm:$0xff] }
 0x1e2   : > { %5042 = vmatmul.mubr.msk.f32.vlgmr.msra.gmra.mrb[4].mxu0 %vm495_vm1, %v1972_v38  ;;  %v5961_v38 = vpack.c.bf16 %v2179_v36, %v2178_v35  ;;  %v3198_v36 = vld [vmem:[#allocation4 + $0x530] sm:$0xff] }
 0x1e3   : > { %5160 = vmatprep.mubr.msk.f32.mxu0 %vm750_vm5, %v6885_v50 }
 0x245   : > { %v4910_v48 = vpop.f32.mrb[2].mxu0 }
 0x246   : > { %v1430_v49 = vpop.f32.mrb[3].mxu0 }
 0x2b5   : > { %v5043_v53 = vpop.f32.mrb[4].mxu0 }
 0x2b6   : > { %v2044_v54 = vpop.f32.mrb[5].mxu0 }
 0x2b7   : > { %v5919_v50 = vpack.c.bf16 %v5043_v53, %v2044_v54  ;;  %v2190_v53 = vld [vmem:[#allocation4 + $0xf0] sm:$0xff]  ;;  %v2191_v54 = vld [vmem:[#allocation4 + $0xf8] sm:$0xff] }
 0x2b9   : > { %5921 = vmatprep.subr.msk.bf16.mxu1 %vm6963_vm13, %v5919_v50 }
 0x2ba   : > { %5924 = vmatpush3.bf16.msk.msra.mxu1 %vm6963_vm13, %v5919_v50  ;;  %v5985_v50 = vpack.c.bf16 %v2191_v54, %v2190_v53  ;;  %v3177_v53 = vld [vmem:[#allocation4 + $0x490] sm:$0xff]  ;;  %v3178_v54 = vld [vmem:[#allocation4 + $0x498] sm:$0xff] }
 0x2bb   : > { %5926 = vmatprep.subr.bf16.mxu1 %v5925_v57 }
 0x2bd   : > { %5049 = vmatmul.mubr.msk.f32.vlgmr.msra.gmra.mrb[2].mxu1 %vm2057_vm12, %v2056_v60  ;;  %v2369_v60 = vld [vmem:[#allocation4 + $0x190] sm:$0xff] }
 0x2be   : > { %5928 = vmatpush3.bf16.msra.mxu1 %v5925_v57  ;;  %v2367_v57 = vld [vmem:[#allocation4 + $0x180] sm:$0xff] }
 0x2bf   : > { %5930 = vmatprep.subr.bf16.mxu1 %v5929_v61  ;;  %v5989_v59 = vpack.c.bf16 %v2368_v58, %v2367_v57  ;;  %v3179_v57 = vld [vmem:[#allocation4 + $0x4a0] sm:$0xff]  ;;  %v3180_v58 = vld [vmem:[#allocation4 + $0x4a8] sm:$0xff] }
 0x2c2   : > { %5932 = vmatpush3.bf16.msra.mxu1 %v5929_v61  ;;  %v2370_v61 = vld [vmem:[#allocation4 + $0x198] sm:$0xff] }
 0x2c3   : > { %5934 = vmatprep.subr.bf16.mxu1 %v5933_v7 }
 0x2c6   : > { %5936 = vmatpush3.bf16.msra.mxu1 %v5933_v7  ;;  %v5993_v7 = vpack.c.bf16 %v2370_v61, %v2369_v60  ;;  %v3181_v60 = vld [vmem:[#allocation4 + $0x4b0] sm:$0xff]  ;;  %v3182_v61 = vld [vmem:[#allocation4 + $0x4b8] sm:$0xff] }
 0x2c7   : > { %5938 = vmatprep.subr.bf16.mxu1 %v5937_v3 }
 0x2ca   : > { %5940 = vmatpush3.bf16.msra.mxu1 %v5937_v3 }
 0x2cb   : > { %5942 = vmatprep.subr.bf16.mxu1 %v5941_v6 }
 0x2ce   : > { %5944 = vmatpush3.bf16.msra.mxu1 %v5941_v6  ;;  %v2374_v6 = vld [vmem:[#allocation4 + $0x1b8] sm:$0xff] }
 0x2cf   : > { %5946 = vmatprep.subr.bf16.mxu1 %v5945_v0  ;;  %v6001_v8 = vpack.c.bf16 %v2374_v6, %v2373_v5  ;;  %v3186_v5 = vld [vmem:[#allocation4 + $0x4d8] sm:$0xff] }
 0x2d2   : > { %5948 = vmatpush3.bf16.msra.mxu1 %v5945_v0  ;;  %v2376_v0 = vld [vmem:[#allocation4 + $0x1c8] sm:$0xff] }
 0x2d3   : > { %5950 = vmatprep.subr.bf16.mxu1 %v5949_v28  ;;  %v6005_v10 = vpack.c.bf16 %v2376_v0, %v2375_v9  ;;  %v3188_v9 = vld [vmem:[#allocation4 + $0x4e8] sm:$0xff] }
 0x2d6   : > { %5952 = vmatpush3.bf16.msra.mxu1 %v5949_v28  ;;  %v2378_v28 = vld [vmem:[#allocation4 + $0x1d8] sm:$0xff] }
 0x2d7   : > { %5954 = vmatprep.subr.bf16.mxu1 %v5953_v15  ;;  %v6009_v13 = vpack.c.bf16 %v2378_v28, %v2377_v12  ;;  %v3190_v12 = vld [vmem:[#allocation4 + $0x4f8] sm:$0xff] }
 0x2da   : > { %5956 = vmatpush3.bf16.msra.mxu1 %v5953_v15  ;;  %v2380_v15 = vld [vmem:[#allocation4 + $0x1e8] sm:$0xff] }
 0x2db   : > { %5958 = vmatprep.subr.bf16.mxu1 %v5957_v20  ;;  %v6013_v16 = vpack.c.bf16 %v2380_v15, %v2379_v14  ;;  %v3360_v14 = vld [vmem:[#allocation4 + $0x588] sm:$0xff] }
 0x390   : > { %v5050_v21 = vpop.f32.mrb[2].mxu1 }
 0x391   : > { %v6471_v24 = vadd.f32 %v5050_v21, %v4910_v48  ;;  %v2133_v25 = vpop.f32.mrb[3].mxu1  ;;  %v5977_v48 = vpack.c.bf16 %v2187_v23, %v2186_v18  ;;  %v3206_v18 = vld [vmem:[#allocation4 + $0x570] sm:$0xff]  ;;  %v3207_v23 = vld [vmem:[#allocation4 + $0x578] sm:$0xff] }
 0x392   : > { %v6472_v43 = vadd.f32 %v2133_v25, %v1430_v49  ;;  %v2188_v49 = vld [vmem:[#allocation4 + $0xe0] sm:$0xff] }
 0x393   : > { %v2152_v27 = vadd.f32 %v6471_v24, %v4226_v22  ;;  %v5981_v52 = vpack.c.bf16 %v2189_v51, %v2188_v49  ;;  %v3193_v24 = vld [vmem:[#allocation4 + $0x508] sm:$0xff]  ;;  %v3175_v49 = vld [vmem:[#allocation4 + $0x480] sm:$0xff] }
 0x394   : > { %v2151_v29 = vadd.f32 %v6472_v43, %v4226_v22  ;;  %v3192_v22 = vld [vmem:[#allocation4 + $0x500] sm:$0xff]  ;;  %v3194_v43 = vld [vmem:[#allocation4 + $0x510] sm:$0xff]  ;;  %v3176_v51 = vld [vmem:[#allocation4 + $0x488] sm:$0xff] }
 0x395   : > { %vm2154_vm14 = vcmp.ge.f32.partialorder %v2152_v27, 0.0  ;;  %v2156_v30 = vmul.f32 0.1, %v2152_v27  ;;  %v6225_v25 = vpack.c.bf16 %v3193_v24, %v3192_v22  ;;  %v3364_v22 = vld [vmem:[#allocation4 + $0x5a8] sm:$0xff] }
 0x396   : > { %vm2153_vm15 = vcmp.ge.f32.partialorder %v2151_v29, 0.0  ;;  %v2155_v31 = vmul.f32 0.1, %v2151_v29 }
 0x397   : > { %v6978_v32 = vsel %vm2154_vm14, %v2152_v27, %v2156_v30  ;;  %v3195_v27 = vld [vmem:[#allocation4 + $0x518] sm:$0xff]  ;;  %v3196_v30 = vld [vmem:[#allocation4 + $0x520] sm:$0xff] }
 0x398   : > { %v6980_v33 = vsel %vm2153_vm15, %v2151_v29, %v2155_v31  ;;  %v6983_v34 = vrot.slane %v6978_v32, 1  ;;  %v6995_v63 = vrot.slane %v6978_v32, 2  ;;  %v6229_v29 = vpack.c.bf16 %v3195_v27, %v3194_v43  ;;  %v3197_v31 = vld [vmem:[#allocation4 + $0x528] sm:$0xff]  ;;  %v3366_v43 = vld [vmem:[#allocation4 + $0x5b8] sm:$0xff] }
 0x399   : > { %v2211_v37 = vrot.slane %v6980_v33, 1  ;;  %v2383_v62 = vrot.slane %v6980_v33, 2  ;;  %v6233_v35 = vpack.c.bf16 %v3197_v31, %v3196_v30  ;;  %v3368_v30 = vld [vmem:[#allocation4 + $0x5c8] sm:$0xff] }
 0x39b   : > { %v6988_v26 = vsel %vm491_vm0, %v2211_v37, %v6983_v34  ;;  %v7000_v3 = vsel %vm663_vm2, %v2383_v62, %v6995_v63  ;;  %v3199_v37 = vld [vmem:[#allocation4 + $0x538] sm:$0xff]  ;;  %v6269_v62 = vpack.c.bf16 %v3182_v61, %v3181_v60  ;;  %v3462_v60 = vld [vmem:[#allocation4 + $0x648] sm:$0xff] }
 0x39c   : > { %5083 = vmatprep.mubr.f32.mxu1 %v6988_v26 }
 0x39d   : > { %5084 = vmatmul.mubr.f32.vlgmr.msra.gmra.mrb[4].mxu1 %v6983_v34 }
 0x39e   : > { %5960 = vmatpush3.bf16.msra.mxu1 %v5957_v20  ;;  %5118 = vmatprep.mubr.f32.mxu1 %v6980_v33  ;;  %v2382_v20 = vld [vmem:[#allocation4 + $0x1f8] sm:$0xff] }
 0x39f   : > { %5962 = vmatprep.subr.bf16.mxu1 %v5961_v38  ;;  %v6017_v21 = vpack.c.bf16 %v2382_v20, %v2381_v19  ;;  %v3362_v19 = vld [vmem:[#allocation4 + $0x598] sm:$0xff] }
 0x3a2   : > { %5964 = vmatpush3.bf16.msra.mxu1 %v5961_v38  ;;  %v6237_v38 = vpack.c.bf16 %v3199_v37, %v3198_v36  ;;  %v3370_v36 = vld [vmem:[#allocation4 + $0x5d8] sm:$0xff] }
 0x3a3   : > { %5966 = vmatprep.subr.bf16.mxu1 %v5965_v41 }
 0x3a6   : > { %5968 = vmatpush3.bf16.msra.mxu1 %v5965_v41  ;;  %v6241_v41 = vpack.c.bf16 %v3201_v40, %v3200_v39  ;;  %v3372_v39 = vld [vmem:[#allocation4 + $0x5e8] sm:$0xff] }
 0x3a7   : > { %5970 = vmatprep.subr.bf16.mxu1 %v5969_v45 }
 0x3aa   : > { %5972 = vmatpush3.bf16.msra.mxu1 %v5969_v45  ;;  %v6245_v45 = vpack.c.bf16 %v3203_v44, %v3202_v42  ;;  %v3374_v42 = vld [vmem:[#allocation4 + $0x5f8] sm:$0xff] }
 0x3ab   : > { %5974 = vmatprep.subr.bf16.mxu1 %v5973_v47 }
 0x3ae   : > { %5976 = vmatpush3.bf16.msra.mxu1 %v5973_v47  ;;  %v6249_v47 = vpack.c.bf16 %v3205_v17, %v3204_v46  ;;  %v3454_v46 = vld [vmem:[#allocation4 + $0x608] sm:$0xff] }
 0x3af   : > { %5978 = vmatprep.subr.bf16.mxu1 %v5977_v48 }
 0x3b2   : > { %5980 = vmatpush3.bf16.msra.mxu1 %v5977_v48  ;;  %v6253_v48 = vpack.c.bf16 %v3207_v23, %v3206_v18  ;;  %v3456_v18 = vld [vmem:[#allocation4 + $0x618] sm:$0xff]  ;;  %v2913_v23 = vrot.slane %v6980_v33, 3 }
 0x3b3   : > { %5982 = vmatprep.subr.bf16.mxu1 %v5981_v52 }
 0x3b6   : > { %5984 = vmatpush3.bf16.msra.mxu1 %v5981_v52  ;;  %v6257_v52 = vpack.c.bf16 %v3176_v51, %v3175_v49  ;;  %v3457_v51 = vld [vmem:[#allocation4 + $0x620] sm:$0xff] }
 0x3b7   : > { %5986 = vmatprep.subr.bf16.mxu1 %v5985_v50 }
 0x3ba   : > { %5988 = vmatpush3.bf16.msra.mxu1 %v5985_v50  ;;  %v6261_v50 = vpack.c.bf16 %v3178_v54, %v3177_v53 }
 0x3bb   : > { %5990 = vmatprep.subr.bf16.mxu1 %v5989_v59 }
 0x3bd   : > { %5119 = vmatmul.mubr.f32.vlgmr.msra.gmra.mrb[4].mxu1 %v6978_v32 }
 0x3be   : > { %5992 = vmatpush3.bf16.msra.mxu1 %v5989_v59  ;;  %5153 = vmatprep.mubr.f32.mxu1 %v7000_v3  ;;  %v6265_v59 = vpack.c.bf16 %v3180_v58, %v3179_v57  ;;  %v3460_v57 = vld [vmem:[#allocation4 + $0x638] sm:$0xff] }
 0x3bf   : > { %5994 = vmatprep.subr.bf16.mxu1 %v5993_v7 }
 0x3c2   : > { %5996 = vmatpush3.bf16.msra.mxu1 %v5993_v7  ;;  %v3183_v7 = vld [vmem:[#allocation4 + $0x4c0] sm:$0xff] }
 0x3c3   : > { %5998 = vmatprep.subr.bf16.mxu1 %v5997_v4  ;;  %v6273_v2 = vpack.c.bf16 %v3184_v1, %v3183_v7  ;;  %v3464_v7 = vld [vmem:[#allocation4 + $0x658] sm:$0xff] }
 0x3c6   : > { %6000 = vmatpush3.bf16.msra.mxu1 %v5997_v4  ;;  %v3185_v4 = vld [vmem:[#allocation4 + $0x4d0] sm:$0xff] }
 0x3c7   : > { %6002 = vmatprep.subr.bf16.mxu1 %v6001_v8  ;;  %v6277_v6 = vpack.c.bf16 %v3186_v5, %v3185_v4  ;;  %v3466_v4 = vld [vmem:[#allocation4 + $0x668] sm:$0xff] }
 0x3ca   : > { %6004 = vmatpush3.bf16.msra.mxu1 %v6001_v8  ;;  %v3187_v8 = vld [vmem:[#allocation4 + $0x4e0] sm:$0xff] }
 0x3cb   : > { %6006 = vmatprep.subr.bf16.mxu1 %v6005_v10  ;;  %v6281_v0 = vpack.c.bf16 %v3188_v9, %v3187_v8  ;;  %v3468_v8 = vld [vmem:[#allocation4 + $0x678] sm:$0xff] }
 0x3ce   : > { %6008 = vmatpush3.bf16.msra.mxu1 %v6005_v10  ;;  %v3189_v10 = vld [vmem:[#allocation4 + $0x4f0] sm:$0xff] }
 0x3cf   : > { %6010 = vmatprep.subr.bf16.mxu1 %v6009_v13  ;;  %v6285_v28 = vpack.c.bf16 %v3190_v12, %v3189_v10  ;;  %v3548_v10 = vld [vmem:[#allocation4 + $0x688] sm:$0xff] }
 0x3d2   : > { %6012 = vmatpush3.bf16.msra.mxu1 %v6009_v13  ;;  %v3359_v13 = vld [vmem:[#allocation4 + $0x580] sm:$0xff] }
 0x3d3   : > { %6014 = vmatprep.subr.bf16.mxu1 %v6013_v16  ;;  %v6289_v15 = vpack.c.bf16 %v3360_v14, %v3359_v13  ;;  %v3550_v13 = vld [vmem:[#allocation4 + $0x698] sm:$0xff]  ;;  %v3012_v14 = vrot.slane %v6980_v33, 4 }
 0x3d6   : > { %6016 = vmatpush3.bf16.msra.mxu1 %v6013_v16  ;;  %v3361_v16 = vld [vmem:[#allocation4 + $0x590] sm:$0xff] }
 0x3d7   : > { %6018 = vmatprep.subr.bf16.mxu1 %v6017_v21  ;;  %v6293_v20 = vpack.c.bf16 %v3362_v19, %v3361_v16  ;;  %v3551_v19 = vld [vmem:[#allocation4 + $0x6a0] sm:$0xff] }
 0x3da   : > { %6020 = vmatpush3.bf16.msra.mxu1 %v6017_v21  ;;  %v3363_v21 = vld [vmem:[#allocation4 + $0x5a0] sm:$0xff] }
 0x3db   : > { %6226 = vmatprep.subr.bf16.mxu1 %v6225_v25  ;;  %v6297_v24 = vpack.c.bf16 %v3364_v22, %v3363_v21 }
 0x3dd   : > { %5154 = vmatmul.mubr.f32.vlgmr.msra.gmra.mrb[4].mxu1 %v6995_v63 }
 0x3de   : > { %6228 = vmatpush3.bf16.msra.mxu1 %v6225_v25  ;;  %5412 = vmatprep.mubr.f32.mxu1 %v6988_v26  ;;  %v3365_v25 = vld [vmem:[#allocation4 + $0x5b0] sm:$0xff] }
 0x3df   : > { %6230 = vmatprep.subr.bf16.mxu1 %v6229_v29  ;;  %v6301_v27 = vpack.c.bf16 %v3366_v43, %v3365_v25  ;;  %v3554_v25 = vld [vmem:[#allocation4 + $0x6b8] sm:$0xff] }
 0x3e2   : > { %6232 = vmatpush3.bf16.msra.mxu1 %v6229_v29  ;;  %v3367_v29 = vld [vmem:[#allocation4 + $0x5c0] sm:$0xff] }
 0x3e3   : > { %6234 = vmatprep.subr.bf16.mxu1 %v6233_v35  ;;  %v6305_v31 = vpack.c.bf16 %v3368_v30, %v3367_v29  ;;  %v3556_v29 = vld [vmem:[#allocation4 + $0x6c8] sm:$0xff] }
 0x3e6   : > { %6236 = vmatpush3.bf16.msra.mxu1 %v6233_v35  ;;  %v3369_v35 = vld [vmem:[#allocation4 + $0x5d0] sm:$0xff] }
 0x3e7   : > { %6238 = vmatprep.subr.bf16.mxu1 %v6237_v38  ;;  %v6309_v37 = vpack.c.bf16 %v3370_v36, %v3369_v35  ;;  %v3558_v35 = vld [vmem:[#allocation4 + $0x6d8] sm:$0xff] }
 0x3ea   : > { %6240 = vmatpush3.bf16.msra.mxu1 %v6237_v38  ;;  %v3371_v38 = vld [vmem:[#allocation4 + $0x5e0] sm:$0xff] }
 0x3eb   : > { %6242 = vmatprep.subr.bf16.mxu1 %v6241_v41  ;;  %v6313_v40 = vpack.c.bf16 %v3372_v39, %v3371_v38  ;;  %v3560_v38 = vld [vmem:[#allocation4 + $0x6e8] sm:$0xff] }
 0x3ee   : > { %6244 = vmatpush3.bf16.msra.mxu1 %v6241_v41  ;;  %v3373_v41 = vld [vmem:[#allocation4 + $0x5f0] sm:$0xff] }
 0x3ef   : > { %6246 = vmatprep.subr.bf16.mxu1 %v6245_v45  ;;  %v6317_v44 = vpack.c.bf16 %v3374_v42, %v3373_v41  ;;  %v3562_v41 = vld [vmem:[#allocation4 + $0x6f8] sm:$0xff] }
 0x3f2   : > { %6248 = vmatpush3.bf16.msra.mxu1 %v6245_v45  ;;  %v3453_v45 = vld [vmem:[#allocation4 + $0x600] sm:$0xff] }
 0x3f3   : > { %6250 = vmatprep.subr.bf16.mxu1 %v6249_v47  ;;  %v6321_v17 = vpack.c.bf16 %v3454_v46, %v3453_v45  ;;  %v3642_v45 = vld [vmem:[#allocation4 + $0x708] sm:$0xff] }
 0x3f6   : > { %6252 = vmatpush3.bf16.msra.mxu1 %v6249_v47  ;;  %v3455_v47 = vld [vmem:[#allocation4 + $0x610] sm:$0xff] }
 0x3f7   : > { %6254 = vmatprep.subr.bf16.mxu1 %v6253_v48  ;;  %v6325_v49 = vpack.c.bf16 %v3456_v18, %v3455_v47  ;;  %v3644_v47 = vld [vmem:[#allocation4 + $0x718] sm:$0xff]  ;;  %v3657_v18 = vrot.slane %v6980_v33, 5 }
 0x3fa   : > { %6256 = vmatpush3.bf16.msra.mxu1 %v6253_v48  ;;  %v7011_v48 = vrot.slane %v6978_v32, 3 }
 0x3fb   : > { %6258 = vmatprep.subr.bf16.mxu1 %v6257_v52 }
 0x3fc   : > { %v7016_v53 = vsel %vm1173_vm3, %v2913_v23, %v7011_v48  ;;  %v3658_v23 = vrot.slane %v6978_v32, 5 }
 0x3fd   : > { %5413 = vmatmul.mubr.f32.vlgmr.msra.gmra.mrb[6].mxu1 %v6983_v34 }
 0x3fe   : > { %6260 = vmatpush3.bf16.msra.mxu1 %v6257_v52  ;;  %5447 = vmatprep.mubr.f32.mxu1 %v6980_v33  ;;  %v3458_v52 = vld [vmem:[#allocation4 + $0x628] sm:$0xff] }
 0x3ff   : > { %6262 = vmatprep.subr.bf16.mxu1 %v6261_v50  ;;  %v6329_v54 = vpack.c.bf16 %v3458_v52, %v3457_v51  ;;  %v3645_v51 = vld [vmem:[#allocation4 + $0x720] sm:$0xff]  ;;  %v3646_v52 = vld [vmem:[#allocation4 + $0x728] sm:$0xff] }
 0x402   : > { %6264 = vmatpush3.bf16.msra.mxu1 %v6261_v50  ;;  %v3459_v50 = vld [vmem:[#allocation4 + $0x630] sm:$0xff] }
 0x403   : > { %6266 = vmatprep.subr.bf16.mxu1 %v6265_v59  ;;  %v6333_v58 = vpack.c.bf16 %v3460_v57, %v3459_v50  ;;  %v6393_v50 = vpack.c.bf16 %v3646_v52, %v3645_v51  ;;  %v3647_v57 = vld [vmem:[#allocation4 + $0x730] sm:$0xff] }
 0x404   : > { %v2161_v52 = vld [vmem:[#allocation4 + $0x10] sm:$0xff] }
 0x406   : > { %6268 = vmatpush3.bf16.msra.mxu1 %v6265_v59  ;;  %v3461_v59 = vld [vmem:[#allocation4 + $0x640] sm:$0xff] }
 0x407   : > { %6270 = vmatprep.subr.bf16.mxu1 %v6269_v62  ;;  %v6337_v61 = vpack.c.bf16 %v3462_v60, %v3461_v59  ;;  %v3649_v60 = vld [vmem:[#allocation4 + $0x740] sm:$0xff] }
 0x40a   : > { %6272 = vmatpush3.bf16.msra.mxu1 %v6269_v62  ;;  %v3463_v62 = vld [vmem:[#allocation4 + $0x650] sm:$0xff] }
 0x40b   : > { %6274 = vmatprep.subr.bf16.mxu1 %v6273_v2  ;;  %v6341_v1 = vpack.c.bf16 %v3464_v7, %v3463_v62  ;;  %v3651_v7 = vld [vmem:[#allocation4 + $0x750] sm:$0xff] }
 0x40e   : > { %6276 = vmatpush3.bf16.msra.mxu1 %v6273_v2  ;;  %v3465_v2 = vld [vmem:[#allocation4 + $0x660] sm:$0xff] }
 0x40f   : > { %6278 = vmatprep.subr.bf16.mxu1 %v6277_v6  ;;  %v6345_v5 = vpack.c.bf16 %v3466_v4, %v3465_v2  ;;  %v3653_v4 = vld [vmem:[#allocation4 + $0x760] sm:$0xff] }
 0x412   : > { %6280 = vmatpush3.bf16.msra.mxu1 %v6277_v6  ;;  %v3467_v6 = vld [vmem:[#allocation4 + $0x670] sm:$0xff] }
 0x413   : > { %6282 = vmatprep.subr.bf16.mxu1 %v6281_v0  ;;  %v6349_v9 = vpack.c.bf16 %v3468_v8, %v3467_v6  ;;  %v3655_v8 = vld [vmem:[#allocation4 + $0x770] sm:$0xff] }
 0x416   : > { %6284 = vmatpush3.bf16.msra.mxu1 %v6281_v0  ;;  %v3547_v0 = vld [vmem:[#allocation4 + $0x680] sm:$0xff] }
 0x417   : > { %6286 = vmatprep.subr.bf16.mxu1 %v6285_v28  ;;  %v6353_v12 = vpack.c.bf16 %v3548_v10, %v3547_v0  ;;  %v3740_v10 = vld [vmem:[#allocation4 + $0x780] sm:$0xff] }
 0x41a   : > { %6288 = vmatpush3.bf16.msra.mxu1 %v6285_v28  ;;  %v3549_v28 = vld [vmem:[#allocation4 + $0x690] sm:$0xff] }
 0x41b   : > { %6290 = vmatprep.subr.bf16.mxu1 %v6289_v15  ;;  %v6357_v16 = vpack.c.bf16 %v3550_v13, %v3549_v28  ;;  %v3742_v13 = vld [vmem:[#allocation4 + $0x790] sm:$0xff] }
 0x41d   : > { %5448 = vmatmul.mubr.f32.vlgmr.msra.gmra.mrb[6].mxu1 %v6978_v32 }
 0x41e   : > { %6292 = vmatpush3.bf16.msra.mxu1 %v6289_v15  ;;  %5482 = vmatprep.mubr.f32.mxu1 %v7000_v3  ;;  %v7021_v15 = vrot.slane %v6978_v32, 4 }
 0x41f   : > { %6294 = vmatprep.subr.bf16.mxu1 %v6293_v20 }
 0x420   : > { %v7026_v21 = vsel %vm1267_vm4, %v3012_v14, %v7021_v15  ;;  %v3743_v14 = vld [vmem:[#allocation4 + $0x798] sm:$0xff] }
 0x422   : > { %6296 = vmatpush3.bf16.msra.mxu1 %v6293_v20  ;;  %v3552_v20 = vld [vmem:[#allocation4 + $0x6a8] sm:$0xff] }
 0x423   : > { %6298 = vmatprep.subr.bf16.mxu1 %v6297_v24  ;;  %v6361_v22 = vpack.c.bf16 %v3552_v20, %v3551_v19  ;;  %v3757_v19 = vrot.slane %v6978_v32, 6  ;;  %v6421_v20 = vpack.c.bf16 %v3743_v14, %v3742_v13  ;;  %v2636_v13 = vld [vmem:[#allocation4 + $0x280] sm:$0xff]  ;;  %v2637_v14 = vld [vmem:[#allocation4 + $0x288] sm:$0xff] }
 0x426   : > { %6300 = vmatpush3.bf16.msra.mxu1 %v6297_v24  ;;  %v3553_v24 = vld [vmem:[#allocation4 + $0x6b0] sm:$0xff] }
 0x427   : > { %6302 = vmatprep.subr.bf16.mxu1 %v6301_v27  ;;  %v6365_v43 = vpack.c.bf16 %v3554_v25, %v3553_v24  ;;  %v3745_v24 = vld [vmem:[#allocation4 + $0x7a8] sm:$0xff] }
 0x42a   : > { %6304 = vmatpush3.bf16.msra.mxu1 %v6301_v27  ;;  %v3555_v27 = vld [vmem:[#allocation4 + $0x6c0] sm:$0xff] }
 0x42b   : > { %6306 = vmatprep.subr.bf16.mxu1 %v6305_v31  ;;  %v6369_v30 = vpack.c.bf16 %v3556_v29, %v3555_v27  ;;  %v3746_v27 = vld [vmem:[#allocation4 + $0x7b0] sm:$0xff]  ;;  %v3747_v29 = vld [vmem:[#allocation4 + $0x7b8] sm:$0xff] }
 0x42e   : > { %6308 = vmatpush3.bf16.msra.mxu1 %v6305_v31  ;;  %v3557_v31 = vld [vmem:[#allocation4 + $0x6d0] sm:$0xff] }
 0x42f   : > { %6310 = vmatprep.subr.bf16.mxu1 %v6309_v37  ;;  %v6373_v36 = vpack.c.bf16 %v3558_v35, %v3557_v31  ;;  %v3748_v31 = vld [vmem:[#allocation4 + $0x7c0] sm:$0xff]  ;;  %v3749_v35 = vld [vmem:[#allocation4 + $0x7c8] sm:$0xff] }
 0x432   : > { %6312 = vmatpush3.bf16.msra.mxu1 %v6309_v37  ;;  %v3559_v37 = vld [vmem:[#allocation4 + $0x6e0] sm:$0xff] }
 0x433   : > { %6314 = vmatprep.subr.bf16.mxu1 %v6313_v40  ;;  %v6377_v39 = vpack.c.bf16 %v3560_v38, %v3559_v37  ;;  %v3750_v37 = vld [vmem:[#allocation4 + $0x7d0] sm:$0xff]  ;;  %v3751_v38 = vld [vmem:[#allocation4 + $0x7d8] sm:$0xff] }
 0x436   : > { %6316 = vmatpush3.bf16.msra.mxu1 %v6313_v40  ;;  %v3561_v40 = vld [vmem:[#allocation4 + $0x6f0] sm:$0xff] }
 0x437   : > { %6318 = vmatprep.subr.bf16.mxu1 %v6317_v44  ;;  %v6381_v42 = vpack.c.bf16 %v3562_v41, %v3561_v40  ;;  %v3752_v40 = vld [vmem:[#allocation4 + $0x7e0] sm:$0xff]  ;;  %v3753_v41 = vld [vmem:[#allocation4 + $0x7e8] sm:$0xff] }
 0x43a   : > { %6320 = vmatpush3.bf16.msra.mxu1 %v6317_v44  ;;  %v3641_v44 = vld [vmem:[#allocation4 + $0x700] sm:$0xff] }
 0x43b   : > { %6322 = vmatprep.subr.bf16.mxu1 %v6321_v17  ;;  %v6385_v46 = vpack.c.bf16 %v3642_v45, %v3641_v44  ;;  %v2159_v44 = vld [vmem:[#allocation4] sm:$0xff]  ;;  %v2160_v45 = vld [vmem:[#allocation4 + $0x8] sm:$0xff] }
 0x43d   : > { %5483 = vmatmul.mubr.f32.vlgmr.msra.gmra.mrb[6].mxu1 %v6995_v63 }
 0x43e   : > { %6324 = vmatpush3.bf16.msra.mxu1 %v6321_v17  ;;  %5517 = vmatprep.mubr.f32.mxu1 %v7016_v53  ;;  %v3643_v17 = vld [vmem:[#allocation4 + $0x710] sm:$0xff] }
 0x43f   : > { %6326 = vmatprep.subr.bf16.mxu1 %v6325_v49 }
 0x442   : > { %6328 = vmatpush3.bf16.msra.mxu1 %v6325_v49  ;;  %v6389_v49 = vpack.c.bf16 %v3644_v47, %v3643_v17  ;;  %v3754_v17 = vld [vmem:[#allocation4 + $0x7f0] sm:$0xff]  ;;  %v3755_v47 = vld [vmem:[#allocation4 + $0x7f8] sm:$0xff] }
 0x443   : > { %6330 = vmatprep.subr.bf16.mxu1 %v6329_v54  ;;  %v6445_v51 = vpack.c.bf16 %v3755_v47, %v3754_v17  ;;  %v2620_v17 = vld [vmem:[#allocation4 + $0x208] sm:$0xff] }
 0x446   : > { %6332 = vmatpush3.bf16.msra.mxu1 %v6329_v54  ;;  %v3659_v54 = vsel %vm1876_vm10, %v3657_v18, %v3658_v23 }
 0x447   : > { %6334 = vmatprep.subr.bf16.mxu1 %v6333_v58 }
 0x44a   : > { %6336 = vmatpush3.bf16.msra.mxu1 %v6333_v58  ;;  %v3648_v58 = vld [vmem:[#allocation4 + $0x738] sm:$0xff] }
 0x44b   : > { %6338 = vmatprep.subr.bf16.mxu1 %v6337_v61  ;;  %v6397_v59 = vpack.c.bf16 %v3648_v58, %v3647_v57  ;;  %v2163_v57 = vld [vmem:[#allocation4 + $0x20] sm:$0xff]  ;;  %v2164_v58 = vld [vmem:[#allocation4 + $0x28] sm:$0xff] }
 0x44e   : > { %6340 = vmatpush3.bf16.msra.mxu1 %v6337_v61  ;;  %v3650_v61 = vld [vmem:[#allocation4 + $0x748] sm:$0xff] }
 0x44f   : > { %6342 = vmatprep.subr.bf16.mxu1 %v6341_v1  ;;  %v6401_v62 = vpack.c.bf16 %v3650_v61, %v3649_v60  ;;  %v6035_v60 = vpack.c.bf16 %v2164_v58, %v2163_v57  ;;  %v2166_v61 = vld [vmem:[#allocation4 + $0x38] sm:$0xff] }
 0x450   : > { %v2626_v57 = vld [vmem:[#allocation4 + $0x238] sm:$0xff] }
 0x452   : > { %6344 = vmatpush3.bf16.msra.mxu1 %v6341_v1  ;;  %v3652_v1 = vld [vmem:[#allocation4 + $0x758] sm:$0xff] }
 0x453   : > { %6346 = vmatprep.subr.bf16.mxu1 %v6345_v5  ;;  %v6405_v2 = vpack.c.bf16 %v3652_v1, %v3651_v7  ;;  %v2167_v7 = vld [vmem:[#allocation4 + $0x40] sm:$0xff]  ;;  %v2168_v1 = vld [vmem:[#allocation4 + $0x48] sm:$0xff] }
 0x456   : > { %6348 = vmatpush3.bf16.msra.mxu1 %v6345_v5  ;;  %v3654_v5 = vld [vmem:[#allocation4 + $0x768] sm:$0xff] }
 0x457   : > { %6350 = vmatprep.subr.bf16.mxu1 %v6349_v9  ;;  %v6409_v6 = vpack.c.bf16 %v3654_v5, %v3653_v4  ;;  %v2169_v4 = vld [vmem:[#allocation4 + $0x50] sm:$0xff]  ;;  %v2170_v5 = vld [vmem:[#allocation4 + $0x58] sm:$0xff] }
 0x45a   : > { %6352 = vmatpush3.bf16.msra.mxu1 %v6349_v9  ;;  %v3656_v9 = vld [vmem:[#allocation4 + $0x778] sm:$0xff] }
 0x45b   : > { %6354 = vmatprep.subr.bf16.mxu1 %v6353_v12  ;;  %v6413_v0 = vpack.c.bf16 %v3656_v9, %v3655_v8  ;;  %v2171_v8 = vld [vmem:[#allocation4 + $0x60] sm:$0xff]  ;;  %v2172_v9 = vld [vmem:[#allocation4 + $0x68] sm:$0xff] }
 0x45d   : > { %5518 = vmatmul.mubr.f32.vlgmr.msra.gmra.mrb[6].mxu1 %v7011_v48 }
 0x45e   : > { %6356 = vmatpush3.bf16.msra.mxu1 %v6353_v12  ;;  %5552 = vmatprep.mubr.f32.mxu1 %v7026_v21  ;;  %v3741_v12 = vld [vmem:[#allocation4 + $0x788] sm:$0xff] }
 0x45f   : > { %6358 = vmatprep.subr.bf16.mxu1 %v6357_v16  ;;  %v6417_v28 = vpack.c.bf16 %v3741_v12, %v3740_v10  ;;  %v2173_v10 = vld [vmem:[#allocation4 + $0x70] sm:$0xff]  ;;  %v2174_v12 = vld [vmem:[#allocation4 + $0x78] sm:$0xff] }
 0x462   : > { %6360 = vmatpush3.bf16.msra.mxu1 %v6357_v16  ;;  %v3756_v16 = vrot.slane %v6980_v33, 6 }
 0x463   : > { %6362 = vmatprep.subr.bf16.mxu1 %v6361_v22 }
 0x464   : > { %v3758_v25 = vsel %vm1970_vm11, %v3756_v16, %v3757_v19  ;;  %v6059_v16 = vpack.c.bf16 %v2637_v14, %v2636_v13  ;;  %v2808_v13 = vld [vmem:[#allocation4 + $0x328] sm:$0xff] }
 0x466   : > { %6364 = vmatpush3.bf16.msra.mxu1 %v6361_v22  ;;  %v3744_v22 = vld [vmem:[#allocation4 + $0x7a0] sm:$0xff] }
 0x467   : > { %6366 = vmatprep.subr.bf16.mxu1 %v6365_v43 }
 0x46a   : > { %6368 = vmatpush3.bf16.msra.mxu1 %v6365_v43  ;;  %v6425_v43 = vpack.c.bf16 %v3745_v24, %v3744_v22  ;;  %v2640_v24 = vld [vmem:[#allocation4 + $0x2a0] sm:$0xff] }
 0x46b   : > { %6370 = vmatprep.subr.bf16.mxu1 %v6369_v30 }
 0x46e   : > { %6372 = vmatpush3.bf16.msra.mxu1 %v6369_v30  ;;  %v6429_v30 = vpack.c.bf16 %v3747_v29, %v3746_v27  ;;  %v2642_v27 = vld [vmem:[#allocation4 + $0x2b0] sm:$0xff]  ;;  %v2643_v29 = vld [vmem:[#allocation4 + $0x2b8] sm:$0xff] }
 0x46f   : > { %6374 = vmatprep.subr.bf16.mxu1 %v6373_v36 }
 0x472   : > { %6376 = vmatpush3.bf16.msra.mxu1 %v6373_v36  ;;  %v6433_v36 = vpack.c.bf16 %v3749_v35, %v3748_v31  ;;  %v2644_v31 = vld [vmem:[#allocation4 + $0x2c0] sm:$0xff]  ;;  %v2645_v35 = vld [vmem:[#allocation4 + $0x2c8] sm:$0xff] }
 0x473   : > { %6378 = vmatprep.subr.bf16.mxu1 %v6377_v39 }
 0x476   : > { %6380 = vmatpush3.bf16.msra.mxu1 %v6377_v39  ;;  %v6437_v39 = vpack.c.bf16 %v3751_v38, %v3750_v37  ;;  %v2646_v37 = vld [vmem:[#allocation4 + $0x2d0] sm:$0xff]  ;;  %v2647_v38 = vld [vmem:[#allocation4 + $0x2d8] sm:$0xff] }
 0x477   : > { %6382 = vmatprep.subr.bf16.mxu1 %v6381_v42 }
 0x47a   : > { %6384 = vmatpush3.bf16.msra.mxu1 %v6381_v42  ;;  %v6441_v42 = vpack.c.bf16 %v3753_v41, %v3752_v40  ;;  %v2648_v40 = vld [vmem:[#allocation4 + $0x2e0] sm:$0xff]  ;;  %v2649_v41 = vld [vmem:[#allocation4 + $0x2e8] sm:$0xff] }
 0x47b   : > { %6386 = vmatprep.subr.bf16.mxu1 %v6385_v46 }
 0x47d   : > { %5553 = vmatmul.mubr.f32.vlgmr.msra.gmra.mrb[6].mxu1 %v7021_v15 }
 0x47e   : > { %6388 = vmatpush3.bf16.msra.mxu1 %v6385_v46  ;;  %5587 = vmatprep.mubr.f32.mxu1 %v3659_v54  ;;  %v2162_v54 = vld [vmem:[#allocation4 + $0x18] sm:$0xff] }
 0x47f   : > { %6390 = vmatprep.subr.bf16.mxu1 %v6389_v49 }
 0x482   : > { %6392 = vmatpush3.bf16.msra.mxu1 %v6389_v49  ;;  %v6027_v49 = vpack.c.bf16 %v2160_v45, %v2159_v44  ;;  %v2651_v44 = vld [vmem:[#allocation4 + $0x2f8] sm:$0xff] }
 0x483   : > { %6394 = vmatprep.subr.bf16.mxu1 %v6393_v50 }
 0x486   : > { %6396 = vmatpush3.bf16.msra.mxu1 %v6393_v50  ;;  %v6031_v50 = vpack.c.bf16 %v2162_v54, %v2161_v52  ;;  %v2624_v52 = vld [vmem:[#allocation4 + $0x228] sm:$0xff] }
 0x487   : > { %6398 = vmatprep.subr.bf16.mxu1 %v6397_v59 }
 0x48a   : > { %6400 = vmatpush3.bf16.msra.mxu1 %v6397_v59  ;;  %v6569_v59 = vld [vmem:[%s7131_s1 + $0x8] sm:$0xff] }
 0x48b   : > { %6402 = vmatprep.subr.bf16.mxu1 %v6401_v62 }
 0x48e   : > { %6404 = vmatpush3.bf16.msra.mxu1 %v6401_v62  ;;  %v6039_v62 = vpack.c.bf16 %v2166_v61, %v2165_v55  ;;  %v2629_v61 = vld [vmem:[#allocation4 + $0x250] sm:$0xff] }
 0x48f   : > { %6406 = vmatprep.subr.bf16.mxu1 %v6405_v2 }
 0x492   : > { %6408 = vmatpush3.bf16.msra.mxu1 %v6405_v2  ;;  %v6043_v2 = vpack.c.bf16 %v2168_v1, %v2167_v7  ;;  %v2631_v7 = vld [vmem:[#allocation4 + $0x260] sm:$0xff]  ;;  %v2632_v1 = vld [vmem:[#allocation4 + $0x268] sm:$0xff] }
 0x493   : > { %6410 = vmatprep.subr.bf16.mxu1 %v6409_v6 }
 0x496   : > { %6412 = vmatpush3.bf16.msra.mxu1 %v6409_v6  ;;  %v6047_v6 = vpack.c.bf16 %v2170_v5, %v2169_v4  ;;  %v2634_v4 = vld [vmem:[#allocation4 + $0x278] sm:$0xff] }
 0x497   : > { %6414 = vmatprep.subr.bf16.mxu1 %v6413_v0 }
 0x49a   : > { %6416 = vmatpush3.bf16.msra.mxu1 %v6413_v0  ;;  %v6051_v0 = vpack.c.bf16 %v2172_v9, %v2171_v8  ;;  %v2804_v8 = vld [vmem:[#allocation4 + $0x308] sm:$0xff] }
 0x49b   : > { %6418 = vmatprep.subr.bf16.mxu1 %v6417_v28 }
 0x49d   : > { %5588 = vmatmul.mubr.f32.vlgmr.msra.gmra.mrb[6].mxu1 %v3658_v23 }
 0x49e   : > { %6420 = vmatpush3.bf16.msra.mxu1 %v6417_v28  ;;  %5622 = vmatprep.mubr.f32.mxu1 %v3758_v25  ;;  %v6055_v28 = vpack.c.bf16 %v2174_v12, %v2173_v10  ;;  %v2641_v25 = vld [vmem:[#allocation4 + $0x2a8] sm:$0xff]  ;;  %v2806_v10 = vld [vmem:[#allocation4 + $0x318] sm:$0xff] }
 0x49f   : > { %6422 = vmatprep.subr.bf16.mxu1 %v6421_v20 }
 0x4a2   : > { %6424 = vmatpush3.bf16.msra.mxu1 %v6421_v20  ;;  %v2639_v20 = vld [vmem:[#allocation4 + $0x298] sm:$0xff] }
 0x4a3   : > { %6426 = vmatprep.subr.bf16.mxu1 %v6425_v43 }
 0x4a6   : > { %6428 = vmatpush3.bf16.msra.mxu1 %v6425_v43  ;;  %v6067_v43 = vpack.c.bf16 %v2641_v25, %v2640_v24  ;;  %v2812_v24 = vld [vmem:[#allocation4 + $0x348] sm:$0xff] }
 0x4a7   : > { %6430 = vmatprep.subr.bf16.mxu1 %v6429_v30 }
 0x4aa   : > { %6432 = vmatpush3.bf16.msra.mxu1 %v6429_v30  ;;  %v6071_v30 = vpack.c.bf16 %v2643_v29, %v2642_v27  ;;  %v2814_v27 = vld [vmem:[#allocation4 + $0x358] sm:$0xff]  ;;  %v2815_v29 = vld [vmem:[#allocation4 + $0x360] sm:$0xff] }
 0x4ab   : > { %6434 = vmatprep.subr.bf16.mxu1 %v6433_v36 }
 0x4ae   : > { %6436 = vmatpush3.bf16.msra.mxu1 %v6433_v36  ;;  %v6075_v36 = vpack.c.bf16 %v2645_v35, %v2644_v31  ;;  %v2817_v31 = vld [vmem:[#allocation4 + $0x370] sm:$0xff]  ;;  %v2818_v35 = vld [vmem:[#allocation4 + $0x378] sm:$0xff] }
 0x4af   : > { %6438 = vmatprep.subr.bf16.mxu1 %v6437_v39 }
 0x4b0   : > { %v5155_v46 = vpop.f32.mrb[4].mxu1 }
 0x4b1   : > { %v2454_v18 = vpop.f32.mrb[5].mxu1 }
 0x4b2   : > { %v6021_v23 = vpack.c.bf16 %v5155_v46, %v2454_v18  ;;  %6440 = vmatpush3.bf16.msra.mxu1 %v6437_v39  ;;  %v6079_v39 = vpack.c.bf16 %v2647_v38, %v2646_v37  ;;  %v2619_v46 = vld [vmem:[#allocation4 + $0x200] sm:$0xff]  ;;  %v2621_v18 = vld [vmem:[#allocation4 + $0x210] sm:$0xff]  ;;  %v2898_v38 = vld [vmem:[#allocation4 + $0x388] sm:$0xff] }
 0x4b3   : > { %6442 = vmatprep.subr.bf16.mxu1 %v6441_v42  ;;  %v6091_v47 = vpack.c.bf16 %v2620_v17, %v2619_v46  ;;  %v2897_v37 = vld [vmem:[#allocation4 + $0x380] sm:$0xff]  ;;  %v2903_v46 = vld [vmem:[#allocation4 + $0x3b0] sm:$0xff]  ;;  %v2904_v17 = vld [vmem:[#allocation4 + $0x3b8] sm:$0xff] }
 0x4b4   : > { %6023 = vmatprep.subr.msk.bf16.mxu0 %vm6891_vm7, %v6021_v23 }
 0x4b5   : > { %6026 = vmatpush3.bf16.msk.msra.mxu0 %vm6891_vm7, %v6021_v23  ;;  %v2622_v23 = vld [vmem:[#allocation4 + $0x218] sm:$0xff] }
 0x4b6   : > { %6444 = vmatpush3.bf16.msra.mxu1 %v6441_v42  ;;  %6028 = vmatprep.subr.bf16.mxu0 %v6027_v49  ;;  %v2650_v42 = vld [vmem:[#allocation4 + $0x2f0] sm:$0xff] }
 0x4b7   : > { %6446 = vmatprep.subr.bf16.mxu1 %v6445_v51  ;;  %v6087_v45 = vpack.c.bf16 %v2651_v44, %v2650_v42  ;;  %v2901_v42 = vld [vmem:[#allocation4 + $0x3a0] sm:$0xff]  ;;  %v2902_v44 = vld [vmem:[#allocation4 + $0x3a8] sm:$0xff] }
 0x4b8   : > { %5161 = vmatmul.mubr.msk.f32.vlgmr.msra.gmra.mrb[6].mxu0 %vm750_vm5, %v6569_v59  ;;  %v2627_v59 = vld [vmem:[#allocation4 + $0x240] sm:$0xff] }
 0x4b9   : > { %6030 = vmatpush3.bf16.msra.mxu0 %v6027_v49  ;;  %5195 = vmatprep.mubr.f32.mxu0 %v6980_v33  ;;  %v6095_v49 = vpack.c.bf16 %v2622_v23, %v2621_v18  ;;  %v2905_v18 = vld [vmem:[#allocation4 + $0x3c0] sm:$0xff]  ;;  %v2906_v23 = vld [vmem:[#allocation4 + $0x3c8] sm:$0xff] }
 0x4ba   : > { %6448 = vmatpush3.bf16.msra.mxu1 %v6445_v51  ;;  %6032 = vmatprep.subr.bf16.mxu0 %v6031_v50  ;;  %v2623_v51 = vld [vmem:[#allocation4 + $0x220] sm:$0xff] }
 0x4bb   : > { %v6099_v54 = vpack.c.bf16 %v2624_v52, %v2623_v51  ;;  %v2907_v51 = vld [vmem:[#allocation4 + $0x3d0] sm:$0xff]  ;;  %v2908_v52 = vld [vmem:[#allocation4 + $0x3d8] sm:$0xff] }
 0x4bd   : > { %6034 = vmatpush3.bf16.msra.mxu0 %v6031_v50  ;;  %5623 = vmatmul.mubr.f32.vlgmr.msra.gmra.mrb[6].mxu1 %v3757_v19  ;;  %v2638_v19 = vld [vmem:[#allocation4 + $0x290] sm:$0xff] }
 0x4be   : > { %6036 = vmatprep.subr.bf16.mxu0 %v6035_v60  ;;  %v6063_v22 = vpack.c.bf16 %v2639_v20, %v2638_v19  ;;  %v2625_v50 = vld [vmem:[#allocation4 + $0x230] sm:$0xff]  ;;  %v2810_v19 = vld [vmem:[#allocation4 + $0x338] sm:$0xff] }
 0x4bf   : > { %v6103_v58 = vpack.c.bf16 %v2626_v57, %v2625_v50  ;;  %v2910_v50 = vld [vmem:[#allocation4 + $0x3e8] sm:$0xff]  ;;  %v2911_v57 = vld [vmem:[#allocation4 + $0x3f0] sm:$0xff] }
 0x4c1   : > { %6038 = vmatpush3.bf16.msra.mxu0 %v6035_v60  ;;  %v2628_v60 = vld [vmem:[#allocation4 + $0x248] sm:$0xff] }
 0x4c2   : > { %6040 = vmatprep.subr.bf16.mxu0 %v6039_v62  ;;  %v6107_v55 = vpack.c.bf16 %v2628_v60, %v2627_v59  ;;  %v2996_v60 = vld [vmem:[#allocation4 + $0x400] sm:$0xff] }
 0x4c5   : > { %6042 = vmatpush3.bf16.msra.mxu0 %v6039_v62  ;;  %v2630_v62 = vld [vmem:[#allocation4 + $0x258] sm:$0xff] }
 0x4c6   : > { %6044 = vmatprep.subr.bf16.mxu0 %v6043_v2 }
 0x4c9   : > { %6046 = vmatpush3.bf16.msra.mxu0 %v6043_v2  ;;  %v2633_v2 = vld [vmem:[#allocation4 + $0x270] sm:$0xff] }
 0x4ca   : > { %6048 = vmatprep.subr.bf16.mxu0 %v6047_v6  ;;  %v6119_v5 = vpack.c.bf16 %v2634_v4, %v2633_v2  ;;  %v3002_v4 = vld [vmem:[#allocation4 + $0x430] sm:$0xff] }
 0x4cd   : > { %6050 = vmatpush3.bf16.msra.mxu0 %v6047_v6  ;;  %v2803_v6 = vld [vmem:[#allocation4 + $0x300] sm:$0xff] }
 0x4ce   : > { %6052 = vmatprep.subr.bf16.mxu0 %v6051_v0  ;;  %v6123_v9 = vpack.c.bf16 %v2804_v8, %v2803_v6  ;;  %v3004_v8 = vld [vmem:[#allocation4 + $0x440] sm:$0xff] }
 0x4d1   : > { %6054 = vmatpush3.bf16.msra.mxu0 %v6051_v0  ;;  %v2805_v0 = vld [vmem:[#allocation4 + $0x310] sm:$0xff] }
 0x4d2   : > { %6056 = vmatprep.subr.bf16.mxu0 %v6055_v28  ;;  %v6127_v12 = vpack.c.bf16 %v2806_v10, %v2805_v0  ;;  %v3006_v10 = vld [vmem:[#allocation4 + $0x450] sm:$0xff] }
 0x4d5   : > { %6058 = vmatpush3.bf16.msra.mxu0 %v6055_v28  ;;  %v2807_v28 = vld [vmem:[#allocation4 + $0x320] sm:$0xff] }
 0x4d6   : > { %6060 = vmatprep.subr.bf16.mxu0 %v6059_v16  ;;  %v6131_v14 = vpack.c.bf16 %v2808_v13, %v2807_v28  ;;  %v3008_v28 = vld [vmem:[#allocation4 + $0x460] sm:$0xff]  ;;  %v3009_v13 = vld [vmem:[#allocation4 + $0x468] sm:$0xff] }
 0x4d8   : > { %5196 = vmatmul.mubr.f32.vlgmr.msra.gmra.mrb[6].mxu0 %v6978_v32 }
 0x4d9   : > { %6062 = vmatpush3.bf16.msra.mxu0 %v6059_v16  ;;  %5230 = vmatprep.mubr.f32.mxu0 %v6988_v26  ;;  %v6083_v26 = vpack.c.bf16 %v2649_v41, %v2648_v40  ;;  %v2809_v16 = vld [vmem:[#allocation4 + $0x330] sm:$0xff]  ;;  %v2900_v41 = vld [vmem:[#allocation4 + $0x398] sm:$0xff] }
 0x4da   : > { %6064 = vmatprep.subr.bf16.mxu0 %v6063_v22  ;;  %v6135_v20 = vpack.c.bf16 %v2810_v19, %v2809_v16  ;;  %v2899_v40 = vld [vmem:[#allocation4 + $0x390] sm:$0xff]  ;;  %v3011_v16 = vld [vmem:[#allocation4 + $0x478] sm:$0xff] }
 0x4dd   : > { %6066 = vmatpush3.bf16.msra.mxu0 %v6063_v22  ;;  %v2811_v22 = vld [vmem:[#allocation4 + $0x340] sm:$0xff] }
 0x4de   : > { %6068 = vmatprep.subr.bf16.mxu0 %v6067_v43  ;;  %v6139_v25 = vpack.c.bf16 %v2812_v24, %v2811_v22 }
 0x4e1   : > { %6070 = vmatpush3.bf16.msra.mxu0 %v6067_v43  ;;  %v2813_v43 = vld [vmem:[#allocation4 + $0x350] sm:$0xff] }
 0x4e2   : > { %6072 = vmatprep.subr.bf16.mxu0 %v6071_v30 }
 0x4e5   : > { %6074 = vmatpush3.bf16.msra.mxu0 %v6071_v30  ;;  %v2816_v30 = vld [vmem:[#allocation4 + $0x368] sm:$0xff] }
 0x4e6   : > { %6076 = vmatprep.subr.bf16.mxu0 %v6075_v36 }
 0x4e9   : > { %6078 = vmatpush3.bf16.msra.mxu0 %v6075_v36  ;;  %v6151_v36 = vpack.c.bf16 %v2818_v35, %v2817_v31  ;;  %v6572_v31 = vld [vmem:[%s7133_s3] sm:$0xff]  ;;  %v3930_v35 = vld [vmem:[%s7138_s8 + $0x18] sm:$0xff] }
 0x4ea   : > { %6080 = vmatprep.subr.bf16.mxu0 %v6079_v39 }
 0x4ed   : > { %6082 = vmatpush3.bf16.msra.mxu0 %v6079_v39  ;;  %v6155_v39 = vpack.c.bf16 %v2898_v38, %v2897_v37  ;;  %v3932_v37 = vld [vmem:[%s7138_s8 + $0x28] sm:$0xff] }
 0x4ee   : > { %6084 = vmatprep.subr.bf16.mxu0 %v6083_v26  ;;  %v6573_v38 = vld [vmem:[%s7133_s3 + $0x8] sm:$0xff] }
 0x4f1   : > { %6086 = vmatpush3.bf16.msra.mxu0 %v6083_v26  ;;  %v6159_v26 = vpack.c.bf16 %v2900_v41, %v2899_v40  ;;  %v6463_v40 = vpack.c.bf16 %v3932_v37, %v3931_v56  ;;  %v3933_v41 = vld [vmem:[%s7138_s8 + $0x30] sm:$0xff] }
 0x4f2   : > { %6088 = vmatprep.subr.bf16.mxu0 %v6087_v45 }
 0x4f5   : > { %6090 = vmatpush3.bf16.msra.mxu0 %v6087_v45  ;;  %v6163_v45 = vpack.c.bf16 %v2902_v44, %v2901_v42  ;;  %v6575_v44 = vld [vmem:[%s6810_s19 + $0x8] sm:$0xff] }
 0x4f6   : > { %6092 = vmatprep.subr.bf16.mxu0 %v6091_v47 }
 0x4f8   : > { %5231 = vmatmul.mubr.f32.vlgmr.msra.gmra.mrb[8].mxu0 %v6983_v34  ;;  %v6111_v34 = vpack.c.bf16 %v2630_v62, %v2629_v61  ;;  %v2998_v62 = vld [vmem:[#allocation4 + $0x410] sm:$0xff] }
 0x4f9   : > { %6094 = vmatpush3.bf16.msra.mxu0 %v6091_v47  ;;  %5265 = vmatprep.mubr.f32.mxu0 %v6980_v33  ;;  %v6115_v33 = vpack.c.bf16 %v2632_v1, %v2631_v7  ;;  %v6167_v47 = vpack.c.bf16 %v2904_v17, %v2903_v46  ;;  %v3000_v1 = vld [vmem:[#allocation4 + $0x420] sm:$0xff] }
 0x4fa   : > { %6096 = vmatprep.subr.bf16.mxu0 %v6095_v49  ;;  %v4237_v17 = vld [vmem:[%s7139_s9] ss:$0 sm:$0xff] }
 0x4fd   : > { %6098 = vmatpush3.bf16.msra.mxu0 %v6095_v49  ;;  %v6171_v49 = vpack.c.bf16 %v2906_v23, %v2905_v18 }
 0x4fe   : > { %6100 = vmatprep.subr.bf16.mxu0 %v6099_v54 }
 0x501   : > { %6102 = vmatpush3.bf16.msra.mxu0 %v6099_v54  ;;  %v2909_v54 = vld [vmem:[#allocation4 + $0x3e0] sm:$0xff] }
 0x502   : > { %6104 = vmatprep.subr.bf16.mxu0 %v6103_v58 }
 0x505   : > { %6106 = vmatpush3.bf16.msra.mxu0 %v6103_v58  ;;  %v2912_v58 = vld [vmem:[#allocation4 + $0x3f8] sm:$0xff] }
 0x506   : > { %6108 = vmatprep.subr.bf16.mxu0 %v6107_v55  ;;  %v6183_v59 = vpack.c.bf16 %v2912_v58, %v2911_v57 }
 0x509   : > { %6110 = vmatpush3.bf16.msra.mxu0 %v6107_v55  ;;  %v2997_v55 = vld [vmem:[#allocation4 + $0x408] sm:$0xff] }
 0x50a   : > { %6112 = vmatprep.subr.bf16.mxu0 %v6111_v34  ;;  %v6187_v61 = vpack.c.bf16 %v2997_v55, %v2996_v60 }
 0x50d   : > { %6114 = vmatpush3.bf16.msra.mxu0 %v6111_v34  ;;  %v2999_v34 = vld [vmem:[#allocation4 + $0x418] sm:$0xff] }
 0x50e   : > { %6116 = vmatprep.subr.bf16.mxu0 %v6115_v33  ;;  %v6191_v7 = vpack.c.bf16 %v2999_v34, %v2998_v62 }
 0x511   : > { %6118 = vmatpush3.bf16.msra.mxu0 %v6115_v33  ;;  %v3001_v33 = vld [vmem:[#allocation4 + $0x428] sm:$0xff] }
 0x512   : > { %6120 = vmatprep.subr.bf16.mxu0 %v6119_v5  ;;  %v6195_v2 = vpack.c.bf16 %v3001_v33, %v3000_v1 }
 0x515   : > { %6122 = vmatpush3.bf16.msra.mxu0 %v6119_v5  ;;  %v3003_v5 = vld [vmem:[#allocation4 + $0x438] sm:$0xff] }
 0x516   : > { %6124 = vmatprep.subr.bf16.mxu0 %v6123_v9  ;;  %v6199_v6 = vpack.c.bf16 %v3003_v5, %v3002_v4 }
 0x518   : > { %5266 = vmatmul.mubr.f32.vlgmr.msra.gmra.mrb[8].mxu0 %v6978_v32  ;;  %v6143_v32 = vpack.c.bf16 %v2814_v27, %v2813_v43 }
 0x519   : > { %6126 = vmatpush3.bf16.msra.mxu0 %v6123_v9  ;;  %5300 = vmatprep.mubr.f32.mxu0 %v7000_v3  ;;  %v6147_v3 = vpack.c.bf16 %v2816_v30, %v2815_v29  ;;  %v3005_v9 = vld [vmem:[#allocation4 + $0x448] sm:$0xff]  ;;  %v3927_v29 = vld [vmem:[%s7138_s8] sm:$0xff] }
 0x51a   : > { %6128 = vmatprep.subr.bf16.mxu0 %v6127_v12  ;;  %v6203_v0 = vpack.c.bf16 %v3005_v9, %v3004_v8 }
 0x51d   : > { %6130 = vmatpush3.bf16.msra.mxu0 %v6127_v12  ;;  %v3007_v12 = vld [vmem:[#allocation4 + $0x458] sm:$0xff] }
 0x51e   : > { %6132 = vmatprep.subr.bf16.mxu0 %v6131_v14 }
 0x521   : > { %6134 = vmatpush3.bf16.msra.mxu0 %v6131_v14  ;;  %v3010_v14 = vld [vmem:[#allocation4 + $0x470] sm:$0xff] }
 0x522   : > { %6136 = vmatprep.subr.bf16.mxu0 %v6135_v20  ;;  %v6215_v19 = vpack.c.bf16 %v3011_v16, %v3010_v14 }
 0x525   : > { %6138 = vmatpush3.bf16.msra.mxu0 %v6135_v20  ;;  %v6570_v20 = vld [vmem:[%s7132_s2] sm:$0xff] }
 0x526   : > { %6140 = vmatprep.subr.bf16.mxu0 %v6139_v25 }
 0x529   : > { %6142 = vmatpush3.bf16.msra.mxu0 %v6139_v25 }
 0x52a   : > { %6144 = vmatprep.subr.bf16.mxu0 %v6143_v32 }
 0x52d   : > { %6146 = vmatpush3.bf16.msra.mxu0 %v6143_v32 }
 0x52e   : > { %6148 = vmatprep.subr.bf16.mxu0 %v6147_v3 }
 0x531   : > { %6150 = vmatpush3.bf16.msra.mxu0 %v6147_v3  ;;  %v6571_v3 = vld [vmem:[%s7132_s2 + $0x8] sm:$0xff] }
 0x532   : > { %6152 = vmatprep.subr.bf16.mxu0 %v6151_v36 }
 0x535   : > { %6154 = vmatpush3.bf16.msra.mxu0 %v6151_v36  ;;  %v6459_v36 = vpack.c.bf16 %v3930_v35, %v3929_v11 }
 0x536   : > { %6156 = vmatprep.subr.bf16.mxu0 %v6155_v39 }
 0x538   : > { %5301 = vmatmul.mubr.f32.vlgmr.msra.gmra.mrb[8].mxu0 %v6995_v63  ;;  %v6175_v63 = vpack.c.bf16 %v2908_v52, %v2907_v51 }
 0x539   : > { %6158 = vmatpush3.bf16.msra.mxu0 %v6155_v39  ;;  %5335 = vmatprep.mubr.f32.mxu0 %v7016_v53  ;;  %v6179_v53 = vpack.c.bf16 %v2910_v50, %v2909_v54  ;;  %v6574_v39 = vld [vmem:[%s6810_s19] sm:$0xff]  ;;  %s454_s19 = scalar_lea.vmem %s7140_s10, %s4242_s25 }
 0x53a   : > { %6160 = vmatprep.subr.bf16.mxu0 %v6159_v26 }
 0x53d   : > { %6162 = vmatpush3.bf16.msra.mxu0 %v6159_v26  ;;  %v3934_v26 = vld [vmem:[%s7138_s8 + $0x38] sm:$0xff] }
 0x53e   : > { %6164 = vmatprep.subr.bf16.mxu0 %v6163_v45  ;;  %v6467_v42 = vpack.c.bf16 %v3934_v26, %v3933_v41 }
 0x541   : > { %6166 = vmatpush3.bf16.msra.mxu0 %v6163_v45  ;;  %v4236_v45 = vld [vmem:[%s7137_s7] ss:$0 sm:$0xff] }
 0x542   : > { %6168 = vmatprep.subr.bf16.mxu0 %v6167_v47 }
 0x545   : > { %6170 = vmatpush3.bf16.msra.mxu0 %v6167_v47 }
 0x546   : > { %6172 = vmatprep.subr.bf16.mxu0 %v6171_v49 }
 0x549   : > { %6174 = vmatpush3.bf16.msra.mxu0 %v6171_v49 }
 0x54a   : > { %6176 = vmatprep.subr.bf16.mxu0 %v6175_v63 }
 0x54d   : > { %6178 = vmatpush3.bf16.msra.mxu0 %v6175_v63 }
 0x54e   : > { %6180 = vmatprep.subr.bf16.mxu0 %v6179_v53 }
 0x551   : > { %6182 = vmatpush3.bf16.msra.mxu0 %v6179_v53 }
 0x552   : > { %6184 = vmatprep.subr.bf16.mxu0 %v6183_v59 }
 0x555   : > { %6186 = vmatpush3.bf16.msra.mxu0 %v6183_v59 }
 0x556   : > { %6188 = vmatprep.subr.bf16.mxu0 %v6187_v61 }
 0x558   : > { %5336 = vmatmul.mubr.f32.vlgmr.msra.gmra.mrb[8].mxu0 %v7011_v48  ;;  %v6207_v48 = vpack.c.bf16 %v3007_v12, %v3006_v10 }
 0x559   : > { %6190 = vmatpush3.bf16.msra.mxu0 %v6187_v61  ;;  %5370 = vmatprep.mubr.f32.mxu0 %v7026_v21  ;;  %v6211_v21 = vpack.c.bf16 %v3009_v13, %v3008_v28 }
 0x55a   : > { %6192 = vmatprep.subr.bf16.mxu0 %v6191_v7 }
 0x55d   : > { %6194 = vmatpush3.bf16.msra.mxu0 %v6191_v7 }
 0x55e   : > { %6196 = vmatprep.subr.bf16.mxu0 %v6195_v2 }
 0x561   : > { %6198 = vmatpush3.bf16.msra.mxu0 %v6195_v2 }
 0x562   : > { %6200 = vmatprep.subr.bf16.mxu0 %v6199_v6 }
 0x565   : > { %6202 = vmatpush3.bf16.msra.mxu0 %v6199_v6 }
 0x566   : > { %6204 = vmatprep.subr.bf16.mxu0 %v6203_v0 }
 0x569   : > { %6206 = vmatpush3.bf16.msra.mxu0 %v6203_v0 }
 0x56a   : > { %6208 = vmatprep.subr.bf16.mxu0 %v6207_v48 }
 0x56d   : > { %6210 = vmatpush3.bf16.msra.mxu0 %v6207_v48 }
 0x56e   : > { %6212 = vmatprep.subr.bf16.mxu0 %v6211_v21 }
 0x571   : > { %6214 = vmatpush3.bf16.msra.mxu0 %v6211_v21 }
 0x572   : > { %6216 = vmatprep.subr.bf16.mxu0 %v6215_v19 }
 0x575   : > { %6218 = vmatpush3.bf16.msra.mxu0 %v6215_v19 }
 0x578   : > { %5371 = vmatmul.mubr.f32.vlgmr.msra.gmra.mrb[8].mxu0 %v7021_v15  ;;  %v3928_v15 = vld [vmem:[%s7138_s8 + $0x8] sm:$0xff] }
 0x579   : > { %5377 = vmatprep.mubr.msk.f32.mxu0 %vm1354_vm8, %v6570_v20  ;;  %v6455_v30 = vpack.c.bf16 %v3928_v15, %v3927_v29 }
 0x590   : > { %v5624_v22 = vpop.f32.mrb[6].mxu1 }
 0x591   : > { %v3827_v24 = vpop.f32.mrb[7].mxu1 }
 0x592   : > { %v6449_v25 = vpack.c.bf16 %v5624_v22, %v3827_v24 }
 0x64b   : > { %v5372_v43 = vpop.f32.mrb[8].mxu0 }
 0x64c   : > { %v3083_v27 = vpop.f32.mrb[9].mxu0 }
 0x64d   : > { %v6219_v32 = vpack.c.bf16 %v5372_v43, %v3083_v27 }
 0x64f   : > { %6221 = vmatprep.subr.msk.bf16.mxu0 %vm6913_vm9, %v6219_v32 }
 0x650   : > { %6224 = vmatpush3.bf16.msk.msra.mxu0 %vm6913_vm9, %v6219_v32 }
 0x651   : > { %6451 = vmatprep.subr.msk.bf16.mxu0 %vm6963_vm13, %v6449_v25 }
 0x653   : > { %5378 = vmatmul.mubr.msk.f32.vlgmr.msra.gmra.mrb[6].mxu0 %vm1354_vm8, %v6571_v3 }
 0x654   : > { %6454 = vmatpush3.bf16.msk.msra.mxu0 %vm6963_vm13, %v6449_v25  ;;  %5629 = vmatprep.mubr.msk.f32.mxu0 %vm2057_vm12, %v6572_v31 }
 0x655   : > { %6456 = vmatprep.subr.bf16.mxu0 %v6455_v30 }
 0x65b   : > { %5630 = vmatmul.mubr.msk.f32.vlgmr.msra.gmra.mrb[6].mxu0 %vm2057_vm12, %v6573_v38 }
 0x65c   : > { %6458 = vmatpush3.bf16.msra.mxu0 %v6455_v30  ;;  %5648 = vmatprep.mubr.msk.f32.mxu0 %vm495_vm1, %v6574_v39 }
 0x65d   : > { %6460 = vmatprep.subr.bf16.mxu0 %v6459_v36 }
 0x660   : > { %6462 = vmatpush3.bf16.msra.mxu0 %v6459_v36 }
 0x661   : > { %6464 = vmatprep.subr.bf16.mxu0 %v6463_v40 }
 0x664   : > { %6466 = vmatpush3.bf16.msra.mxu0 %v6463_v40 }
 0x665   : > { %6468 = vmatprep.subr.bf16.mxu0 %v6467_v42 }
 0x668   : > { %6470 = vmatpush3.bf16.msra.mxu0 %v6467_v42 }
 0x66b   : > { %5649 = vmatmul.mubr.msk.f32.vlgmr.msra.gmra.mrb[6].mxu0 %vm495_vm1, %v6575_v44 }
 0x73e   : > { %v5650_v46 = vpop.f32.mrb[6].mxu0 }
 0x73f   : > { %v6473_v47 = vadd.f32 %v5650_v46, %v4236_v45  ;;  %v4008_v18 = vpop.f32.mrb[7].mxu0 }
 0x740   : > { %v6475_v23 = vadd.f32 %v4236_v45, %v4008_v18 }
 0x741   : > { %v6474_v49 = vadd.f32 %v6473_v47, %v4237_v17 }
 0x742   : > { %v6476_v51 = vadd.f32 %v6475_v23, %v4237_v17 }
 0x743   : > { %vm4020_vm0 = vcmp.ge.f32.partialorder %v6474_v49, 0.0  ;;  %v4022_v52 = vmul.f32 0.1, %v6474_v49 }
 0x744   : > { %vm4019_vm1 = vcmp.ge.f32.partialorder %v6476_v51, 0.0  ;;  %v4021_v63 = vmul.f32 0.1, %v6476_v51 }
 0x745   : > { %v4024_v54 = vsel %vm4020_vm0, %v6474_v49, %v4022_v52 }
 0x746   : > { %4026 = vst [vmem:[%s454_s19 + $0x8] sm:$0xff] %v4024_v54  ;;  %v4036_v50 = vmul.f32 %v4024_v54, %v4024_v54  ;;  %v4023_v53 = vsel %vm4019_vm1, %v6476_v51, %v4021_v63 }
 0x747   : > { %4025 = vst [vmem:[%s454_s19] sm:$0xff] %v4023_v53  ;;  %v4027_v57 = vadd.f32 %v4024_v54, %v4023_v53  ;;  %v4035_v58 = vmul.f32 %v4023_v53, %v4023_v53 }
 0x749   : > { %v4028_v59 = vrot.slane %v4027_v57, 4  ;;  %v4037_v60 = vadd.f32 %v4036_v50, %v4035_v58 }
 0x74b   : > { %v4029_v55 = vadd.f32 %v4028_v59, %v4027_v57  ;;  %v4038_v61 = vrot.slane %v4037_v60, 4 }
 0x74d   : > { %v4030_v62 = vrot.slane %v4029_v55, 2  ;;  %v4039_v34 = vadd.f32 %v4038_v61, %v4037_v60 }
 0x74f   : > { %v4031_v7 = vadd.f32 %v4030_v62, %v4029_v55  ;;  %v4040_v1 = vrot.slane %v4039_v34, 2 }
 0x751   : > { %v4032_v33 = vrot.slane %v4031_v7, 1  ;;  %v4041_v2 = vadd.f32 %v4040_v1, %v4039_v34 }
 0x753   : > { %v4033_v4 = vadd.f32 %v4032_v33, %v4031_v7  ;;  %v4042_v5 = vrot.slane %v4041_v2, 1 }
 0x755   : > { %4034 = vst [vmem:[%s457_s14] sm:$0x1] %v4033_v4  ;;  %v4043_v6 = vadd.f32 %v4042_v5, %v4041_v2 }
 0x757   : > { %4044 = vst [vmem:[%s460_s17] sm:$0x1] %v4043_v6 }
 0x758 PF: > { %s25_s21 = sadd.s32 1, %s6646_s21  }
 0x759   : > { %p22_p5 = scmp.ge.s32.totalorder %s25_s21, 4  }
 0x75b   :  { %24 = sbr.rel (!%p22_p5) target bundleno = 2 (0x2), region = 153 }
 0x762   :  { %4090 = vsyncpa [#allocation3], 1 }
 0x763   :  { %4092 = vsyncpa [#allocation3 + $0x1], 1 }
 0x764   :  { %4093 = vsyncpa [#allocation5], 1 }

</bundles_post_ra>
